<compile_context>
chip_gen: v7x
topology: tpu7x:2x2x1
jax: 0.10.0
libtpu: 0.0.40
codegen_flags: <defaults>
</compile_context>

<pallas_src>
import functools
import math

import jax
import jax.numpy as jnp
import numpy as np
from jax.experimental import pallas as pl
from jax.experimental.pallas import tpu as pltpu

_LANES = 128
_NEG_BIG = -1e30   # padded logit bias -> exp() underflows to 0 in logsumexp


def _round_up(x, m):
    return (x + m - 1) // m * m


def _cdiv(a, b):
    return -(-a // b)


def _fused_loss_kernel(x_ref, aux_ref, w1_ref, b1_ref, w2_ref, b2_ref, out_ref,
                       *, n_bins, c0, inv_step, n_rows):
    tm, d = x_ref.shape

    # ---------------- single-pass LayerNorm statistics (affine folded into W1/b1) ----------------
    x = x_ref[...].astype(jnp.float32)                      # (TM, D)
    s1 = jnp.sum(x, axis=-1, keepdims=True)
    s2 = jnp.sum(x * x, axis=-1, keepdims=True)
    mu = s1 * (1.0 / d)
    var = s2 * (1.0 / d) - mu * mu
    xn = (x - mu) * jax.lax.rsqrt(var + 1e-5)               # (TM, D)

    # ---------------- Linear(d,h) + GELU (tanh approx) ----------------
    h = jnp.dot(xn.astype(jnp.bfloat16), w1_ref[...],
                preferred_element_type=jnp.float32) + b1_ref[...]        # (TM, H) f32
    c_gelu = 0.7978845608028654   # sqrt(2/pi)
    g = 0.5 * h * (1.0 + jnp.tanh(c_gelu * (h + 0.044715 * h * h * h)))

    # ---------------- Linear(h, n_bins padded to 128) ----------------
    logits = jnp.dot(g.astype(jnp.bfloat16), w2_ref[...],
                     preferred_element_type=jnp.float32) + b2_ref[...]   # (TM, NBP) f32

    # ---------------- row validity (ragged tail) + mask ----------------
    row = jax.lax.broadcasted_iota(jnp.int32, (tm, 1), 0) + pl.program_id(0) * tm
    valid = row < n_rows
    prop = aux_ref[:, 0:1]                                   # (TM, 1)
    msk = jnp.where(valid, aux_ref[:, 1:2], 0.0)             # (TM, 1), 0 on tail rows

    # ---------------- analytic label (uniform bin grid) ----------------
    # round-half-down == torch.argmin first-index tie break on equidistant midpoints
    lbl_f = jnp.ceil((prop - c0) * inv_step - 0.5)
    label = jnp.clip(lbl_f, 0.0, float(n_bins - 1)).astype(jnp.int32)    # (TM, 1)

    # ---------------- cross entropy ----------------
    lane = jax.lax.broadcasted_iota(jnp.int32, logits.shape, 1)
    logit_lbl = jnp.sum(jnp.where(lane == label, logits, 0.0), axis=-1, keepdims=True)
    mx = jnp.max(logits, axis=-1, keepdims=True)
    lse = mx + jnp.log(jnp.sum(jnp.exp(logits - mx), axis=-1, keepdims=True))
    # select (not multiply) so NaN/garbage tail rows cannot poison the sum
    ce = jnp.where(msk > 0.0, lse - logit_lbl, 0.0)          # (TM, 1)

    ce_tile = jnp.sum(ce, axis=0, keepdims=True)             # (1, 1)
    cnt_tile = jnp.sum(msk, axis=0, keepdims=True)           # (1, 1)
    # lane-dense packed partials: sublane 0 = CE sum, sublane 1 = mask count
    out_ref[0, 0:1, :] = jnp.broadcast_to(ce_tile, (1, _LANES))
    out_ref[0, 1:2, :] = jnp.broadcast_to(cnt_tile, (1, _LANES))


def _pick_tile(m, block_rows):
    """Pick row-tile size; prefer ~1024 rows and an even grid (dual-TC v7x)."""
    if block_rows is not None:
        tm = _round_up(int(block_rows), 128)
        return tm, _cdiv(m, tm)
    m128 = _round_up(max(m, 1), 128)
    tm = min(1024, m128)
    grid = _cdiv(m, tm)
    if grid % 2 == 1 and m128 > 128:
        tm_alt = _round_up(_cdiv(m128, grid + 1), 128)
        grid_alt = _cdiv(m, tm_alt)
        if grid_alt % 2 == 0 and tm_alt >= 128:
            tm, grid = tm_alt, grid_alt
    return tm, grid


class ResiduePropertyLossNet:
    """Pallas-TPU port of the binned residue-property loss (forward, reduce=True)."""

    def __init__(self, dim_in, min_val, max_val, step, dim_hidden=None, key=None):
        key = jax.random.PRNGKey(0) if key is None else key
        dim_hidden = dim_hidden if dim_hidden is not None else max(128, dim_in)
        edges = np.arange(min_val, max_val + step, step, dtype=np.float32)
        centers = (edges[:-1] + edges[1:]) / 2.0
        self.n_bins = int(centers.size)
        self.dim_in = int(dim_in)
        self.dim_hidden = int(dim_hidden)
        self.bin_centers = jnp.asarray(centers, jnp.float32)
        self._c0 = float(centers[0])
        self._step = float(step)

        k1, k2, k3, k4 = jax.random.split(key, 4)
        self.ln_gamma = jnp.ones((dim_in,), jnp.float32)
        self.ln_beta = jnp.zeros((dim_in,), jnp.float32)
        self.w1 = jax.random.normal(k1, (dim_in, dim_hidden), jnp.float32) / math.sqrt(dim_in)
        self.b1 = 0.01 * jax.random.normal(k2, (dim_hidden,), jnp.float32)
        self.w2 = jax.random.normal(k3, (dim_hidden, self.n_bins), jnp.float32) / math.sqrt(dim_hidden)
        self.b2 = 0.01 * jax.random.normal(k4, (self.n_bins,), jnp.float32)

        # ---- cached, kernel-ready operands (computed once, not per __call__) ----
        nbp = _round_up(max(self.n_bins, 1), _LANES)
        pad_b = nbp - self.n_bins
        self._nbp = nbp
        # fold LayerNorm affine into the first linear (f32, then bf16 cast)
        w1_fold = self.ln_gamma[:, None] * self.w1
        b1_fold = self.b1 + self.ln_beta @ self.w1
        self._w1_bf16 = w1_fold.astype(jnp.bfloat16)                         # (D, H)
        self._b1_f32 = b1_fold.reshape(1, dim_hidden)                        # (1, H)
        self._w2_bf16 = jnp.pad(self.w2, ((0, 0), (0, pad_b))).astype(jnp.bfloat16)   # (H, NBP)
        self._b2_f32 = jnp.pad(self.b2, (0, pad_b), constant_values=_NEG_BIG).reshape(1, nbp)

    # TODO(synk): get_true_property is abstract in the reference module; concretized here as
    # the per-residue L2 distance between predicted and actual coordinates.
    def get_true_property(self, predicted_coords, actual_coords):
        return jnp.sqrt(jnp.sum((predicted_coords - actual_coords) ** 2, axis=-1))

    def __call__(self, residue_feats, predicted_coords, actual_coords, mask=None,
                 block_rows=None):
        # TODO(synk): only the reduce=True path (masked-mean scalar loss) is implemented;
        # label smoothing (smoothing=0 default) is not implemented.
        b, n, d = residue_feats.shape
        assert d == self.dim_in
        m = b * n
        hdim = self.dim_hidden
        nbp = self._nbp

        prop = self.get_true_property(predicted_coords, actual_coords).reshape(m)
        feats = residue_feats.reshape(m, d)               # no padding: ragged tail handled in-kernel
        if mask is None:
            mask_f = jnp.ones((m,), jnp.float32)
        else:
            mask_f = mask.reshape(m).astype(jnp.float32)
        aux = jnp.stack([prop, mask_f], axis=-1)          # (M, 2)

        tm, grid = _pick_tile(m, block_rows)

        # ---- honest VMEM budget: double-buffered tiles, lane-padded aux, resident weights,
        #      and the elementwise temporaries (xn, h, g, logits, exp, one-hot) ----
        est = (2 * tm * d * 4
               + 2 * tm * _LANES * 4
               + 2 * (d * hdim + hdim * nbp) * 2
               + 2 * (hdim + nbp) * 4
               + 2 * 2 * _LANES * 4
               + tm * d * 4
               + 6 * tm * max(hdim, nbp) * 4)
        vmem_limit = int(min(max(32 * 2 ** 20, 2 * est), 48 * 2 ** 20))

        kernel = functools.partial(
            _fused_loss_kernel,
            n_bins=self.n_bins,
            c0=self._c0,
            inv_step=1.0 / self._step,
            n_rows=m,
        )

        grid_spec = pltpu.PrefetchScalarGridSpec(
            num_scalar_prefetch=0,
            grid=(grid,),
            in_specs=[
                pl.BlockSpec((tm, d), lambda i: (i, 0)),        # residue feats tile
                pl.BlockSpec((tm, 2), lambda i: (i, 0)),        # [prop, mask] tile
                pl.BlockSpec((d, hdim), lambda i: (0, 0)),      # W1 folded (bf16, resident)
                pl.BlockSpec((1, hdim), lambda i: (0, 0)),      # b1 folded      (resident)
                pl.BlockSpec((hdim, nbp), lambda i: (0, 0)),    # W2 padded (bf16,resident)
                pl.BlockSpec((1, nbp), lambda i: (0, 0)),       # b2 padded      (resident)
            ],
            out_specs=pl.BlockSpec((1, 2, _LANES), lambda i: (i, 0, 0)),   # packed partials
        )

        partials = pl.pallas_call(
            kernel,
            grid_spec=grid_spec,
            out_shape=jax.ShapeDtypeStruct((grid, 2, _LANES), jnp.float32),
            compiler_params=pltpu.CompilerParams(
                dimension_semantics=("parallel",),
                vmem_limit_bytes=vmem_limit,
            ),
        )(feats, aux, self._w1_bf16, self._b1_f32, self._w2_bf16, self._b2_f32)

        ce_sum = jnp.sum(partials[:, 0, 0])
        cnt = jnp.sum(partials[:, 1, 0])
        return ce_sum / jnp.maximum(cnt, 1.0)     # guard against empty mask


def _reference_loss(net, feats, pred, act, mask):
    """Pure-JAX reference with the same numerics recipe (bf16 matmuls, tanh GELU),
    using the un-folded LN affine and explicit argmin labels."""
    b, n, d = feats.shape
    x = feats.reshape(-1, d).astype(jnp.float32)
    mu = x.mean(-1, keepdims=True)
    xc = x - mu
    var = (xc * xc).mean(-1, keepdims=True)
    xn = xc / jnp.sqrt(var + 1e-5) * net.ln_gamma + net.ln_beta
    h = jnp.dot(xn.astype(jnp.bfloat16), net.w1.astype(jnp.bfloat16),
                preferred_element_type=jnp.float32) + net.b1
    c0 = 0.7978845608028654
    g = 0.5 * h * (1.0 + jnp.tanh(c0 * (h + 0.044715 * h * h * h)))
    logits = jnp.dot(g.astype(jnp.bfloat16), net.w2.astype(jnp.bfloat16),
                     preferred_element_type=jnp.float32) + net.b2
    prop = jnp.sqrt(jnp.sum((pred - act) ** 2, axis=-1)).reshape(-1, 1)
    labels = jnp.argmin(jnp.abs(prop - net.bin_centers[None, :]), axis=-1)
    lse = jax.scipy.special.logsumexp(logits, axis=-1)
    picked = jnp.take_along_axis(logits, labels[:, None], axis=-1)[:, 0]
    ce = lse - picked
    mf = mask.reshape(-1).astype(jnp.float32)
    return jnp.sum(ce * mf) / jnp.maximum(jnp.sum(mf), 1.0)


if __name__ == "__main__":
    key = jax.random.PRNGKey(0)
    kf, kp, ka, km, kw = jax.random.split(key, 5)

    b, n, d, hdim = 2, 300, 64, 128
    net = ResiduePropertyLossNet(dim_in=d, min_val=0.0, max_val=15.0, step=1.0,
                                 dim_hidden=hdim, key=kw)

    residue_feats = jax.random.normal(kf, (b, n, d), jnp.float32)
    predicted_coords = jax.random.normal(kp, (b, n, 3), jnp.float32)
    actual_coords = predicted_coords + 0.5 * jax.random.normal(ka, (b, n, 3), jnp.float32)
    mask = jax.random.uniform(km, (b, n)) > 0.2

    loss = net(residue_feats, predicted_coords, actual_coords, mask)
    loss = jax.block_until_ready(loss)

    ref = jax.block_until_ready(_reference_loss(net, residue_feats, predicted_coords,
                                                actual_coords, mask))
    assert bool(jnp.isfinite(loss)), "kernel loss is not finite"
    assert abs(float(loss) - float(ref)) <= 3e-2 * max(1.0, abs(float(ref))), \
        (float(loss), float(ref))
    print("KERNEL_OK")
</pallas_src>

<mosaic_0001>
module attributes {stable_mosaic.version = 11 : i64} {
  func.func @_fused_loss_kernel(%arg0: i32, %arg1: memref<384x64xf32, #tpu.memory_space<vmem>>, %arg2: memref<384x2xf32, #tpu.memory_space<vmem>>, %arg3: memref<64x128xbf16, #tpu.memory_space<vmem>>, %arg4: memref<1x128xf32, #tpu.memory_space<vmem>>, %arg5: memref<128x128xbf16, #tpu.memory_space<vmem>>, %arg6: memref<1x128xf32, #tpu.memory_space<vmem>>, %arg7: memref<1x2x128xf32, #tpu.memory_space<vmem>>) attributes {dimension_semantics = [#tpu.dimension_semantics<parallel>], iteration_bounds = array<i64: 2>, scalar_prefetch = 0 : i64, scratch_operands = 0 : i64, tpu.core_type = #tpu.core_type<tc>, window_params = [{transform_indices = @transform_0, window_bounds = array<i64: 384, 64>}, {transform_indices = @transform_1, window_bounds = array<i64: 384, 2>}, {pipeline_mode = #tpu.pipeline_mode<synchronous>, transform_indices = @transform_2, window_bounds = array<i64: 64, 128>}, {pipeline_mode = #tpu.pipeline_mode<synchronous>, transform_indices = @transform_3, window_bounds = array<i64: 1, 128>}, {pipeline_mode = #tpu.pipeline_mode<synchronous>, transform_indices = @transform_4, window_bounds = array<i64: 128, 128>}, {pipeline_mode = #tpu.pipeline_mode<synchronous>, transform_indices = @transform_5, window_bounds = array<i64: 1, 128>}, {transform_indices = @transform_6, window_bounds = array<i64: 1, 2, 128>}]} {
    %c0 = arith.constant 0 : index
    %c0_0 = arith.constant 0 : index
    %0 = vector.load %arg1[%c0, %c0_0] : memref<384x64xf32, #tpu.memory_space<vmem>>, vector<384x64xf32>
    %cst = arith.constant dense<0.000000e+00> : vector<384xf32>
    %1 = vector.multi_reduction <add>, %0, %cst [1] : vector<384x64xf32> to vector<384xf32>
    %2 = vector.shape_cast %1 : vector<384xf32> to vector<384x1xf32>
    %3 = arith.mulf %0, %0 : vector<384x64xf32>
    %cst_1 = arith.constant dense<0.000000e+00> : vector<384xf32>
    %4 = vector.multi_reduction <add>, %3, %cst_1 [1] : vector<384x64xf32> to vector<384xf32>
    %5 = vector.shape_cast %4 : vector<384xf32> to vector<384x1xf32>
    %cst_2 = arith.constant 1.562500e-02 : f32
    %6 = vector.broadcast %cst_2 : f32 to vector<384x1xf32>
    %7 = arith.mulf %2, %6 : vector<384x1xf32>
    %cst_3 = arith.constant 1.562500e-02 : f32
    %8 = vector.broadcast %cst_3 : f32 to vector<384x1xf32>
    %9 = arith.mulf %5, %8 : vector<384x1xf32>
    %10 = arith.mulf %7, %7 : vector<384x1xf32>
    %11 = arith.subf %9, %10 : vector<384x1xf32>
    %12 = vector.broadcast %7 : vector<384x1xf32> to vector<384x64xf32>
    %13 = arith.subf %0, %12 : vector<384x64xf32>
    %cst_4 = arith.constant 9.99999974E-6 : f32
    %14 = vector.broadcast %cst_4 : f32 to vector<384x1xf32>
    %15 = arith.addf %11, %14 : vector<384x1xf32>
    %16 = math.rsqrt %15 : vector<384x1xf32>
    %17 = vector.broadcast %16 : vector<384x1xf32> to vector<384x64xf32>
    %18 = arith.mulf %13, %17 : vector<384x64xf32>
    %19 = arith.truncf %18 : vector<384x64xf32> to vector<384x64xbf16>
    %c0_5 = arith.constant 0 : index
    %c0_6 = arith.constant 0 : index
    %20 = vector.load %arg3[%c0_5, %c0_6] : memref<64x128xbf16, #tpu.memory_space<vmem>>, vector<64x128xbf16>
    %cst_7 = arith.constant dense<0.000000e+00> : vector<384x128xf32>
    %21 = tpu.matmul %19, %20, %cst_7 {dimension_numbers = #tpu.dot_dimension_numbers<[1], [0], [0], [1], [0, 0, 1, 1], [], []>} : vector<384x64xbf16>, vector<64x128xbf16>, vector<384x128xf32> -> vector<384x128xf32>
    %c0_8 = arith.constant 0 : index
    %c0_9 = arith.constant 0 : index
    %22 = vector.load %arg4[%c0_8, %c0_9] : memref<1x128xf32, #tpu.memory_space<vmem>>, vector<1x128xf32>
    %23 = vector.broadcast %22 : vector<1x128xf32> to vector<384x128xf32>
    %24 = arith.addf %21, %23 : vector<384x128xf32>
    %cst_10 = arith.constant 5.000000e-01 : f32
    %25 = vector.broadcast %cst_10 : f32 to vector<384x128xf32>
    %26 = arith.mulf %25, %24 : vector<384x128xf32>
    %cst_11 = arith.constant 4.471500e-02 : f32
    %27 = vector.broadcast %cst_11 : f32 to vector<384x128xf32>
    %28 = arith.mulf %27, %24 : vector<384x128xf32>
    %29 = arith.mulf %28, %24 : vector<384x128xf32>
    %30 = arith.mulf %29, %24 : vector<384x128xf32>
    %31 = arith.addf %24, %30 : vector<384x128xf32>
    %cst_12 = arith.constant 0.797884583 : f32
    %32 = vector.broadcast %cst_12 : f32 to vector<384x128xf32>
    %33 = arith.mulf %32, %31 : vector<384x128xf32>
    %34 = math.tanh %33 : vector<384x128xf32>
    %cst_13 = arith.constant 1.000000e+00 : f32
    %35 = vector.broadcast %cst_13 : f32 to vector<384x128xf32>
    %36 = arith.addf %35, %34 : vector<384x128xf32>
    %37 = arith.mulf %26, %36 : vector<384x128xf32>
    %38 = arith.truncf %37 : vector<384x128xf32> to vector<384x128xbf16>
    %c0_14 = arith.constant 0 : index
    %c0_15 = arith.constant 0 : index
    %39 = vector.load %arg5[%c0_14, %c0_15] : memref<128x128xbf16, #tpu.memory_space<vmem>>, vector<128x128xbf16>
    %cst_16 = arith.constant dense<0.000000e+00> : vector<384x128xf32>
    %40 = tpu.matmul %38, %39, %cst_16 {dimension_numbers = #tpu.dot_dimension_numbers<[1], [0], [0], [1], [0, 0, 1, 1], [], []>} : vector<384x128xbf16>, vector<128x128xbf16>, vector<384x128xf32> -> vector<384x128xf32>
    %c0_17 = arith.constant 0 : index
    %c0_18 = arith.constant 0 : index
    %41 = vector.load %arg6[%c0_17, %c0_18] : memref<1x128xf32, #tpu.memory_space<vmem>>, vector<1x128xf32>
    %42 = vector.broadcast %41 : vector<1x128xf32> to vector<384x128xf32>
    %43 = arith.addf %40, %42 : vector<384x128xf32>
    %44 = tpu.iota {dimensions = array<i32: 0>} : vector<384x1xi32>
    %c384_i32 = arith.constant 384 : i32
    %45 = arith.muli %arg0, %c384_i32 : i32
    %46 = vector.broadcast %45 : i32 to vector<384x1xi32>
    %47 = arith.addi %44, %46 : vector<384x1xi32>
    %c600_i32 = arith.constant 600 : i32
    %48 = vector.broadcast %c600_i32 : i32 to vector<384x1xi32>
    %49 = arith.cmpi slt, %47, %48 : vector<384x1xi32>
    %c0_19 = arith.constant 0 : index
    %c0_20 = arith.constant 0 : index
    %50 = vector.load %arg2[%c0_19, %c0_20] : memref<384x2xf32, #tpu.memory_space<vmem>>, vector<384x1xf32>
    %c0_21 = arith.constant 0 : index
    %c1 = arith.constant 1 : index
    %51 = vector.load %arg2[%c0_21, %c1] : memref<384x2xf32, #tpu.memory_space<vmem>>, vector<384x1xf32>
    %cst_22 = arith.constant 0.000000e+00 : f32
    %52 = vector.broadcast %cst_22 : f32 to vector<384x1xf32>
    %53 = arith.select %49, %51, %52 : vector<384x1xi1>, vector<384x1xf32>
    %cst_23 = arith.constant 5.000000e-01 : f32
    %54 = vector.broadcast %cst_23 : f32 to vector<384x1xf32>
    %55 = arith.subf %50, %54 : vector<384x1xf32>
    %cst_24 = arith.constant 1.000000e+00 : f32
    %56 = vector.broadcast %cst_24 : f32 to vector<384x1xf32>
    %57 = arith.mulf %55, %56 : vector<384x1xf32>
    %cst_25 = arith.constant 5.000000e-01 : f32
    %58 = vector.broadcast %cst_25 : f32 to vector<384x1xf32>
    %59 = arith.subf %57, %58 : vector<384x1xf32>
    %60 = math.ceil %59 : vector<384x1xf32>
    %cst_26 = arith.constant 0.000000e+00 : f32
    %cst_27 = arith.constant 1.400000e+01 : f32
    %61 = vector.broadcast %cst_26 : f32 to vector<384x1xf32>
    %62 = arith.maximumf %61, %60 : vector<384x1xf32>
    %63 = vector.broadcast %cst_27 : f32 to vector<384x1xf32>
    %64 = arith.minimumf %63, %62 : vector<384x1xf32>
    %65 = arith.fptosi %64 : vector<384x1xf32> to vector<384x1xi32>
    %66 = tpu.iota {dimensions = array<i32: 1>} : vector<384x128xi32>
    %67 = vector.broadcast %65 : vector<384x1xi32> to vector<384x128xi32>
    %68 = arith.cmpi eq, %66, %67 : vector<384x128xi32>
    %cst_28 = arith.constant 0.000000e+00 : f32
    %69 = vector.broadcast %cst_28 : f32 to vector<384x128xf32>
    %70 = arith.select %68, %43, %69 : vector<384x128xi1>, vector<384x128xf32>
    %cst_29 = arith.constant dense<0.000000e+00> : vector<384xf32>
    %71 = vector.multi_reduction <add>, %70, %cst_29 [1] : vector<384x128xf32> to vector<384xf32>
    %72 = vector.shape_cast %71 : vector<384xf32> to vector<384x1xf32>
    %cst_30 = arith.constant dense<0xFF800000> : vector<384xf32>
    %73 = vector.multi_reduction <maximumf>, %43, %cst_30 [1] : vector<384x128xf32> to vector<384xf32>
    %74 = vector.shape_cast %73 : vector<384xf32> to vector<384x1xf32>
    %75 = vector.broadcast %74 : vector<384x1xf32> to vector<384x128xf32>
    %76 = arith.subf %43, %75 : vector<384x128xf32>
    %77 = math.exp %76 : vector<384x128xf32>
    %cst_31 = arith.constant dense<0.000000e+00> : vector<384xf32>
    %78 = vector.multi_reduction <add>, %77, %cst_31 [1] : vector<384x128xf32> to vector<384xf32>
    %79 = vector.shape_cast %78 : vector<384xf32> to vector<384x1xf32>
    %80 = math.log %79 : vector<384x1xf32>
    %81 = arith.addf %74, %80 : vector<384x1xf32>
    %cst_32 = arith.constant 0.000000e+00 : f32
    %82 = vector.broadcast %cst_32 : f32 to vector<384x1xf32>
    %83 = arith.cmpf ogt, %53, %82 : vector<384x1xf32>
    %84 = arith.subf %81, %72 : vector<384x1xf32>
    %cst_33 = arith.constant 0.000000e+00 : f32
    %85 = vector.broadcast %cst_33 : f32 to vector<384x1xf32>
    %86 = arith.select %83, %84, %85 : vector<384x1xi1>, vector<384x1xf32>
    %cst_34 = arith.constant dense<0.000000e+00> : vector<1xf32>
    %87 = vector.multi_reduction <add>, %86, %cst_34 [0] : vector<384x1xf32> to vector<1xf32>
    %88 = vector.shape_cast %87 : vector<1xf32> to vector<1x1xf32>
    %cst_35 = arith.constant dense<0.000000e+00> : vector<1xf32>
    %89 = vector.multi_reduction <add>, %53, %cst_35 [0] : vector<384x1xf32> to vector<1xf32>
    %90 = vector.shape_cast %89 : vector<1xf32> to vector<1x1xf32>
    %91 = vector.shape_cast %88 : vector<1x1xf32> to vector<1x1xf32>
    %92 = vector.broadcast %91 : vector<1x1xf32> to vector<1x128xf32>
    %c0_36 = arith.constant 0 : index
    %c0_37 = arith.constant 0 : index
    %c0_38 = arith.constant 0 : index
    %93 = vector.load %arg7[%c0_36, %c0_37, %c0_38] : memref<1x2x128xf32, #tpu.memory_space<vmem>>, vector<1x1x128xf32>
    %94 = vector.shape_cast %93 : vector<1x1x128xf32> to vector<1x128xf32>
    %95 = vector.shape_cast %92 : vector<1x128xf32> to vector<1x1x128xf32>
    tpu.vector_store %arg7[%c0_36, %c0_37, %c0_38], %95 {strides = array<i32>} : memref<1x2x128xf32, #tpu.memory_space<vmem>>, vector<1x1x128xf32>,
    %96 = vector.shape_cast %90 : vector<1x1xf32> to vector<1x1xf32>
    %97 = vector.broadcast %96 : vector<1x1xf32> to vector<1x128xf32>
    %c0_39 = arith.constant 0 : index
    %c1_40 = arith.constant 1 : index
    %c0_41 = arith.constant 0 : index
    %98 = vector.load %arg7[%c0_39, %c1_40, %c0_41] : memref<1x2x128xf32, #tpu.memory_space<vmem>>, vector<1x1x128xf32>
    %99 = vector.shape_cast %98 : vector<1x1x128xf32> to vector<1x128xf32>
    %100 = vector.shape_cast %97 : vector<1x128xf32> to vector<1x1x128xf32>
    tpu.vector_store %arg7[%c0_39, %c1_40, %c0_41], %100 {strides = array<i32>} : memref<1x2x128xf32, #tpu.memory_space<vmem>>, vector<1x1x128xf32>,
    return
  }
  func.func @transform_0(%arg0: i32) -> (i32, i32) {
    %c0_i32 = arith.constant 0 : i32
    %c0_i32_0 = arith.constant 0 : i32
    return %arg0, %c0_i32 : i32, i32
  }
  func.func @transform_1(%arg0: i32) -> (i32, i32) {
    %c0_i32 = arith.constant 0 : i32
    %c0_i32_0 = arith.constant 0 : i32
    return %arg0, %c0_i32 : i32, i32
  }
  func.func @transform_2(%arg0: i32) -> (i32, i32) {
    %c0_i32 = arith.constant 0 : i32
    %c0_i32_0 = arith.constant 0 : i32
    %c0_i32_1 = arith.constant 0 : i32
    return %c0_i32, %c0_i32_0 : i32, i32
  }
  func.func @transform_3(%arg0: i32) -> (i32, i32) {
    %c0_i32 = arith.constant 0 : i32
    %c0_i32_0 = arith.constant 0 : i32
    %c0_i32_1 = arith.constant 0 : i32
    return %c0_i32, %c0_i32_0 : i32, i32
  }
  func.func @transform_4(%arg0: i32) -> (i32, i32) {
    %c0_i32 = arith.constant 0 : i32
    %c0_i32_0 = arith.constant 0 : i32
    %c0_i32_1 = arith.constant 0 : i32
    return %c0_i32, %c0_i32_0 : i32, i32
  }
  func.func @transform_5(%arg0: i32) -> (i32, i32) {
    %c0_i32 = arith.constant 0 : i32
    %c0_i32_0 = arith.constant 0 : i32
    %c0_i32_1 = arith.constant 0 : i32
    return %c0_i32, %c0_i32_0 : i32, i32
  }
  func.func @transform_6(%arg0: i32) -> (i32, i32, i32) {
    %c0_i32 = arith.constant 0 : i32
    %c0_i32_0 = arith.constant 0 : i32
    %c0_i32_1 = arith.constant 0 : i32
    return %arg0, %c0_i32, %c0_i32_0 : i32, i32, i32
  }
}

</mosaic_0001>

<bundles_post_ra>
// kernel: tpu_custom_call.1
= control target key start
LH: loop header
LB: loop body
LE: loop exit
PB: predicated region body
PF: predicated region fallthrough
CT: control target
= control target key end

     0   :  { %11 = vsyncpa [#allocation3], 0  ;;  %s7505_s0 = inlined_call_operand.vmem [shape: f32[600,64], index: 0, kind: input, shape index: {}]   ;;  %s7506_s1 = inlined_call_operand.vmem [shape: f32[600,2], index: 1, kind: input, shape index: {}]   ;;  %s7507_s2 = inlined_call_operand.vmem [shape: bf16[64,128], index: 2, kind: input, shape index: {}]   ;;  %s7508_s3 = inlined_call_operand.vmem [shape: f32[1,128], index: 3, kind: input, shape index: {}]   ;;  %s7509_s4 = inlined_call_operand.vmem [shape: bf16[128,128], index: 4, kind: input, shape index: {}]   ;;  %s7510_s5 = inlined_call_operand.vmem [shape: f32[1,128], index: 5, kind: input, shape index: {}]   ;;  %s7511_s6 = inlined_call_operand.hbm [shape: f32[2,2,128], index: 6, kind: output, shape index: {}]  }
   0x1   :  { %13 = vsyncpa [#allocation3 + $0x1], 0  ;;  %s5039_s21 = smov 0   ;;  %s5041_s22 = smov 0  }
   0x2   :  { %s5043_s23 = smov 0   ;;  %s5045_s24 = smov 0  }
   0x3 LB: > { %s5060_s25 = sadd.s32 4294967295, %s4999_s24   ;;  %s3989_s26 = sadd.s32 4294967294, %s4999_s24   ;;  %s4999_s24 = sphi %s5045_s24, %s7806_s24   ;;  %s4995_s23 = sphi %s5043_s23, %s7805_s23   ;;  %s4991_s22 = sphi %s5041_s22, %s7804_s22   ;;  %s4987_s21 = sphi %s5039_s21, %s7803_s21  }
   0x4   : > { %s5064_s27 = sadd.s32 1, %s4999_s24   ;;  %s162_s28 = sadd.s32 1, %s4995_s23 }
   0x5   : > { %s159_s29 = ssub.s32 %s4999_s24, %s5064_s27  ;;  %p172_p0 = scmp.ne.s32.totalorder %s4995_s23, %s4991_s22 }
   0x6   : > { %p160_p1 = scmp.eq.s32.totalorder %s159_s29, 0  ;;  %p173_p2 = scmp.eq.s32.totalorder %s5060_s25, 1 }
   0x7   : > { %p178_p3 = scmp.ne.s32.totalorder %s4991_s22, %s4987_s21  ;;  %p179_p4 = scmp.eq.s32.totalorder %s3989_s26, 1 }
   0x8   : > { %s5075_s30 = scalar_select %p160_p1, %s4995_s23, %s162_s28  }
   0x9   : > { %p5077_p5 = por %p173_p2, %p172_p0  ;;  %p5081_p6 = por %p179_p4, %p178_p3 }
   0xa   : > { %p3992_p7 = scmp.ge.s32.totalorder %s4999_s24, 1  ;;  %p243_p8 = scmp.lt.s32.totalorder %s4999_s24, 3 }
   0xc   : > { %p244_p9 = pnand %p3992_p7, %p243_p8 }
   0xe   : > { %247 = sbr.rel (%p244_p9) target bundleno = 1369 (0x559), region = 44 }
  0x15   : > { %s286_s9 = smul.u32 48, %s5060_s25  ;;  %vm363_vm0 = vcmask 523264   ;;  %v4471_v38 = vld [vmem:[%s7507_s2] sm:$0xff]   ;;  %v4472_v43 = vld [vmem:[%s7507_s2 + $0x8] sm:$0xff]   ;;  %v4473_v48 = vld [vmem:[%s7507_s2 + $0x10] sm:$0xff]   ;;  %vm3689_vm2 = vcmask 15368  }
  0x16   : > { %4194 = vmatprep.subr.bf16.mxu0 %v4471_v38  ;;  %v4474_v53 = vld [vmem:[%s7507_s2 + $0x18] sm:$0xff]   ;;  %s2245_s12 = smul.u32 384, %s5060_s25  ;;  %s283_s26 = sand.u32 1, %s4991_s22  }
  0x17   : > { %p291_p10 = scmp.lt.s32.totalorder %s286_s9, 74  ;;  %4195 = vmatpush3.bf16.msra.mxu0 %v4471_v38  ;;  %s3993_s28 = sshll.u32 %s283_s26, 1 }
  0x18   : > { %4196 = vmatprep.subr.bf16.mxu0 %v4472_v43  ;;  %s285_s29 = scalar_lea.vmem [#allocation2], %s3993_s28  ;;  %s3905_s15 = scalar_lea.sflag [#allocation3], %s283_s26 }
  0x19   : > { %s7808_s9 = smov (!%p291_p10, %s286_s9), 74  ;;  %s5003_s16 = smov [#allocation2]  }
  0x1a   : > { %s3994_s10 = sshll.u32 %s7808_s9, 3  ;;  %s4131_s9 = sshll.u32 %s5060_s25, 5 }
  0x1b   : > { %s5096_s13 = scalar_lea.vmem %s7505_s0, %s3994_s10  ;;  %4197 = vmatpush3.bf16.msra.mxu0 %v4472_v43  ;;  %s5570_s11 = scalar_lea.vmem %s7506_s1, %s3994_s10 }
  0x1c   : > { %v5099_v0 = vld [vmem:[%s5096_s13 + $0x10] sm:$0xff]  ;;  %v5102_v1 = vld [vmem:[%s5096_s13] sm:$0xff]  ;;  %v5105_v2 = vld [vmem:[%s5096_s13 + $0x18] sm:$0xff]  ;;  %4198 = vmatprep.subr.bf16.mxu0 %v4473_v48  ;;  %s7465_s14 = scalar_lea.hbm %s7511_s6, %s4131_s9  ;;  %s4941_s25 = sshll.u32 %s5003_s16, 4  ;;  %s4942_s25 = int_to_ptr.vmem [resolvable:$false] %s4941_s25 }
  0x1d   : > { %v370_v3 = vsel %vm363_vm0, %v5099_v0, 0.0  ;;  %v364_v4 = vsel %vm363_vm0, %v5102_v1, 0.0  ;;  %v5112_v5 = vld [vmem:[%s5096_s13 + $0x8] sm:$0xff]  ;;  %v373_v6 = vsel %vm363_vm0, %v5105_v2, 0.0  ;;  %v508_v9 = vmul.f32 %v5102_v1, %v5102_v1  ;;  %v5134_v17 = vld [vmem:[%s5096_s13 + $0x20] sm:$0xff]  ;;  %v5141_v20 = vld [vmem:[%s5096_s13 + $0x38] sm:$0xff] }
  0x1e   : > { %371 = vadd.xlane.f32.xlu1 %v370_v3  ;;  %365 = vadd.xlane.f32.xlu0 %v364_v4  ;;  %v367_v7 = vsel %vm363_vm0, %v5112_v5, 0.0  ;;  %v509_v8 = vmul.f32 %v5112_v5, %v5112_v5  ;;  %v511_v12 = vmul.f32 %v5105_v2, %v5105_v2  ;;  %v510_v13 = vmul.f32 %v5099_v0, %v5099_v0  ;;  %v5131_v16 = vld [vmem:[%s5096_s13 + $0x28] sm:$0xff]  ;;  %v5144_v21 = vld [vmem:[%s5096_s13 + $0x30] sm:$0xff]  ;;  %v5166_v33 = vld [vmem:[%s5096_s13 + $0x40] sm:$0xff]  ;;  %s4943_s17 = scalar_lea.vmem %s4942_s25, 64 }
  0x1f   : > { %v556_v11 = vsel %vm363_vm0, %v508_v9, 0.0  ;;  %v379_v18 = vsel %vm363_vm0, %v5131_v16, 0.0  ;;  %v376_v19 = vsel %vm363_vm0, %v5134_v17, 0.0  ;;  %v385_v22 = vsel %vm363_vm0, %v5141_v20, 0.0  ;;  %v5163_v32 = vld [vmem:[%s5096_s13 + $0x48] sm:$0xff]  ;;  %v5173_v36 = vld [vmem:[%s5096_s13 + $0x58] sm:$0xff]  ;;  %4199 = vmatpush3.bf16.msra.mxu0 %v4473_v48 }
  0x20   : > { %v559_v10 = vsel %vm363_vm0, %v509_v8, 0.0  ;;  %v565_v14 = vsel %vm363_vm0, %v511_v12, 0.0  ;;  %v562_v15 = vsel %vm363_vm0, %v510_v13, 0.0  ;;  %v382_v23 = vsel %vm363_vm0, %v5144_v21, 0.0  ;;  %v5176_v37 = vld [vmem:[%s5096_s13 + $0x50] sm:$0xff]  ;;  %v5204_v51 = vld [vmem:[%s5096_s13 + $0x68] sm:$0xff]  ;;  %4200 = vmatprep.subr.bf16.mxu0 %v4474_v53 }
  0x21   : > { %v513_v24 = vmul.f32 %v5131_v16, %v5131_v16  ;;  %v512_v25 = vmul.f32 %v5134_v17, %v5134_v17  ;;  %v515_v28 = vmul.f32 %v5141_v20, %v5141_v20  ;;  %v514_v29 = vmul.f32 %v5144_v21, %v5144_v21  ;;  %v5207_v52 = vld [vmem:[%s5096_s13 + $0x60] sm:$0xff]  ;;  %v5217_v56 = vld [vmem:[%s5096_s13 + $0x78] sm:$0xff]  ;;  %v5220_v57 = vld [vmem:[%s5096_s13 + $0x70] sm:$0xff] }
  0x22   : > { %374 = vadd.xlane.f32.xlu1 %v373_v6  ;;  %368 = vadd.xlane.f32.xlu0 %v367_v7  ;;  %v391_v34 = vsel %vm363_vm0, %v5163_v32, 0.0  ;;  %v388_v35 = vsel %vm363_vm0, %v5166_v33, 0.0  ;;  %v397_v39 = vsel %vm363_vm0, %v5173_v36, 0.0  ;;  %v394_v40 = vsel %vm363_vm0, %v5176_v37, 0.0  ;;  %v5239_v8 = vld [vmem:[%s5096_s13 + $0x88] sm:$0xff]  ;;  %v5242_v9 = vld [vmem:[%s5096_s13 + $0x80] sm:$0xff] }
  0x23   : > { %v571_v26 = vsel %vm363_vm0, %v513_v24, 0.0  ;;  %v568_v27 = vsel %vm363_vm0, %v512_v25, 0.0  ;;  %v577_v30 = vsel %vm363_vm0, %v515_v28, 0.0  ;;  %v574_v31 = vsel %vm363_vm0, %v514_v29, 0.0  ;;  %4201 = vmatpush3.bf16.msra.mxu0 %v4474_v53  ;;  %v5249_v12 = vld [vmem:[%s5096_s13 + $0x98] sm:$0xff]  ;;  %v5252_v13 = vld [vmem:[%s5096_s13 + $0x90] sm:$0xff] }
  0x24   : > { %v517_v41 = vmul.f32 %v5163_v32, %v5163_v32  ;;  %v516_v42 = vmul.f32 %v5166_v33, %v5166_v33  ;;  %v519_v46 = vmul.f32 %v5173_v36, %v5173_v36  ;;  %v518_v47 = vmul.f32 %v5176_v37, %v5176_v37  ;;  %v5271_v28 = vld [vmem:[%s5096_s13 + $0xa8] sm:$0xff]  ;;  %v5274_v29 = vld [vmem:[%s5096_s13 + $0xa0] sm:$0xff] }
  0x25   : > { %v403_v54 = vsel %vm363_vm0, %v5204_v51, 0.0  ;;  %v400_v55 = vsel %vm363_vm0, %v5207_v52, 0.0  ;;  %v409_v58 = vsel %vm363_vm0, %v5217_v56, 0.0  ;;  %v406_v59 = vsel %vm363_vm0, %v5220_v57, 0.0  ;;  %v340_v48 = vld [vmem:[%s5096_s13 + $0xc8] sm:$0xff] }
  0x26   : > { %560 = vadd.xlane.f32.xlu1 %v559_v10  ;;  %557 = vadd.xlane.f32.xlu0 %v556_v11  ;;  %v583_v44 = vsel %vm363_vm0, %v517_v41, 0.0  ;;  %v580_v45 = vsel %vm363_vm0, %v516_v42, 0.0  ;;  %v589_v49 = vsel %vm363_vm0, %v519_v46, 0.0  ;;  %v586_v50 = vsel %vm363_vm0, %v518_v47, 0.0 }
  0x27   : > { %v521_v60 = vmul.f32 %v5204_v51, %v5204_v51  ;;  %v520_v61 = vmul.f32 %v5207_v52, %v5207_v52  ;;  %v523_v3 = vmul.f32 %v5217_v56, %v5217_v56  ;;  %v522_v4 = vmul.f32 %v5220_v57, %v5220_v57 }
  0x28   : > { %v415_v10 = vsel %vm363_vm0, %v5239_v8, 0.0  ;;  %v412_v11 = vsel %vm363_vm0, %v5242_v9, 0.0  ;;  %v527_v24 = vmul.f32 %v5249_v12, %v5249_v12  ;;  %v526_v25 = vmul.f32 %v5252_v13, %v5252_v13 }
  0x29   : > { %v595_v62 = vsel %vm363_vm0, %v521_v60, 0.0  ;;  %v592_v63 = vsel %vm363_vm0, %v520_v61, 0.0  ;;  %v601_v6 = vsel %vm363_vm0, %v523_v3, 0.0  ;;  %v598_v7 = vsel %vm363_vm0, %v522_v4, 0.0 }
  0x2a   : > { %566 = vadd.xlane.f32.xlu1 %v565_v14  ;;  %563 = vadd.xlane.f32.xlu0 %v562_v15  ;;  %v421_v14 = vsel %vm363_vm0, %v5249_v12, 0.0  ;;  %v418_v15 = vsel %vm363_vm0, %v5252_v13, 0.0  ;;  %v528_v41 = vmul.f32 %v5274_v29, %v5274_v29  ;;  %v533_v60 = vmul.f32 %v340_v48, %v340_v48 }
  0x2c   : > { %v616_v43 = vsel %vm363_vm0, %v528_v41, 0.0  ;;  %v347_v41 = vld [vmem:[%s5096_s13 + $0x100] sm:$0xff] }
  0x2e   : > { %380 = vadd.xlane.f32.xlu1 %v379_v18  ;;  %377 = vadd.xlane.f32.xlu0 %v376_v19  ;;  %v525_v18 = vmul.f32 %v5239_v8, %v5239_v8  ;;  %v524_v19 = vmul.f32 %v5242_v9, %v5242_v9 }
  0x32   : > { %386 = vadd.xlane.f32.xlu1 %v385_v22  ;;  %383 = vadd.xlane.f32.xlu0 %v382_v23  ;;  %v607_v22 = vsel %vm363_vm0, %v525_v18, 0.0  ;;  %v604_v23 = vsel %vm363_vm0, %v524_v19, 0.0  ;;  %v346_v18 = vld [vmem:[%s5096_s13 + $0xf8] sm:$0xff]  ;;  %v345_v19 = vld [vmem:[%s5096_s13 + $0xf0] sm:$0xff] }
  0x36   : > { %572 = vadd.xlane.f32.xlu1 %v571_v26  ;;  %569 = vadd.xlane.f32.xlu0 %v568_v27  ;;  %v613_v26 = vsel %vm363_vm0, %v527_v24, 0.0  ;;  %v610_v27 = vsel %vm363_vm0, %v526_v25, 0.0 }
  0x3a   : > { %578 = vadd.xlane.f32.xlu1 %v577_v30  ;;  %575 = vadd.xlane.f32.xlu0 %v574_v31  ;;  %v427_v30 = vsel %vm363_vm0, %v5271_v28, 0.0  ;;  %v424_v31 = vsel %vm363_vm0, %v5274_v29, 0.0 }
  0x3e   : > { %392 = vadd.xlane.f32.xlu1 %v391_v34  ;;  %389 = vadd.xlane.f32.xlu0 %v388_v35  ;;  %v5281_v34 = vld [vmem:[%s5096_s13 + $0xb8] sm:$0xff]  ;;  %v5284_v35 = vld [vmem:[%s5096_s13 + $0xb0] sm:$0xff] }
  0x3f   : > { %v433_v38 = vsel %vm363_vm0, %v5281_v34, 0.0 }
  0x42   : > { %398 = vadd.xlane.f32.xlu1 %v397_v39  ;;  %395 = vadd.xlane.f32.xlu0 %v394_v40  ;;  %v430_v39 = vsel %vm363_vm0, %v5284_v35, 0.0  ;;  %v529_v40 = vmul.f32 %v5271_v28, %v5271_v28 }
  0x44   : > { %v619_v42 = vsel %vm363_vm0, %v529_v40, 0.0  ;;  %v348_v40 = vld [vmem:[%s5096_s13 + $0x108] sm:$0xff] }
  0x46   : > { %584 = vadd.xlane.f32.xlu1 %v583_v44  ;;  %581 = vadd.xlane.f32.xlu0 %v580_v45  ;;  %v531_v44 = vmul.f32 %v5281_v34, %v5281_v34  ;;  %v530_v45 = vmul.f32 %v5284_v35, %v5284_v35 }
  0x48   : > { %v625_v46 = vsel %vm363_vm0, %v531_v44, 0.0  ;;  %v622_v47 = vsel %vm363_vm0, %v530_v45, 0.0  ;;  %v350_v44 = vld [vmem:[%s5096_s13 + $0x118] sm:$0xff]  ;;  %v349_v45 = vld [vmem:[%s5096_s13 + $0x110] sm:$0xff] }
  0x4a   : > { %590 = vadd.xlane.f32.xlu1 %v589_v49  ;;  %587 = vadd.xlane.f32.xlu0 %v586_v50  ;;  %v339_v49 = vld [vmem:[%s5096_s13 + $0xc0] sm:$0xff]  ;;  %v439_v50 = vsel %vm363_vm0, %v340_v48, 0.0  ;;  %v541_v48 = vmul.f32 %v348_v40, %v348_v40 }
  0x4b   : > { %v436_v53 = vsel %vm363_vm0, %v339_v49, 0.0  ;;  %v532_v61 = vmul.f32 %v339_v49, %v339_v49  ;;  %v540_v49 = vmul.f32 %v347_v41, %v347_v41 }
  0x4e   : > { %404 = vadd.xlane.f32.xlu1 %v403_v54  ;;  %401 = vadd.xlane.f32.xlu0 %v400_v55  ;;  %v5307_v54 = vld [vmem:[%s5096_s13 + $0xd8] sm:$0xff]  ;;  %v341_v55 = vld [vmem:[%s5096_s13 + $0xd0] sm:$0xff] }
  0x4f   : > { %v535_v3 = vmul.f32 %v5307_v54, %v5307_v54  ;;  %v534_v4 = vmul.f32 %v341_v55, %v341_v55 }
  0x52   : > { %410 = vadd.xlane.f32.xlu1 %v409_v58  ;;  %407 = vadd.xlane.f32.xlu0 %v406_v59  ;;  %v445_v58 = vsel %vm363_vm0, %v5307_v54, 0.0  ;;  %v442_v59 = vsel %vm363_vm0, %v341_v55, 0.0  ;;  %v543_v55 = vmul.f32 %v350_v44, %v350_v44 }
  0x56   : > { %596 = vadd.xlane.f32.xlu1 %v595_v62  ;;  %593 = vadd.xlane.f32.xlu0 %v592_v63  ;;  %v631_v62 = vsel %vm363_vm0, %v533_v60, 0.0  ;;  %v628_v63 = vsel %vm363_vm0, %v532_v61, 0.0  ;;  %v352_v61 = vld [vmem:[%s5096_s13 + $0x128] sm:$0xff] }
  0x5a   : > { %602 = vadd.xlane.f32.xlu1 %v601_v6  ;;  %599 = vadd.xlane.f32.xlu0 %v598_v7  ;;  %v637_v6 = vsel %vm363_vm0, %v535_v3, 0.0  ;;  %v634_v7 = vsel %vm363_vm0, %v534_v4, 0.0  ;;  %v475_v4 = vsel %vm363_vm0, %v352_v61, 0.0 }
  0x5e   : > { %416 = vadd.xlane.f32.xlu1 %v415_v10  ;;  %413 = vadd.xlane.f32.xlu0 %v412_v11  ;;  %v344_v10 = vld [vmem:[%s5096_s13 + $0xe8] sm:$0xff]  ;;  %v343_v11 = vld [vmem:[%s5096_s13 + $0xe0] sm:$0xff] }
  0x5f   : > { %v537_v24 = vmul.f32 %v344_v10, %v344_v10  ;;  %v536_v25 = vmul.f32 %v343_v11, %v343_v11 }
  0x62   : > { %422 = vadd.xlane.f32.xlu1 %v421_v14  ;;  %419 = vadd.xlane.f32.xlu0 %v418_v15  ;;  %v451_v14 = vsel %vm363_vm0, %v344_v10, 0.0  ;;  %v448_v15 = vsel %vm363_vm0, %v343_v11, 0.0  ;;  %v353_v10 = vld [vmem:[%s5096_s13 + $0x130] sm:$0xff] }
  0x66   : > { %608 = vadd.xlane.f32.xlu1 %v607_v22  ;;  %605 = vadd.xlane.f32.xlu0 %v604_v23  ;;  %v457_v22 = vsel %vm363_vm0, %v346_v18, 0.0  ;;  %v454_v23 = vsel %vm363_vm0, %v345_v19, 0.0 }
  0x6a   : > { %614 = vadd.xlane.f32.xlu1 %v613_v26  ;;  %611 = vadd.xlane.f32.xlu0 %v610_v27  ;;  %v643_v26 = vsel %vm363_vm0, %v537_v24, 0.0  ;;  %v640_v27 = vsel %vm363_vm0, %v536_v25, 0.0  ;;  %v478_v24 = vsel %vm363_vm0, %v353_v10, 0.0 }
  0x6e   : > { %428 = vadd.xlane.f32.xlu1 %v427_v30  ;;  %425 = vadd.xlane.f32.xlu0 %v424_v31  ;;  %v539_v30 = vmul.f32 %v346_v18, %v346_v18  ;;  %v538_v31 = vmul.f32 %v345_v19, %v345_v19  ;;  %v545_v18 = vmul.f32 %v352_v61, %v352_v61 }
  0x72   : > { %434 = vadd.xlane.f32.xlu1 %v433_v38  ;;  %431 = vadd.xlane.f32.xlu0 %v430_v39  ;;  %v649_v38 = vsel %vm363_vm0, %v539_v30, 0.0  ;;  %v646_v39 = vsel %vm363_vm0, %v538_v31, 0.0 }
  0x76   : > { %620 = vadd.xlane.f32.xlu1 %v619_v42  ;;  %617 = vadd.xlane.f32.xlu0 %v616_v43  ;;  %v463_v42 = vsel %vm363_vm0, %v348_v40, 0.0  ;;  %v460_v43 = vsel %vm363_vm0, %v347_v41, 0.0 }
  0x7a   : > { %626 = vadd.xlane.f32.xlu1 %v625_v46  ;;  %623 = vadd.xlane.f32.xlu0 %v622_v47  ;;  %v469_v46 = vsel %vm363_vm0, %v350_v44, 0.0  ;;  %v466_v47 = vsel %vm363_vm0, %v349_v45, 0.0 }
  0x7e   : > { %440 = vadd.xlane.f32.xlu1 %v439_v50  ;;  %437 = vadd.xlane.f32.xlu0 %v436_v53  ;;  %v655_v50 = vsel %vm363_vm0, %v541_v48, 0.0  ;;  %v652_v53 = vsel %vm363_vm0, %v540_v49, 0.0 }
  0x82   : > { %446 = vadd.xlane.f32.xlu1 %v445_v58  ;;  %443 = vadd.xlane.f32.xlu0 %v442_v59  ;;  %v542_v58 = vmul.f32 %v349_v45, %v349_v45  ;;  %v661_v59 = vsel %vm363_vm0, %v543_v55, 0.0 }
  0x84   : > { %v658_v60 = vsel %vm363_vm0, %v542_v58, 0.0  ;;  %v356_v58 = vld [vmem:[%s5096_s13 + $0x148] sm:$0xff] }
  0x86   : > { %632 = vadd.xlane.f32.xlu1 %v631_v62  ;;  %629 = vadd.xlane.f32.xlu0 %v628_v63  ;;  %v351_v62 = vld [vmem:[%s5096_s13 + $0x120] sm:$0xff] }
  0x87   : > { %v544_v19 = vmul.f32 %v351_v62, %v351_v62 }
  0x89   : > { %v664_v40 = vsel %vm363_vm0, %v544_v19, 0.0  ;;  %v357_v19 = vld [vmem:[%s5096_s13 + $0x150] sm:$0xff] }
  0x8a   : > { %638 = vadd.xlane.f32.xlu1 %v637_v6  ;;  %635 = vadd.xlane.f32.xlu0 %v634_v7  ;;  %v472_v6 = vsel %vm363_vm0, %v351_v62, 0.0  ;;  %v354_v7 = vld [vmem:[%s5096_s13 + $0x138] sm:$0xff] }
  0x8b   : > { %v547_v25 = vmul.f32 %v354_v7, %v354_v7 }
  0x8e   : > { %452 = vadd.xlane.f32.xlu1 %v451_v14  ;;  %449 = vadd.xlane.f32.xlu0 %v448_v15  ;;  %v481_v15 = vsel %vm363_vm0, %v354_v7, 0.0 }
  0x92   : > { %458 = vadd.xlane.f32.xlu1 %v457_v22  ;;  %455 = vadd.xlane.f32.xlu0 %v454_v23 }
  0x96   : > { %644 = vadd.xlane.f32.xlu1 %v643_v26  ;;  %641 = vadd.xlane.f32.xlu0 %v640_v27  ;;  %v546_v26 = vmul.f32 %v353_v10, %v353_v10  ;;  %v487_v10 = vsel %vm363_vm0, %v356_v58, 0.0 }
  0x98   : > { %v670_v55 = vsel %vm363_vm0, %v546_v26, 0.0 }
  0x9a   : > { %650 = vadd.xlane.f32.xlu1 %v649_v38  ;;  %647 = vadd.xlane.f32.xlu0 %v646_v39  ;;  %v667_v39 = vsel %vm363_vm0, %v545_v18, 0.0  ;;  %v358_v18 = vld [vmem:[%s5096_s13 + $0x158] sm:$0xff] }
  0x9e   : > { %464 = vadd.xlane.f32.xlu1 %v463_v42  ;;  %461 = vadd.xlane.f32.xlu0 %v460_v43 }
  0xa2   : > { %470 = vadd.xlane.f32.xlu1 %v469_v46  ;;  %467 = vadd.xlane.f32.xlu0 %v466_v47 }
  0xa6   : > { %656 = vadd.xlane.f32.xlu1 %v655_v50  ;;  %653 = vadd.xlane.f32.xlu0 %v652_v53  ;;  %v673_v53 = vsel %vm363_vm0, %v547_v25, 0.0 }
  0xaa   : > { %662 = vadd.xlane.f32.xlu1 %v661_v59  ;;  %659 = vadd.xlane.f32.xlu0 %v658_v60 }
  0xab   : > { %v372_v63 = vpop.xlane.xlu1 %371  ;;  %v366_v3 = vpop.xlane.xlu0 %365 }
  0xac   : > { %v5350_v22 = vmul.f32 0.015625, %v366_v3  ;;  %v5355_v27 = vmul.f32 0.015625, %v372_v63  ;;  %v355_v63 = vld [vmem:[%s5096_s13 + $0x140] sm:$0xff] }
  0xad   : > { %v548_v25 = vmul.f32 %v355_v63, %v355_v63 }
  0xae   : > { %476 = vadd.xlane.f32.xlu1 %v475_v4  ;;  %473 = vadd.xlane.f32.xlu0 %v472_v6  ;;  %v796_v41 = vmul.f32 %v5350_v22, %v5350_v22  ;;  %v798_v47 = vmul.f32 %v5355_v27, %v5355_v27 }
  0xaf   : > { %v375_v11 = vpop.xlane.xlu1 %374  ;;  %v369_v14 = vpop.xlane.xlu0 %368 }
  0xb0   : > { %v5352_v23 = vmul.f32 0.015625, %v369_v14  ;;  %v5357_v30 = vmul.f32 0.015625, %v375_v11 }
  0xb2   : > { %482 = vadd.xlane.f32.xlu1 %v481_v15  ;;  %479 = vadd.xlane.f32.xlu0 %v478_v24  ;;  %v797_v42 = vmul.f32 %v5352_v23, %v5352_v23  ;;  %v799_v48 = vmul.f32 %v5357_v30, %v5357_v30  ;;  %v484_v15 = vsel %vm363_vm0, %v355_v63, 0.0  ;;  %v549_v24 = vmul.f32 %v356_v58, %v356_v58 }
  0xb3   : > { %v561_v31 = vpop.xlane.xlu1 %560  ;;  %v558_v38 = vpop.xlane.xlu0 %557 }
  0xb4   : > { %v749_v43 = vmul.f32 0.015625, %v561_v31  ;;  %v748_v44 = vmul.f32 0.015625, %v558_v38  ;;  %v493_v38 = vsel %vm363_vm0, %v358_v18, 0.0 }
  0xb6   : > { %v845_v45 = vsub.f32 %v749_v43, %v797_v42  ;;  %v844_v46 = vsub.f32 %v748_v44, %v796_v41  ;;  %668 = vadd.xlane.f32.xlu1 %v667_v39  ;;  %665 = vadd.xlane.f32.xlu0 %v664_v40  ;;  %v490_v41 = vsel %vm363_vm0, %v357_v19, 0.0  ;;  %v551_v42 = vmul.f32 %v358_v18, %v358_v18 }
  0xb7   : > { %v567_v49 = vpop.xlane.xlu1 %566  ;;  %v564_v50 = vpop.xlane.xlu0 %563  ;;  %v679_v43 = vsel %vm363_vm0, %v549_v24, 0.0  ;;  %v676_v44 = vsel %vm363_vm0, %v548_v25, 0.0 }
  0xb8   : > { %v941_v59 = vadd.f32 1e-05, %v845_v45  ;;  %v940_v60 = vadd.f32 1e-05, %v844_v46  ;;  %v751_v61 = vmul.f32 0.015625, %v567_v49  ;;  %v750_v62 = vmul.f32 0.015625, %v564_v50 }
  0xb9   : > { %v550_v45 = vmul.f32 %v357_v19, %v357_v19  ;;  %v892_v46 = vsub.f32 %v5102_v1, %v5350_v22 }
  0xba   : > { %4483 = vrsqrt.f32 %v941_v59  ;;  %v847_v3 = vsub.f32 %v751_v61, %v799_v48  ;;  %v846_v4 = vsub.f32 %v750_v62, %v798_v47  ;;  %674 = vadd.xlane.f32.xlu1 %v673_v53  ;;  %671 = vadd.xlane.f32.xlu0 %v670_v55  ;;  %v893_v47 = vsub.f32 %v5112_v5, %v5352_v23 }
  0xbb   : > { %4485 = vrsqrt.f32 %v940_v60  ;;  %v381_v6 = vpop.xlane.xlu1 %380  ;;  %v378_v7 = vpop.xlane.xlu0 %377  ;;  %v685_v5 = vsel %vm363_vm0, %v551_v42, 0.0 }
  0xbc   : > { %v943_v11 = vadd.f32 1e-05, %v847_v3  ;;  %v942_v14 = vadd.f32 1e-05, %v846_v4  ;;  %v5378_v39 = vmul.f32 0.015625, %v381_v6  ;;  %v5380_v40 = vmul.f32 0.015625, %v378_v7 }
  0xbd   : > { %v682_v3 = vsel %vm363_vm0, %v550_v45, 0.0  ;;  %v894_v4 = vsub.f32 %v5099_v0, %v5355_v27  ;;  %v895_v6 = vsub.f32 %v5105_v2, %v5357_v30  ;;  %v359_v2 = vld [vmem:[%s5096_s13 + $0x160] sm:$0xff] }
  0xbe   : > { %4487 = vrsqrt.f32 %v943_v11  ;;  %488 = vadd.xlane.f32.xlu1 %v487_v10  ;;  %485 = vadd.xlane.f32.xlu0 %v484_v15  ;;  %v801_v58 = vmul.f32 %v5378_v39, %v5378_v39  ;;  %v800_v59 = vmul.f32 %v5380_v40, %v5380_v40  ;;  %v360_v15 = vld [vmem:[%s5096_s13 + $0x168] sm:$0xff] }
  0xbf   : > { %4489 = vrsqrt.f32 %v942_v14  ;;  %v387_v26 = vpop.xlane.xlu1 %386  ;;  %v384_v31 = vpop.xlane.xlu0 %383 }
  0xc0   : > { %v5389_v48 = vmul.f32 0.015625, %v387_v26  ;;  %v5391_v49 = vmul.f32 0.015625, %v384_v31 }
  0xc2   : > { %494 = vadd.xlane.f32.xlu1 %v493_v38  ;;  %491 = vadd.xlane.f32.xlu0 %v490_v41  ;;  %v803_v7 = vmul.f32 %v5389_v48, %v5389_v48  ;;  %v802_v10 = vmul.f32 %v5391_v49, %v5391_v49 }
  0xc3   : > { %v573_v50 = vpop.xlane.xlu1 %572  ;;  %v570_v53 = vpop.xlane.xlu0 %569 }
  0xc4   : > { %v4484_v55 = vpop.eup %4483  ;;  %v753_v60 = vmul.f32 0.015625, %v573_v50  ;;  %v752_v61 = vmul.f32 0.015625, %v570_v53  ;;  %v362_v50 = vld [vmem:[%s5096_s13 + $0x178] sm:$0xff] }
  0xc5   : > { %v4486_v1 = vpop.eup %4485  ;;  %v1037_v22 = vmul.f32 %v4484_v55, %v893_v47  ;;  %v496_v47 = vsel %vm363_vm0, %v359_v2, 0.0  ;;  %v361_v55 = vld [vmem:[%s5096_s13 + $0x170] sm:$0xff] }
  0xc6   : > { %v849_v23 = vsub.f32 %v753_v60, %v801_v58  ;;  %v848_v62 = vsub.f32 %v752_v61, %v800_v59  ;;  %680 = vadd.xlane.f32.xlu1 %v679_v43  ;;  %v1036_v63 = vmul.f32 %v4486_v1, %v892_v46  ;;  %677 = vadd.xlane.f32.xlu0 %v676_v44  ;;  %v499_v44 = vsel %vm363_vm0, %v360_v15, 0.0 }
  0xc7   : > { %v579_v11 = vpop.xlane.xlu1 %578  ;;  %v576_v14 = vpop.xlane.xlu0 %575  ;;  %v505_v1 = vsel %vm363_vm0, %v362_v50, 0.0 }
  0xc8   : > { %v4488_v18 = vpop.eup %4487  ;;  %v945_v19 = vadd.f32 1e-05, %v849_v23  ;;  %v944_v24 = vadd.f32 1e-05, %v848_v62  ;;  %v755_v25 = vmul.f32 0.015625, %v579_v11  ;;  %v754_v26 = vmul.f32 0.015625, %v576_v14 }
  0xc9   : > { %v4490_v0 = vpop.eup %4489  ;;  %v1084_v27 = vpack.c.bf16 %v1037_v22, %v1036_v63  ;;  %v1039_v31 = vmul.f32 %v4488_v18, %v895_v6  ;;  %v553_v22 = vmul.f32 %v360_v15, %v360_v15  ;;  %v552_v23 = vmul.f32 %v359_v2, %v359_v2 }
  0xca   : > { %4491 = vrsqrt.f32 %v945_v19  ;;  %v851_v30 = vsub.f32 %v755_v25, %v803_v7  ;;  %v850_v38 = vsub.f32 %v754_v26, %v802_v10  ;;  %686 = vadd.xlane.f32.xlu1 %v685_v5  ;;  %v1038_v41 = vmul.f32 %v4490_v0, %v894_v4  ;;  %683 = vadd.xlane.f32.xlu0 %v682_v3 }
  0xcb   : > { %4493 = vrsqrt.f32 %v944_v24  ;;  %4202 = vmatprep.mubr.msk.bf16.mxu0 %vm363_vm0, %v1084_v27  ;;  %v393_v42 = vpop.xlane.xlu1 %392  ;;  %v390_v43 = vpop.xlane.xlu0 %389  ;;  %v502_v5 = vsel %vm363_vm0, %v361_v55, 0.0  ;;  %v897_v6 = vsub.f32 %v5131_v16, %v5378_v39  ;;  %v691_v11 = vsel %vm363_vm0, %v553_v22, 0.0 }
  0xcc   : > { %v947_v45 = vadd.f32 1e-05, %v851_v30  ;;  %v946_v46 = vadd.f32 1e-05, %v850_v38  ;;  %v1085_v53 = vpack.c.bf16 %v1039_v31, %v1038_v41  ;;  %v5414_v58 = vmul.f32 0.015625, %v393_v42 }
  0xcd   : > { %v5416_v59 = vmul.f32 0.015625, %v390_v43  ;;  %v555_v14 = vmul.f32 %v362_v50, %v362_v50  ;;  %v554_v15 = vmul.f32 %v361_v55, %v361_v55  ;;  %v896_v19 = vsub.f32 %v5134_v17, %v5380_v40 }
  0xce   : > { %4495 = vrsqrt.f32 %v947_v45  ;;  %500 = vadd.xlane.f32.xlu1 %v499_v44  ;;  %4203 = vmatmul.mubr.msk.bf16.vlgmr.msra.gmra.mrb[0].mxu0 %vm363_vm0, %v1085_v53  ;;  %v805_v63 = vmul.f32 %v5414_v58, %v5414_v58  ;;  %v688_v26 = vsel %vm363_vm0, %v552_v23, 0.0  ;;  %v899_v38 = vsub.f32 %v5141_v20, %v5389_v48 }
  0xcf   : > { %4497 = vrsqrt.f32 %v946_v46  ;;  %497 = vadd.xlane.f32.xlu0 %v496_v47  ;;  %v399_v60 = vpop.xlane.xlu1 %398  ;;  %v396_v61 = vpop.xlane.xlu0 %395  ;;  %v804_v3 = vmul.f32 %v5416_v59, %v5416_v59  ;;  %v898_v17 = vsub.f32 %v5144_v21, %v5391_v49  ;;  %v697_v42 = vsel %vm363_vm0, %v555_v14, 0.0 }
  0xd0   : > { %v5421_v62 = vmul.f32 0.015625, %v399_v60  ;;  %v5427_v4 = vmul.f32 0.015625, %v396_v61  ;;  %v694_v43 = vsel %vm363_vm0, %v554_v15, 0.0  ;;  %v901_v15 = vsub.f32 %v5163_v32, %v5414_v58 }
  0xd2   : > { %506 = vadd.xlane.f32.xlu1 %v505_v1  ;;  %v807_v27 = vmul.f32 %v5421_v62, %v5421_v62  ;;  %v806_v39 = vmul.f32 %v5427_v4, %v5427_v4 }
  0xd3   : > { %503 = vadd.xlane.f32.xlu0 %v502_v5  ;;  %v585_v7 = vpop.xlane.xlu1 %584  ;;  %v582_v10 = vpop.xlane.xlu0 %581 }
  0xd4   : > { %v4492_v18 = vpop.eup %4491  ;;  %v757_v24 = vmul.f32 0.015625, %v585_v7  ;;  %v756_v25 = vmul.f32 0.015625, %v582_v10 }
  0xd5   : > { %v4494_v0 = vpop.eup %4493  ;;  %v1041_v16 = vmul.f32 %v4492_v18, %v897_v6 }
  0xd6   : > { %v853_v31 = vsub.f32 %v757_v24, %v805_v63  ;;  %v852_v2 = vsub.f32 %v756_v25, %v804_v3  ;;  %692 = vadd.xlane.f32.xlu1 %v691_v11  ;;  %v1040_v30 = vmul.f32 %v4494_v0, %v896_v19  ;;  %v4475_v24 = vld [vmem:[%s7509_s4] sm:$0xff]  }
  0xd7   : > { %689 = vadd.xlane.f32.xlu0 %v688_v26  ;;  %v591_v40 = vpop.xlane.xlu1 %590  ;;  %v588_v41 = vpop.xlane.xlu0 %587  ;;  %v900_v26 = vsub.f32 %v5166_v33, %v5416_v59  ;;  %4250 = vmatprep.subr.bf16.mxu0 %v4475_v24  ;;  %v903_v33 = vsub.f32 %v5173_v36, %v5421_v62  ;;  %v902_v59 = vsub.f32 %v5176_v37, %v5427_v4 }
  0xd8   : > { %v4496_v44 = vpop.eup %4495  ;;  %v949_v45 = vadd.f32 1e-05, %v853_v31  ;;  %v948_v46 = vadd.f32 1e-05, %v852_v2  ;;  %v759_v47 = vmul.f32 0.015625, %v591_v40  ;;  %v758_v50 = vmul.f32 0.015625, %v588_v41  ;;  %4314 = vmatprep.subr.bf16.mxu1 %v4475_v24  ;;  %4251 = vmatpush3.bf16.msra.mxu0 %v4475_v24 }
  0xd9   : > { %v4498_v53 = vpop.eup %4497  ;;  %v1086_v55 = vpack.c.bf16 %v1041_v16, %v1040_v30  ;;  %v1043_v60 = vmul.f32 %v4496_v44, %v899_v38  ;;  %4322 = vmatpush3.bf16.msra.mxu1 %v4475_v24 }
  0xda   : > { %4499 = vrsqrt.f32 %v949_v45  ;;  %v855_v20 = vsub.f32 %v759_v47, %v807_v27  ;;  %v854_v48 = vsub.f32 %v758_v50, %v806_v39  ;;  %698 = vadd.xlane.f32.xlu1 %v697_v42  ;;  %v1042_v21 = vmul.f32 %v4498_v53, %v898_v17 }
  0xdb   : > { %4501 = vrsqrt.f32 %v948_v46  ;;  %4206 = vmatprep.mubr.msk.bf16.mxu0 %vm363_vm0, %v1086_v55  ;;  %695 = vadd.xlane.f32.xlu0 %v694_v43  ;;  %v405_v49 = vpop.xlane.xlu1 %404  ;;  %v402_v61 = vpop.xlane.xlu0 %401 }
  0xdc   : > { %v951_v1 = vadd.f32 1e-05, %v855_v20  ;;  %v950_v22 = vadd.f32 1e-05, %v854_v48  ;;  %v1087_v5 = vpack.c.bf16 %v1043_v60, %v1042_v21  ;;  %v5446_v23 = vmul.f32 0.015625, %v405_v49 }
  0xdd   : > { %v5448_v63 = vmul.f32 0.015625, %v402_v61  ;;  %v4476_v61 = vld [vmem:[%s7509_s4 + $0x8] sm:$0xff]  }
  0xde   : > { %4503 = vrsqrt.f32 %v951_v1  ;;  %4207 = vmatmul.mubr.msk.bf16.gmra.mrb[4].mxu0 %vm363_vm0, %v1087_v5  ;;  %v809_v11 = vmul.f32 %v5446_v23, %v5446_v23  ;;  %v4477_v1 = vld [vmem:[%s7509_s4 + $0x10] sm:$0xff]   ;;  %4252 = vmatprep.subr.bf16.mxu0 %v4476_v61 }
  0xdf   : > { %4505 = vrsqrt.f32 %v950_v22  ;;  %v411_v3 = vpop.xlane.xlu1 %410  ;;  %v408_v6 = vpop.xlane.xlu0 %407  ;;  %v808_v14 = vmul.f32 %v5448_v63, %v5448_v63  ;;  %4315 = vmatprep.subr.bf16.mxu1 %v4476_v61  ;;  %4253 = vmatpush3.bf16.msra.mxu0 %v4476_v61 }
  0xe0   : > { %v5451_v7 = vmul.f32 0.015625, %v411_v3  ;;  %v5453_v10 = vmul.f32 0.015625, %v408_v6  ;;  %4254 = vmatprep.subr.bf16.mxu0 %v4477_v1  ;;  %4323 = vmatpush3.bf16.msra.mxu1 %v4476_v61 }
  0xe1   : > { %4316 = vmatprep.subr.bf16.mxu1 %v4477_v1 }
  0xe2   : > { %v811_v39 = vmul.f32 %v5451_v7, %v5451_v7  ;;  %v810_v31 = vmul.f32 %v5453_v10, %v5453_v10 }
  0xe3   : > { %v597_v18 = vpop.xlane.xlu1 %596  ;;  %v594_v19 = vpop.xlane.xlu0 %593  ;;  %4255 = vmatpush3.bf16.msra.mxu0 %v4477_v1 }
  0xe4   : > { %v4500_v25 = vpop.eup %4499  ;;  %v761_v0 = vmul.f32 0.015625, %v597_v18  ;;  %v760_v27 = vmul.f32 0.015625, %v594_v19  ;;  %v904_v19 = vsub.f32 %v5207_v52, %v5448_v63  ;;  %v906_v52 = vsub.f32 %v5220_v57, %v5453_v10  ;;  %4324 = vmatpush3.bf16.msra.mxu1 %v4477_v1 }
  0xe5   : > { %v4502_v16 = vpop.eup %4501  ;;  %v1045_v32 = vmul.f32 %v4500_v25, %v901_v15 }
  0xe6   : > { %v857_v58 = vsub.f32 %v761_v0, %v809_v11  ;;  %v856_v2 = vsub.f32 %v760_v27, %v808_v14  ;;  %v1044_v30 = vmul.f32 %v4502_v16, %v900_v26  ;;  %v905_v11 = vsub.f32 %v5204_v51, %v5446_v23 }
  0xe7   : > { %v603_v38 = vpop.xlane.xlu1 %602  ;;  %v600_v17 = vpop.xlane.xlu0 %599 }
  0xe8   : > { %v4504_v40 = vpop.eup %4503  ;;  %v953_v41 = vadd.f32 1e-05, %v857_v58  ;;  %v952_v42 = vadd.f32 1e-05, %v856_v2  ;;  %v763_v43 = vmul.f32 0.015625, %v603_v38  ;;  %v762_v44 = vmul.f32 0.015625, %v600_v17 }
  0xe9   : > { %v4506_v45 = vpop.eup %4505  ;;  %v1088_v46 = vpack.c.bf16 %v1045_v32, %v1044_v30  ;;  %v1047_v47 = vmul.f32 %v4504_v40, %v903_v33 }
  0xea   : > { %4507 = vrsqrt.f32 %v953_v41  ;;  %v859_v50 = vsub.f32 %v763_v43, %v811_v39  ;;  %v858_v53 = vsub.f32 %v762_v44, %v810_v31  ;;  %v1046_v55 = vmul.f32 %v4506_v45, %v902_v59 }
  0xeb   : > { %4509 = vrsqrt.f32 %v952_v42  ;;  %4210 = vmatprep.mubr.msk.bf16.mxu0 %vm363_vm0, %v1088_v46  ;;  %v417_v36 = vpop.xlane.xlu1 %416  ;;  %v414_v62 = vpop.xlane.xlu0 %413  ;;  %v907_v31 = vsub.f32 %v5217_v56, %v5451_v7 }
  0xec   : > { %v955_v37 = vadd.f32 1e-05, %v859_v50  ;;  %v954_v4 = vadd.f32 1e-05, %v858_v53  ;;  %v1089_v60 = vpack.c.bf16 %v1047_v47, %v1046_v55  ;;  %v5475_v20 = vmul.f32 0.015625, %v417_v36  ;;  %v4478_v47 = vld [vmem:[%s7509_s4 + $0x18] sm:$0xff]  }
  0xed   : > { %v5477_v48 = vmul.f32 0.015625, %v414_v62  ;;  %v4479_v50 = vld [vmem:[%s7509_s4 + $0x20] sm:$0xff]   ;;  %4256 = vmatprep.subr.bf16.mxu0 %v4478_v47  ;;  %4317 = vmatprep.subr.bf16.mxu1 %v4478_v47 }
  0xee   : > { %4511 = vrsqrt.f32 %v955_v37  ;;  %4211 = vmatmul.mubr.msk.bf16.gmra.mrb[8].mxu0 %vm363_vm0, %v1089_v60  ;;  %v813_v5 = vmul.f32 %v5475_v20, %v5475_v20  ;;  %v909_v36 = vsub.f32 %v5239_v8, %v5475_v20  ;;  %4325 = vmatpush3.bf16.msra.mxu1 %v4478_v47  ;;  %v4480_v8 = vld [vmem:[%s7509_s4 + $0x28] sm:$0xff]  }
  0xef   : > { %4513 = vrsqrt.f32 %v954_v4  ;;  %v423_v21 = vpop.xlane.xlu1 %422  ;;  %v420_v49 = vpop.xlane.xlu0 %419  ;;  %v812_v3 = vmul.f32 %v5477_v48, %v5477_v48  ;;  %4257 = vmatpush3.bf16.msra.mxu0 %v4478_v47  ;;  %v908_v4 = vsub.f32 %v5242_v9, %v5477_v48  ;;  %4318 = vmatprep.subr.bf16.mxu1 %v4479_v50 }
  0xf0   : > { %v5486_v22 = vmul.f32 0.015625, %v423_v21  ;;  %v5492_v6 = vmul.f32 0.015625, %v420_v49  ;;  %4258 = vmatprep.subr.bf16.mxu0 %v4479_v50 }
  0xf2   : > { %v815_v0 = vmul.f32 %v5486_v22, %v5486_v22  ;;  %v814_v16 = vmul.f32 %v5492_v6, %v5492_v6  ;;  %v911_v1 = vsub.f32 %v5249_v12, %v5486_v22  ;;  %v910_v9 = vsub.f32 %v5252_v13, %v5492_v6  ;;  %4326 = vmatpush3.bf16.msra.mxu1 %v4479_v50 }
  0xf3   : > { %v609_v14 = vpop.xlane.xlu1 %608  ;;  %v606_v15 = vpop.xlane.xlu0 %605  ;;  %4259 = vmatpush3.bf16.msra.mxu0 %v4479_v50  ;;  %4319 = vmatprep.subr.bf16.mxu1 %v4480_v8 }
  0xf4   : > { %v4508_v18 = vpop.eup %4507  ;;  %v765_v24 = vmul.f32 0.015625, %v609_v14  ;;  %v764_v25 = vmul.f32 0.015625, %v606_v15  ;;  %4260 = vmatprep.subr.bf16.mxu0 %v4480_v8 }
  0xf5   : > { %v4510_v26 = vpop.eup %4509  ;;  %v1049_v27 = vmul.f32 %v4508_v18, %v905_v11 }
  0xf6   : > { %v861_v51 = vsub.f32 %v765_v24, %v813_v5  ;;  %v860_v23 = vsub.f32 %v764_v25, %v812_v3  ;;  %v1048_v39 = vmul.f32 %v4510_v26, %v904_v19  ;;  %4327 = vmatpush3.bf16.msra.mxu1 %v4480_v8 }
  0xf7   : > { %v615_v63 = vpop.xlane.xlu1 %614  ;;  %v612_v32 = vpop.xlane.xlu0 %611  ;;  %4261 = vmatpush3.bf16.msra.mxu0 %v4480_v8 }
  0xf8   : > { %v4512_v58 = vpop.eup %4511  ;;  %v957_v2 = vadd.f32 1e-05, %v861_v51  ;;  %v956_v30 = vadd.f32 1e-05, %v860_v23  ;;  %v767_v33 = vmul.f32 0.015625, %v615_v63  ;;  %v766_v59 = vmul.f32 0.015625, %v612_v32 }
  0xf9   : > { %v4514_v38 = vpop.eup %4513  ;;  %v1090_v17 = vpack.c.bf16 %v1049_v27, %v1048_v39  ;;  %v1051_v40 = vmul.f32 %v4512_v58, %v907_v31 }
  0xfa   : > { %4515 = vrsqrt.f32 %v957_v2  ;;  %v863_v41 = vsub.f32 %v767_v33, %v815_v0  ;;  %v862_v42 = vsub.f32 %v766_v59, %v814_v16  ;;  %v1050_v43 = vmul.f32 %v4514_v38, %v906_v52 }
  0xfb   : > { %4517 = vrsqrt.f32 %v956_v30  ;;  %4214 = vmatprep.mubr.msk.bf16.mxu0 %vm363_vm0, %v1090_v17  ;;  %v429_v56 = vpop.xlane.xlu1 %428  ;;  %v426_v57 = vpop.xlane.xlu0 %425 }
  0xfc   : > { %v959_v7 = vadd.f32 1e-05, %v863_v41  ;;  %v958_v10 = vadd.f32 1e-05, %v862_v42  ;;  %v1091_v44 = vpack.c.bf16 %v1051_v40, %v1050_v43  ;;  %v5507_v45 = vmul.f32 0.015625, %v429_v56 }
  0xfd   : > { %v5509_v46 = vmul.f32 0.015625, %v426_v57 }
  0xfe   : > { %4519 = vrsqrt.f32 %v959_v7  ;;  %4215 = vmatmul.mubr.msk.bf16.gmra.mrb[12].mxu0 %vm363_vm0, %v1091_v44  ;;  %v817_v60 = vmul.f32 %v5507_v45, %v5507_v45  ;;  %v913_v17 = vsub.f32 %v5271_v28, %v5507_v45 }
  0xff   : > { %4521 = vrsqrt.f32 %v958_v10  ;;  %v435_v53 = vpop.xlane.xlu1 %434  ;;  %v432_v55 = vpop.xlane.xlu0 %431  ;;  %v816_v21 = vmul.f32 %v5509_v46, %v5509_v46  ;;  %v912_v41 = vsub.f32 %v5274_v29, %v5509_v46 }
 0x100   : > { %v5520_v62 = vmul.f32 0.015625, %v435_v53  ;;  %v5522_v37 = vmul.f32 0.015625, %v432_v55 }
 0x102   : > { %v819_v11 = vmul.f32 %v5520_v62, %v5520_v62  ;;  %v818_v14 = vmul.f32 %v5522_v37, %v5522_v37  ;;  %v915_v45 = vsub.f32 %v5281_v34, %v5520_v62  ;;  %v914_v29 = vsub.f32 %v5284_v35, %v5522_v37 }
 0x103   : > { %v621_v20 = vpop.xlane.xlu1 %620  ;;  %v618_v49 = vpop.xlane.xlu0 %617 }
 0x104   : > { %v4516_v61 = vpop.eup %4515  ;;  %v769_v48 = vmul.f32 0.015625, %v621_v20  ;;  %v768_v5 = vmul.f32 0.015625, %v618_v49 }
 0x105   : > { %v4518_v3 = vpop.eup %4517  ;;  %v1053_v15 = vmul.f32 %v4516_v61, %v909_v36 }
 0x106   : > { %v865_v18 = vsub.f32 %v769_v48, %v817_v60  ;;  %v864_v19 = vsub.f32 %v768_v5, %v816_v21  ;;  %v1052_v24 = vmul.f32 %v4518_v3, %v908_v4 }
 0x107   : > { %v627_v12 = vpop.xlane.xlu1 %626  ;;  %v624_v22 = vpop.xlane.xlu0 %623 }
 0x108   : > { %v4520_v13 = vpop.eup %4519  ;;  %v961_v6 = vadd.f32 1e-05, %v865_v18  ;;  %v960_v25 = vadd.f32 1e-05, %v864_v19  ;;  %v771_v26 = vmul.f32 0.015625, %v627_v12  ;;  %v770_v0 = vmul.f32 0.015625, %v624_v22 }
 0x109   : > { %v4522_v27 = vpop.eup %4521  ;;  %v1092_v16 = vpack.c.bf16 %v1053_v15, %v1052_v24  ;;  %v1055_v51 = vmul.f32 %v4520_v13, %v911_v1  ;;  %v5575_v1 = vld [vmem:[%s5570_s11 + $0x8] sm:$0xff]  ;;  %v2345_v12 = vld [vmem:[%s5570_s11 + $0x10] sm:$0xff] }
 0x10a   : > { %4523 = vrsqrt.f32 %v961_v6  ;;  %v867_v23 = vsub.f32 %v771_v26, %v819_v11  ;;  %v866_v39 = vsub.f32 %v770_v0, %v818_v14  ;;  %v1054_v31 = vmul.f32 %v4522_v27, %v910_v9 }
 0x10b   : > { %4525 = vrsqrt.f32 %v960_v25  ;;  %4218 = vmatprep.mubr.msk.bf16.mxu0 %vm363_vm0, %v1092_v16  ;;  %v441_v52 = vpop.xlane.xlu1 %440  ;;  %v438_v63 = vpop.xlane.xlu0 %437  ;;  %v4035_v14 = vadd.f32 -0.5, %v5575_v1  ;;  %v4036_v0 = vadd.f32 -0.5, %v2345_v12 }
 0x10c   : > { %v963_v32 = vadd.f32 1e-05, %v867_v23  ;;  %v962_v58 = vadd.f32 1e-05, %v866_v39  ;;  %v1093_v2 = vpack.c.bf16 %v1055_v51, %v1054_v31  ;;  %v5542_v30 = vmul.f32 0.015625, %v441_v52  ;;  %v2346_v51 = vld [vmem:[%s5570_s11 + $0x18] sm:$0xff] }
 0x10d   : > { %v5544_v33 = vmul.f32 0.015625, %v438_v63  ;;  %v4083_v24 = vadd.f32 -0.5, %v4035_v14  ;;  %v4867_v23 = vld [vmem:[%s5096_s13 + $0xc8] sm:$0xff]  ;;  %v4084_v52 = vadd.f32 -0.5, %v4036_v0  ;;  %v4037_v63 = vadd.f32 -0.5, %v2346_v51 }
 0x10e   : > { %4527 = vrsqrt.f32 %v963_v32  ;;  %4219 = vmatmul.mubr.msk.bf16.gmra.mrb[16].mxu0 %vm363_vm0, %v1093_v2  ;;  %v821_v42 = vmul.f32 %v5542_v30, %v5542_v30  ;;  %v917_v39 = vsub.f32 %v4867_v23, %v5542_v30  ;;  %v4868_v32 = vld [vmem:[%s5096_s13 + $0xc0] sm:$0xff] }
 0x10f   : > { %4529 = vrsqrt.f32 %v962_v58  ;;  %v447_v59 = vpop.xlane.xlu1 %446  ;;  %v444_v38 = vpop.xlane.xlu0 %443  ;;  %v820_v43 = vmul.f32 %v5544_v33, %v5544_v33  ;;  %v2536_v26 = vceil.f32 %v4083_v24  ;;  %v916_v58 = vsub.f32 %v4868_v32, %v5544_v33 }
 0x110   : > { %v5549_v40 = vmul.f32 0.015625, %v447_v59  ;;  %v5557_v56 = vmul.f32 0.015625, %v444_v38 }
 0x111   : > { %v2584_v31 = vmax.f32 %v2536_v26, 0.0 }
 0x112   : > { %v823_v46 = vmul.f32 %v5549_v40, %v5549_v40  ;;  %v822_v53 = vmul.f32 %v5557_v56, %v5557_v56  ;;  %v919_v2 = vsub.f32 %v5307_v54, %v5549_v40 }
 0x113   : > { %v633_v57 = vpop.xlane.xlu1 %632  ;;  %v630_v7 = vpop.xlane.xlu0 %629 }
 0x114   : > { %v4524_v10 = vpop.eup %4523  ;;  %v773_v44 = vmul.f32 0.015625, %v633_v57  ;;  %v772_v47 = vmul.f32 0.015625, %v630_v7  ;;  %v2537_v57 = vceil.f32 %v4084_v52  ;;  %v4085_v7 = vadd.f32 -0.5, %v4037_v63  ;;  %v2349_v52 = vld [vmem:[%s5570_s11 + $0x30] sm:$0xff] }
 0x115   : > { %v4526_v28 = vpop.eup %4525  ;;  %v1057_v50 = vmul.f32 %v4524_v10, %v913_v17  ;;  %v4869_v17 = vld [vmem:[%s5096_s13 + $0xd0] sm:$0xff] }
 0x116   : > { %v869_v55 = vsub.f32 %v773_v44, %v821_v42  ;;  %v868_v36 = vsub.f32 %v772_v47, %v820_v43  ;;  %v1056_v34 = vmul.f32 %v4526_v28, %v912_v41  ;;  %v918_v41 = vsub.f32 %v4869_v17, %v5557_v56  ;;  %v2347_v47 = vld [vmem:[%s5570_s11 + $0x20] sm:$0xff]  ;;  %v4870_v17 = vld [vmem:[%s5096_s13 + $0xe8] sm:$0xff] }
 0x117   : > { %v639_v62 = vpop.xlane.xlu1 %638  ;;  %v636_v4 = vpop.xlane.xlu0 %635  ;;  %v2632_v43 = vmin.f32 %v2584_v31, 14.0 }
 0x118   : > { %v4528_v35 = vpop.eup %4527  ;;  %v965_v37 = vadd.f32 1e-05, %v869_v55  ;;  %v964_v60 = vadd.f32 1e-05, %v868_v36  ;;  %v775_v21 = vmul.f32 0.015625, %v639_v62  ;;  %v774_v8 = vmul.f32 0.015625, %v636_v4 }
 0x119   : > { %v4530_v20 = vpop.eup %4529  ;;  %v1094_v49 = vpack.c.bf16 %v1057_v50, %v1056_v34  ;;  %v1059_v61 = vmul.f32 %v4528_v35, %v915_v45  ;;  %v5001_v55 = vmov 0   ;;  %v2538_v36 = vceil.f32 %v4085_v7  ;;  %v4871_v7 = vld [vmem:[%s5096_s13 + $0xe0] sm:$0xff] }
 0x11a   : > { %4531 = vrsqrt.f32 %v965_v37  ;;  %v871_v9 = vsub.f32 %v775_v21, %v823_v46  ;;  %v870_v48 = vsub.f32 %v774_v8, %v822_v53  ;;  %v1058_v5 = vmul.f32 %v4530_v20, %v914_v29  ;;  %4468 = vset.pattern.permute.xlu1 %v5001_v55  ;;  %4467 = vset.pattern.permute.xlu0 %v5001_v55 }
 0x11b   : > { %4533 = vrsqrt.f32 %v964_v60  ;;  %v453_v3 = vpop.xlane.xlu1 %452  ;;  %v450_v11 = vpop.xlane.xlu0 %449  ;;  %4222 = vmatprep.mubr.msk.bf16.mxu0 %vm363_vm0, %v1094_v49  ;;  %v4332_v29 = vtrunc.f32 %v2632_v43  ;;  %v2585_v46 = vmax.f32 %v2537_v57, 0.0  ;;  %v4038_v37 = vadd.f32 -0.5, %v2347_v47  ;;  %v2350_v57 = vld [vmem:[%s5570_s11 + $0x38] sm:$0xff] }
 0x11c   : > { %v967_v15 = vadd.f32 1e-05, %v871_v9  ;;  %v966_v18 = vadd.f32 1e-05, %v870_v48  ;;  %v1095_v19 = vpack.c.bf16 %v1059_v61, %v1058_v5  ;;  %v5580_v22 = vmul.f32 0.015625, %v453_v3 }
 0x11d   : > { %v5582_v13 = vmul.f32 0.015625, %v450_v11  ;;  %v4333_v4 = vcvt.f32.s32 %v4332_v29  ;;  %v2633_v35 = vmin.f32 %v2585_v46, 14.0  ;;  %v2586_v3 = vmax.f32 %v2538_v36, 0.0 }
 0x11e   : > { %4535 = vrsqrt.f32 %v967_v15  ;;  %4223 = vmatmul.mubr.msk.bf16.gmra.mrb[20].mxu0 %vm363_vm0, %v1095_v19  ;;  %v825_v59 = vmul.f32 %v5580_v22, %v5580_v22  ;;  %v4040_v43 = vadd.f32 -0.5, %v2349_v52  ;;  %v4041_v47 = vadd.f32 -0.5, %v2350_v57 }
 0x11f   : > { %4537 = vrsqrt.f32 %v966_v18  ;;  %v459_v6 = vpop.xlane.xlu1 %458  ;;  %v456_v25 = vpop.xlane.xlu0 %455  ;;  %v824_v38 = vmul.f32 %v5582_v13, %v5582_v13  ;;  %2733 = vperm.xlu1 %4468, %v4333_v4   ;;  %v4334_v5 = vtrunc.f32 %v2633_v35  ;;  %v2348_v18 = vld [vmem:[%s5570_s11 + $0x28] sm:$0xff]  ;;  %v2196_v29 = vlaneseq }
 0x120   : > { %v5585_v27 = vmul.f32 0.015625, %v459_v6  ;;  %v5587_v16 = vmul.f32 0.015625, %v456_v25  ;;  %v2634_v6 = vmin.f32 %v2586_v3, 14.0  ;;  %v4086_v25 = vadd.f32 -0.5, %v4038_v37 }
 0x121   : > { %v4335_v12 = vcvt.f32.s32 %v4334_v5  ;;  %v4039_v31 = vadd.f32 -0.5, %v2348_v18  ;;  %v5638_v4 = vshrl.u32 %v2196_v29, 7  ;;  %v4088_v35 = vadd.f32 -0.5, %v4040_v43 }
 0x122   : > { %v827_v33 = vmul.f32 %v5585_v27, %v5585_v27  ;;  %v826_v54 = vmul.f32 %v5587_v16, %v5587_v16  ;;  %v4336_v23 = vtrunc.f32 %v2634_v6 }
 0x123   : > { %v645_v30 = vpop.xlane.xlu1 %644  ;;  %v642_v42 = vpop.xlane.xlu0 %641  ;;  %2736 = vperm.xlu1 %4468, %v4335_v12   ;;  %v2198_v3 = vadd.s32 8, %v5638_v4 }
 0x124   : > { %v4532_v10 = vpop.eup %4531  ;;  %v777_v40 = vmul.f32 0.015625, %v645_v30  ;;  %v776_v44 = vmul.f32 0.015625, %v642_v42  ;;  %v4087_v42 = vadd.f32 -0.5, %v4039_v31 }
 0x125   : > { %v4534_v28 = vpop.eup %4533  ;;  %v1061_v45 = vmul.f32 %v4532_v10, %v917_v39  ;;  %v2539_v39 = vceil.f32 %v4086_v25  ;;  %v920_v10 = vsub.f32 %v4871_v7, %v5582_v13  ;;  %v4873_v13 = vld [vmem:[%s5096_s13 + $0xf0] sm:$0xff]  ;;  %v4874_v7 = vld [vmem:[%s5096_s13 + $0x108] sm:$0xff] }
 0x126   : > { %v873_v56 = vsub.f32 %v777_v40, %v825_v59  ;;  %v872_v50 = vsub.f32 %v776_v44, %v824_v38  ;;  %v1060_v53 = vmul.f32 %v4534_v28, %v916_v58  ;;  %v4337_v59 = vcvt.f32.s32 %v4336_v23  ;;  %v4481_v40 = vld [vmem:[%s7509_s4 + $0x30] sm:$0xff]   ;;  %v2351_v23 = vld [vmem:[%s5570_s11 + $0x40] sm:$0xff] }
 0x127   : > { %v651_v34 = vpop.xlane.xlu1 %650  ;;  %v648_v62 = vpop.xlane.xlu0 %647  ;;  %v2587_v38 = vmax.f32 %v2539_v39, 0.0  ;;  %v922_v46 = vsub.f32 %v4873_v13, %v5587_v16  ;;  %4262 = vmatprep.subr.bf16.mxu0 %v4481_v40  ;;  %v2540_v55 = vceil.f32 %v4087_v42  ;;  %4320 = vmatprep.subr.bf16.mxu1 %v4481_v40  ;;  %v4042_v57 = vadd.f32 -0.5, %v2351_v23 }
 0x128   : > { %v4536_v60 = vpop.eup %4535  ;;  %v969_v21 = vadd.f32 1e-05, %v873_v56  ;;  %v968_v8 = vadd.f32 1e-05, %v872_v50  ;;  %v779_v20 = vmul.f32 0.015625, %v651_v34  ;;  %v778_v49 = vmul.f32 0.015625, %v648_v62  ;;  %2739 = vperm.xlu1 %4468, %v4337_v59   ;;  %4263 = vmatpush3.bf16.msra.mxu0 %v4481_v40 }
 0x129   : > { %v4538_v61 = vpop.eup %4537  ;;  %v1096_v9 = vpack.c.bf16 %v1061_v45, %v1060_v53  ;;  %v1063_v48 = vmul.f32 %v4536_v60, %v919_v2  ;;  %v2635_v44 = vmin.f32 %v2587_v38, 14.0  ;;  %4328 = vmatpush3.bf16.msra.mxu1 %v4481_v40  ;;  %v4482_v59 = vld [vmem:[%s7509_s4 + $0x38] sm:$0xff]   ;;  %v5653_v40 = vstv %s2245_s12 }
 0x12a   : > { %4539 = vrsqrt.f32 %v969_v21  ;;  %v875_v11 = vsub.f32 %v779_v20, %v827_v33  ;;  %v874_v14 = vsub.f32 %v778_v49, %v826_v54  ;;  %v1062_v15 = vmul.f32 %v4538_v61, %v918_v41  ;;  %v4872_v33 = vld [vmem:[%s5096_s13 + $0xf8] sm:$0xff]  ;;  %4264 = vmatprep.subr.bf16.mxu0 %v4482_v59  ;;  %4321 = vmatprep.subr.bf16.mxu1 %v4482_v59 }
 0x12b   : > { %4541 = vrsqrt.f32 %v968_v8  ;;  %v465_v19 = vpop.xlane.xlu1 %464  ;;  %v462_v24 = vpop.xlane.xlu0 %461  ;;  %4226 = vmatprep.mubr.msk.bf16.mxu0 %vm363_vm0, %v1096_v9  ;;  %v921_v41 = vsub.f32 %v4870_v17, %v5580_v22  ;;  %v923_v54 = vsub.f32 %v4872_v33, %v5585_v27  ;;  %v4338_v53 = vtrunc.f32 %v2635_v44  ;;  %v4875_v33 = vld [vmem:[%s5096_s13 + $0x100] sm:$0xff] }
 0x12c   : > { %v971_v26 = vadd.f32 1e-05, %v875_v11  ;;  %v970_v0 = vadd.f32 1e-05, %v874_v14  ;;  %v1097_v51 = vpack.c.bf16 %v1063_v48, %v1062_v15  ;;  %v5610_v63 = vmul.f32 0.015625, %v465_v19  ;;  %4265 = vmatpush3.bf16.msra.mxu0 %v4482_v59 }
 0x12d   : > { %v5612_v32 = vmul.f32 0.015625, %v462_v24  ;;  %v4339_v60 = vcvt.f32.s32 %v4338_v53  ;;  %v2588_v21 = vmax.f32 %v2540_v55, 0.0  ;;  %v4089_v8 = vadd.f32 -0.5, %v4041_v47  ;;  %v2353_v47 = vld [vmem:[%s5570_s11 + $0x50] sm:$0xff]  ;;  %4329 = vmatpush3.bf16.msra.mxu1 %v4482_v59 }
 0x12e   : > { %4543 = vrsqrt.f32 %v971_v26  ;;  %4227 = vmatmul.mubr.msk.bf16.gmra.mrb[24].mxu0 %vm363_vm0, %v1097_v51  ;;  %v829_v22 = vmul.f32 %v5610_v63, %v5610_v63  ;;  %v2541_v14 = vceil.f32 %v4088_v35  ;;  %v2357_v35 = vld [vmem:[%s5570_s11 + $0x70] sm:$0xff] }
 0x12f   : > { %4545 = vrsqrt.f32 %v970_v0  ;;  %v471_v58 = vpop.xlane.xlu1 %470  ;;  %v468_v2 = vpop.xlane.xlu0 %467  ;;  %v828_v28 = vmul.f32 %v5612_v32, %v5612_v32  ;;  %2742 = vperm.xlu1 %4468, %v4339_v60   ;;  %v2636_v11 = vmin.f32 %v2588_v21, 14.0  ;;  %v2542_v51 = vceil.f32 %v4089_v8 }
 0x130   : > { %v5617_v30 = vmul.f32 0.015625, %v471_v58  ;;  %v5631_v45 = vmul.f32 0.015625, %v468_v2  ;;  %v2589_v38 = vmax.f32 %v2541_v14, 0.0 }
 0x131   : > { %v4340_v0 = vtrunc.f32 %v2636_v11  ;;  %v2590_v13 = vmax.f32 %v2542_v51, 0.0 }
 0x132   : > { %v831_v27 = vmul.f32 %v5617_v30, %v5617_v30  ;;  %v830_v20 = vmul.f32 %v5631_v45, %v5631_v45  ;;  %v2637_v44 = vmin.f32 %v2589_v38, 14.0 }
 0x133   : > { %v657_v56 = vpop.xlane.xlu1 %656  ;;  %v654_v50 = vpop.xlane.xlu0 %653  ;;  %v4341_v2 = vcvt.f32.s32 %v4340_v0 }
 0x134   : > { %v4540_v36 = vpop.eup %4539  ;;  %v781_v34 = vmul.f32 0.015625, %v657_v56  ;;  %v780_v62 = vmul.f32 0.015625, %v654_v50  ;;  %v4342_v50 = vtrunc.f32 %v2637_v44 }
 0x135   : > { %v4542_v37 = vpop.eup %4541  ;;  %v1065_v16 = vmul.f32 %v4540_v36, %v921_v41  ;;  %2745 = vperm.xlu1 %4468, %v4341_v2   ;;  %v2638_v36 = vmin.f32 %v2590_v13, 14.0 }
 0x136   : > { %v877_v49 = vsub.f32 %v781_v34, %v829_v22  ;;  %v876_v61 = vsub.f32 %v780_v62, %v828_v28  ;;  %v1064_v9 = vmul.f32 %v4542_v37, %v920_v10  ;;  %v925_v10 = vsub.f32 %v4874_v7, %v5610_v63  ;;  %v2355_v63 = vld [vmem:[%s5570_s11 + $0x60] sm:$0xff]  ;;  %v4877_v37 = vld [vmem:[%s5096_s13 + $0x110] sm:$0xff] }
 0x137   : > { %v663_v48 = vpop.xlane.xlu1 %662  ;;  %v660_v5 = vpop.xlane.xlu0 %659  ;;  %v5660_v28 = vadd.s32 %v5653_v40, %v2198_v3  ;;  %v4090_v34 = vadd.f32 -0.5, %v4042_v57  ;;  %v4044_v62 = vadd.f32 -0.5, %v2353_v47  ;;  %v4343_v60 = vcvt.f32.s32 %v4342_v50 }
 0x138   : > { %v4544_v15 = vpop.eup %4543  ;;  %v973_v18 = vadd.f32 1e-05, %v877_v49  ;;  %v972_v19 = vadd.f32 1e-05, %v876_v61  ;;  %v783_v24 = vmul.f32 0.015625, %v663_v48  ;;  %v782_v12 = vmul.f32 0.015625, %v660_v5 }
 0x139   : > { %v4546_v6 = vpop.eup %4545  ;;  %v1098_v25 = vpack.c.bf16 %v1065_v16, %v1064_v9  ;;  %v1067_v26 = vmul.f32 %v4544_v15, %v923_v54  ;;  %v924_v54 = vsub.f32 %v4875_v33, %v5612_v32  ;;  %v4876_v32 = vld [vmem:[%s5096_s13 + $0x118] sm:$0xff]  ;;  %v926_v16 = vsub.f32 %v4877_v37, %v5631_v45  ;;  %2748 = vperm.xlu1 %4468, %v4343_v60  }
 0x13a   : > { %4547 = vrsqrt.f32 %v973_v18  ;;  %v879_v39 = vsub.f32 %v783_v24, %v831_v27  ;;  %v878_v31 = vsub.f32 %v782_v12, %v830_v20  ;;  %v1066_v52 = vmul.f32 %v4546_v6, %v922_v46 }
 0x13b   : > { %4549 = vrsqrt.f32 %v972_v19  ;;  %v477_v58 = vpop.xlane.xlu1 %476  ;;  %4230 = vmatprep.mubr.msk.bf16.mxu0 %vm363_vm0, %v1098_v25  ;;  %v474_v42 = vpop.xlane.xlu0 %473  ;;  %v927_v46 = vsub.f32 %v4876_v32, %v5617_v30  ;;  %v4046_v21 = vadd.f32 -0.5, %v2355_v63  ;;  %v4048_v30 = vadd.f32 -0.5, %v2357_v35 }
 0x13c   : > { %v975_v17 = vadd.f32 1e-05, %v879_v39  ;;  %v974_v41 = vadd.f32 1e-05, %v878_v31  ;;  %v1099_v43 = vpack.c.bf16 %v1067_v26, %v1066_v52  ;;  %v5656_v22 = vmul.f32 0.015625, %v477_v58 }
 0x13d   : > { %v5665_v27 = vmul.f32 0.015625, %v474_v42  ;;  %vm2296_vm1 = vcmp.lt.s32.totalorder %v5660_v28, 600  ;;  %v4344_v49 = vtrunc.f32 %v2638_v36  ;;  %v2543_v61 = vceil.f32 %v4090_v34 }
 0x13e   : > { %4551 = vrsqrt.f32 %v975_v17  ;;  %4231 = vmatmul.mubr.msk.bf16.gmra.mrb[28].mxu0 %vm363_vm0, %v1099_v43  ;;  %v833_v8 = vmul.f32 %v5656_v22, %v5656_v22  ;;  %v4092_v45 = vadd.f32 -0.5, %v4044_v62  ;;  %v4094_v3 = vadd.f32 -0.5, %v4046_v21 }
 0x13f   : > { %4553 = vrsqrt.f32 %v974_v41  ;;  %v483_v56 = vpop.xlane.xlu1 %482  ;;  %v480_v55 = vpop.xlane.xlu0 %479  ;;  %v832_v9 = vmul.f32 %v5665_v27, %v5665_v27  ;;  %v4345_v18 = vcvt.f32.s32 %v4344_v49  ;;  %v2591_v19 = vmax.f32 %v2543_v61, 0.0  ;;  %v2361_v49 = vld [vmem:[%s5570_s11 + $0x90] sm:$0xff]  ;;  %v4878_v61 = vld [vmem:[%s5096_s13 + $0x128] sm:$0xff] }
 0x140   : > { %v5667_v53 = vmul.f32 0.015625, %v483_v56  ;;  %v5674_v20 = vmul.f32 0.015625, %v480_v55  ;;  %v4096_v24 = vadd.f32 -0.5, %v4048_v30  ;;  %v2545_v26 = vceil.f32 %v4092_v45  ;;  %v2363_v45 = vld [vmem:[%s5570_s11 + $0xa0] sm:$0xff] }
 0x141   : > { %v2547_v0 = vceil.f32 %v4094_v3  ;;  %v2639_v31 = vmin.f32 %v2591_v19, 14.0  ;;  %2751 = vperm.xlu1 %4468, %v4345_v18   ;;  %v4879_v3 = vld [vmem:[%s5096_s13 + $0x120] sm:$0xff] }
 0x142   : > { %v835_v48 = vmul.f32 %v5667_v53, %v5667_v53  ;;  %v834_v51 = vmul.f32 %v5674_v20, %v5674_v20  ;;  %v2593_v2 = vmax.f32 %v2545_v26, 0.0  ;;  %v2549_v38 = vceil.f32 %v4096_v24  ;;  %v4881_v26 = vld [vmem:[%s5096_s13 + $0x130] sm:$0xff] }
 0x143   : > { %v669_v5 = vpop.xlane.xlu1 %668  ;;  %v666_v15 = vpop.xlane.xlu0 %665  ;;  %v2595_v59 = vmax.f32 %v2547_v0, 0.0  ;;  %v4346_v7 = vtrunc.f32 %v2639_v31  ;;  %v4052_v24 = vadd.f32 -0.5, %v2361_v49  ;;  %v4054_v0 = vadd.f32 -0.5, %v2363_v45  ;;  %v2367_v45 = vld [vmem:[%s5570_s11 + $0xc0] sm:$0xff] }
 0x144   : > { %v4548_v11 = vpop.eup %4547  ;;  %v785_v14 = vmul.f32 0.015625, %v669_v5  ;;  %v784_v6 = vmul.f32 0.015625, %v666_v15  ;;  %v2641_v13 = vmin.f32 %v2593_v2, 14.0 }
 0x145   : > { %v4550_v12 = vpop.eup %4549  ;;  %v1069_v25 = vmul.f32 %v4548_v11, %v925_v10  ;;  %v4347_v56 = vcvt.f32.s32 %v4346_v7  ;;  %v2643_v34 = vmin.f32 %v2595_v59, 14.0  ;;  %v4100_v59 = vadd.f32 -0.5, %v4052_v24 }
 0x146   : > { %v881_v23 = vsub.f32 %v785_v14, %v833_v8  ;;  %v1068_v39 = vmul.f32 %v4550_v12, %v924_v54  ;;  %v880_v52 = vsub.f32 %v784_v6, %v832_v9  ;;  %v2359_v54 = vld [vmem:[%s5570_s11 + $0x80] sm:$0xff]  ;;  %v4350_v36 = vtrunc.f32 %v2641_v13  ;;  %v2365_v12 = vld [vmem:[%s5570_s11 + $0xb0] sm:$0xff]  ;;  %v4880_v6 = vld [vmem:[%s5096_s13 + $0x138] sm:$0xff] }
 0x147   : > { %v675_v58 = vpop.xlane.xlu1 %674  ;;  %v672_v43 = vpop.xlane.xlu0 %671  ;;  %2754 = vperm.xlu1 %4468, %v4347_v56   ;;  %v4050_v60 = vadd.f32 -0.5, %v2359_v54  ;;  %v4354_v8 = vtrunc.f32 %v2643_v34  ;;  %v929_v9 = vsub.f32 %v4878_v61, %v5656_v22 }
 0x148   : > { %v4552_v17 = vpop.eup %4551  ;;  %v977_v41 = vadd.f32 1e-05, %v881_v23  ;;  %v787_v42 = vmul.f32 0.015625, %v675_v58  ;;  %v1100_v57 = vpack.c.bf16 %v1069_v25, %v1068_v39  ;;  %v976_v33 = vadd.f32 1e-05, %v880_v52  ;;  %v5711_v39 = vld [vmem:[%s5096_s13 + $0x148] sm:$0xff] }
 0x149   : > { %v4554_v10 = vpop.eup %4553  ;;  %v786_v44 = vmul.f32 0.015625, %v672_v43  ;;  %v1071_v47 = vmul.f32 %v4552_v17, %v927_v46  ;;  %v2597_v46 = vmax.f32 %v2549_v38, 0.0  ;;  %v4351_v30 = vcvt.f32.s32 %v4350_v36 }
 0x14a   : > { %4555 = vrsqrt.f32 %v977_v41  ;;  %v883_v63 = vsub.f32 %v787_v42, %v835_v48  ;;  %4234 = vmatprep.mubr.msk.bf16.mxu0 %vm363_vm0, %v1100_v57  ;;  %v1070_v32 = vmul.f32 %v4554_v10, %v926_v16  ;;  %v5688_v16 = vsel %vm2296_vm1, %v5575_v1, 0.0 }
 0x14b   : > { %4557 = vrsqrt.f32 %v976_v33  ;;  %v882_v50 = vsub.f32 %v786_v44, %v834_v51  ;;  %v489_v55 = vpop.xlane.xlu1 %488  ;;  %v486_v35 = vpop.xlane.xlu0 %485  ;;  %7599 = vst [vmem:[#allocation5_spill] sm:$0xff] %v5688_v16  ;;  %v2645_v5 = vmin.f32 %v2597_v46, 14.0  ;;  %v928_v1 = vsub.f32 %v4879_v3, %v5665_v27  ;;  %2760 = vperm.xlu1 %4468, %v4351_v30  }
 0x14c   : > { %v979_v62 = vadd.f32 1e-05, %v883_v63  ;;  %v1101_v37 = vpack.c.bf16 %v1071_v47, %v1070_v32  ;;  %v5693_v48 = vmul.f32 0.015625, %v489_v55  ;;  %v5699_v28 = vmul.f32 0.015625, %v486_v35 }
 0x14d   : > { %v978_v21 = vadd.f32 1e-05, %v882_v50  ;;  %v4355_v14 = vcvt.f32.s32 %v4354_v8  ;;  %v4358_v18 = vtrunc.f32 %v2645_v5  ;;  %v4098_v19 = vadd.f32 -0.5, %v4050_v60 }
 0x14e   : > { %4559 = vrsqrt.f32 %v979_v62  ;;  %4235 = vmatmul.mubr.msk.bf16.gmra.mrb[32].mxu0 %vm363_vm0, %v1101_v37  ;;  %v931_v25 = vsub.f32 %v4880_v6, %v5667_v53  ;;  %v930_v27 = vsub.f32 %v4881_v26, %v5674_v20  ;;  %v4056_v51 = vadd.f32 -0.5, %v2365_v12 }
 0x14f   : > { %4561 = vrsqrt.f32 %v978_v21  ;;  %v495_v11 = vpop.xlane.xlu1 %494  ;;  %v492_v15 = vpop.xlane.xlu0 %491  ;;  %v837_v23 = vmul.f32 %v5693_v48, %v5693_v48  ;;  %v933_v31 = vsub.f32 %v5711_v39, %v5693_v48  ;;  %v2551_v58 = vceil.f32 %v4098_v19  ;;  %2766 = vperm.xlu1 %4468, %v4355_v14  }
 0x150   : > { %v5701_v22 = vmul.f32 0.015625, %v495_v11  ;;  %v5715_v52 = vmul.f32 0.015625, %v492_v15  ;;  %v836_v2 = vmul.f32 %v5699_v28, %v5699_v28  ;;  %v4102_v38 = vadd.f32 -0.5, %v4054_v0 }
 0x151   : > { %v4359_v43 = vcvt.f32.s32 %v4358_v18  ;;  %v2599_v57 = vmax.f32 %v2551_v58, 0.0  ;;  %v4104_v7 = vadd.f32 -0.5, %v4056_v51  ;;  %v2553_v47 = vceil.f32 %v4100_v59  ;;  %v2369_v58 = vld [vmem:[%s5570_s11 + $0xd0] sm:$0xff] }
 0x152   : > { %v839_v53 = vmul.f32 %v5701_v22, %v5701_v22  ;;  %v2555_v13 = vceil.f32 %v4102_v38  ;;  %v838_v54 = vmul.f32 %v5715_v52, %v5715_v52  ;;  %v4058_v26 = vadd.f32 -0.5, %v2367_v45  ;;  %v2371_v38 = vld [vmem:[%s5570_s11 + $0xe0] sm:$0xff] }
 0x153   : > { %v681_v20 = vpop.xlane.xlu1 %680  ;;  %v678_v42 = vpop.xlane.xlu0 %677  ;;  %v2647_v56 = vmin.f32 %v2599_v57, 14.0  ;;  %v2601_v36 = vmax.f32 %v2553_v47, 0.0  ;;  %v2557_v62 = vceil.f32 %v4104_v7  ;;  %2772 = vperm.xlu1 %4468, %v4359_v43   ;;  %v4060_v47 = vadd.f32 -0.5, %v2369_v58  ;;  %v2375_v45 = vld [vmem:[%s5570_s11 + $0x100] sm:$0xff] }
 0x154   : > { %v4556_v17 = vpop.eup %4555  ;;  %v789_v41 = vmul.f32 0.015625, %v681_v20  ;;  %v788_v33 = vmul.f32 0.015625, %v678_v42  ;;  %v2603_v34 = vmax.f32 %v2555_v13, 0.0  ;;  %v5737_v42 = vld [vmem:[%s5096_s13 + $0x150] sm:$0xff] }
 0x155   : > { %v4558_v10 = vpop.eup %4557  ;;  %v1073_v44 = vmul.f32 %v4556_v17, %v929_v9  ;;  %v4362_v30 = vtrunc.f32 %v2647_v56  ;;  %v2649_v5 = vmin.f32 %v2601_v36, 14.0  ;;  %v4884_v17 = vld [vmem:[%s5096_s13 + $0x158] sm:$0xff]  ;;  %v934_v43 = vsub.f32 %v5737_v42, %v5715_v52  ;;  %v2373_v13 = vld [vmem:[%s5570_s11 + $0xf0] sm:$0xff]  ;;  %v5749_v56 = vld [vmem:[%s5096_s13 + $0x168] sm:$0xff] }
 0x156   : > { %v885_v63 = vsub.f32 %v789_v41, %v837_v23  ;;  %v1072_v32 = vmul.f32 %v4558_v10, %v928_v1  ;;  %v884_v50 = vsub.f32 %v788_v33, %v836_v2  ;;  %v2651_v19 = vmin.f32 %v2603_v34, 14.0  ;;  %v4883_v2 = vld [vmem:[%s5096_s13 + $0x140] sm:$0xff] }
 0x157   : > { %v687_v55 = vpop.xlane.xlu1 %686  ;;  %v684_v60 = vpop.xlane.xlu0 %683  ;;  %v4363_v11 = vcvt.f32.s32 %v4362_v30  ;;  %v4366_v18 = vtrunc.f32 %v2649_v5  ;;  %v935_v41 = vsub.f32 %v4884_v17, %v5701_v22  ;;  %v5756_v36 = vld [vmem:[%s5096_s13 + $0x160] sm:$0xff] }
 0x158   : > { %v4560_v35 = vpop.eup %4559  ;;  %v981_v37 = vadd.f32 1e-05, %v885_v63  ;;  %v791_v46 = vmul.f32 0.015625, %v687_v55  ;;  %v1102_v21 = vpack.c.bf16 %v1073_v44, %v1072_v32  ;;  %v980_v49 = vadd.f32 1e-05, %v884_v50 }
 0x159   : > { %v4562_v8 = vpop.eup %4561  ;;  %v790_v61 = vmul.f32 0.015625, %v684_v60  ;;  %v1075_v9 = vmul.f32 %v4560_v35, %v931_v25  ;;  %2778 = vperm.xlu1 %4468, %v4363_v11   ;;  %v2605_v25 = vmax.f32 %v2557_v62, 0.0  ;;  %v4370_v23 = vtrunc.f32 %v2651_v19 }
 0x15a   : > { %4563 = vrsqrt.f32 %v981_v37  ;;  %v887_v3 = vsub.f32 %v791_v46, %v839_v53  ;;  %4238 = vmatprep.mubr.msk.bf16.mxu0 %vm363_vm0, %v1102_v21  ;;  %v1074_v1 = vmul.f32 %v4562_v8, %v930_v27  ;;  %v4367_v27 = vcvt.f32.s32 %v4366_v18 }
 0x15b   : > { %4565 = vrsqrt.f32 %v980_v49  ;;  %v886_v14 = vsub.f32 %v790_v61, %v838_v54  ;;  %v501_v15 = vpop.xlane.xlu1 %500  ;;  %v932_v53 = vsub.f32 %v4883_v2, %v5699_v28  ;;  %v2653_v59 = vmin.f32 %v2605_v25, 14.0 }
 0x15c   : > { %v983_v24 = vadd.f32 1e-05, %v887_v3  ;;  %v498_v12 = vpop.xlane.xlu0 %497  ;;  %v1103_v6 = vpack.c.bf16 %v1075_v9, %v1074_v1  ;;  %v5725_v51 = vmul.f32 0.015625, %v501_v15  ;;  %v4371_v28 = vcvt.f32.s32 %v4370_v23 }
 0x15d   : > { %v982_v0 = vadd.f32 1e-05, %v886_v14  ;;  %v5730_v20 = vmul.f32 0.015625, %v498_v12  ;;  %2784 = vperm.xlu1 %4468, %v4367_v27   ;;  %v4374_v33 = vtrunc.f32 %v2653_v59  ;;  %v4106_v44 = vadd.f32 -0.5, %v4058_v26 }
 0x15e   : > { %4567 = vrsqrt.f32 %v983_v24  ;;  %4239 = vmatmul.mubr.msk.bf16.gmra.mrb[36].mxu0 %vm363_vm0, %v1103_v6  ;;  %v841_v22 = vmul.f32 %v5725_v51, %v5725_v51  ;;  %v4062_v63 = vadd.f32 -0.5, %v2371_v38  ;;  %v4064_v32 = vadd.f32 -0.5, %v2373_v13 }
 0x15f   : > { %4569 = vrsqrt.f32 %v982_v0  ;;  %v507_v57 = vpop.xlane.xlu1 %506  ;;  %v937_v50 = vsub.f32 %v5749_v56, %v5725_v51  ;;  %v840_v55 = vmul.f32 %v5730_v20, %v5730_v20  ;;  %v936_v34 = vsub.f32 %v5756_v36, %v5730_v20 }
 0x160   : > { %v5741_v7 = vmul.f32 0.015625, %v507_v57  ;;  %v504_v10 = vpop.xlane.xlu0 %503  ;;  %v2559_v62 = vceil.f32 %v4106_v44  ;;  %v4375_v46 = vcvt.f32.s32 %v4374_v33  ;;  %v4108_v60 = vadd.f32 -0.5, %v4060_v47  ;;  %v2377_v44 = vld [vmem:[%s5570_s11 + $0x110] sm:$0xff] }
 0x161   : > { %v5746_v54 = vmul.f32 0.015625, %v504_v10  ;;  %v4110_v21 = vadd.f32 -0.5, %v4062_v63  ;;  %2790 = vperm.xlu1 %4468, %v4371_v28   ;;  %v4112_v5 = vadd.f32 -0.5, %v4064_v32  ;;  %v4066_v27 = vadd.f32 -0.5, %v2375_v45  ;;  %v5774_v63 = vld [vmem:[%s5570_s11] sm:$0xff] }
 0x162   : > { %v843_v35 = vmul.f32 %v5741_v7, %v5741_v7  ;;  %v2607_v9 = vmax.f32 %v2559_v62, 0.0  ;;  %v2561_v14 = vceil.f32 %v4108_v60  ;;  %v4068_v52 = vadd.f32 -0.5, %v2377_v44 }
 0x163   : > { %v693_v37 = vpop.xlane.xlu1 %692  ;;  %v842_v8 = vmul.f32 %v5746_v54, %v5746_v54  ;;  %v2563_v15 = vceil.f32 %v4110_v21  ;;  %v2565_v12 = vceil.f32 %v4112_v5  ;;  %v4114_v62 = vadd.f32 -0.5, %v4066_v27 }
 0x164   : > { %v4564_v30 = vpop.eup %4563  ;;  %v793_v49 = vmul.f32 0.015625, %v693_v37  ;;  %v690_v61 = vpop.xlane.xlu0 %689  ;;  %v2655_v24 = vmin.f32 %v2607_v9, 14.0  ;;  %v2609_v26 = vmax.f32 %v2561_v14, 0.0  ;;  %v4034_v21 = vadd.f32 -0.5, %v5774_v63 }
 0x165   : > { %v4566_v3 = vpop.eup %4565  ;;  %v792_v1 = vmul.f32 0.015625, %v690_v61  ;;  %v1077_v11 = vmul.f32 %v4564_v30, %v933_v31  ;;  %v2611_v0 = vmax.f32 %v2563_v15, 0.0  ;;  %2796 = vperm.xlu1 %4468, %v4375_v46   ;;  %v2352_v30 = vld [vmem:[%s5570_s11 + $0x48] sm:$0xff]  ;;  %v3792_v20 = vsel %vm3689_vm2, %v5688_v16, 0.0 }
 0x166   : > { %v889_v18 = vsub.f32 %v793_v49, %v841_v22  ;;  %v1076_v19 = vmul.f32 %v4566_v3, %v932_v53  ;;  %v4378_v48 = vtrunc.f32 %v2655_v24  ;;  %v2657_v57 = vmin.f32 %v2609_v26, 14.0  ;;  %v4889_v24 = vld [vmem:[%s5096_s13 + $0x170] sm:$0xff] }
 0x167   : > { %v888_v6 = vsub.f32 %v792_v1, %v840_v55  ;;  %v699_v25 = vpop.xlane.xlu1 %698  ;;  %v2659_v22 = vmin.f32 %v2611_v0, 14.0  ;;  %v2613_v55 = vmax.f32 %v2565_v12, 0.0  ;;  %v4116_v49 = vadd.f32 -0.5, %v4068_v52  ;;  %v2381_v1 = vld [vmem:[%s5570_s11 + $0x130] sm:$0xff]  ;;  %v2354_v0 = vld [vmem:[%s5570_s11 + $0x58] sm:$0xff] }
 0x168   : > { %v4568_v23 = vpop.eup %4567  ;;  %v985_v58 = vadd.f32 1e-05, %v889_v18  ;;  %v795_v2 = vmul.f32 0.015625, %v699_v25  ;;  %v696_v59 = vpop.xlane.xlu0 %695  ;;  %v1104_v38 = vpack.c.bf16 %v1077_v11, %v1076_v19  ;;  %v4379_v33 = vcvt.f32.s32 %v4378_v48  ;;  %v4888_v11 = vld [vmem:[%s5096_s13 + $0x178] sm:$0xff] }
 0x169   : > { %v4570_v39 = vpop.eup %4569  ;;  %v984_v31 = vadd.f32 1e-05, %v888_v6  ;;  %v794_v17 = vmul.f32 0.015625, %v696_v59  ;;  %v1079_v53 = vmul.f32 %v4568_v23, %v935_v41  ;;  %v4382_v13 = vtrunc.f32 %v2657_v57 }
 0x16a   : > { %4571 = vrsqrt.f32 %v985_v58  ;;  %v891_v28 = vsub.f32 %v795_v2, %v843_v35  ;;  %4242 = vmatprep.mubr.msk.bf16.mxu0 %vm363_vm0, %v1104_v38  ;;  %v1078_v10 = vmul.f32 %v4570_v39, %v934_v43  ;;  %2802 = vperm.xlu1 %4468, %v4379_v33   ;;  %v2379_v35 = vld [vmem:[%s5570_s11 + $0x120] sm:$0xff]  ;;  %v4386_v60 = vtrunc.f32 %v2659_v22 }
 0x16b   : > { %4573 = vrsqrt.f32 %v984_v31  ;;  %v890_v47 = vsub.f32 %v794_v17, %v842_v8  ;;  %v4383_v46 = vcvt.f32.s32 %v4382_v13  ;;  %v2661_v42 = vmin.f32 %v2613_v55, 14.0 }
 0x16c   : > { %v987_v41 = vadd.f32 1e-05, %v891_v28  ;;  %v1105_v32 = vpack.c.bf16 %v1079_v53, %v1078_v10  ;;  %v2567_v43 = vceil.f32 %v4114_v62  ;;  %v4387_v8 = vcvt.f32.s32 %v4386_v60  ;;  %v2383_v28 = vld [vmem:[%s5570_s11 + $0x140] sm:$0xff] }
 0x16d   : > { %v986_v37 = vadd.f32 1e-05, %v890_v47  ;;  %v4070_v61 = vadd.f32 -0.5, %v2379_v35  ;;  %v4390_v9 = vtrunc.f32 %v2661_v42  ;;  %v4082_v45 = vadd.f32 -0.5, %v4034_v21  ;;  %v2356_v35 = vld [vmem:[%s5570_s11 + $0x68] sm:$0xff]  ;;  %v2385_v21 = vld [vmem:[%s5570_s11 + $0x150] sm:$0xff] }
 0x16e   : > { %4575 = vrsqrt.f32 %v987_v41  ;;  %4243 = vmatmul.mubr.msk.bf16.gmra.mrb[40].mxu0 %vm363_vm0, %v1105_v32  ;;  %2808 = vperm.xlu1 %4468, %v4383_v46   ;;  %v2615_v5 = vmax.f32 %v2567_v43, 0.0  ;;  %v4043_v3 = vadd.f32 -0.5, %v2352_v30  ;;  %v939_v14 = vsub.f32 %v4888_v11, %v5741_v7  ;;  %v2387_v11 = vld [vmem:[%s5570_s11 + $0x160] sm:$0xff] }
 0x16f   : > { %4577 = vrsqrt.f32 %v986_v37  ;;  %v2569_v15 = vceil.f32 %v4116_v49  ;;  %v4118_v18 = vadd.f32 -0.5, %v4070_v61  ;;  %v4072_v19 = vadd.f32 -0.5, %v2381_v1 }
 0x170   : > { %v938_v12 = vsub.f32 %v4889_v24, %v5746_v54  ;;  %v2663_v6 = vmin.f32 %v2615_v5, 14.0  ;;  %v2535_v25 = vceil.f32 %v4082_v45  ;;  %v4091_v26 = vadd.f32 -0.5, %v4043_v3 }
 0x171   : > { %v2617_v27 = vmax.f32 %v2569_v15, 0.0  ;;  %v2571_v23 = vceil.f32 %v4118_v18  ;;  %v4120_v58 = vadd.f32 -0.5, %v4072_v19  ;;  %v4045_v2 = vadd.f32 -0.5, %v2354_v0 }
 0x172   : > { %2814 = vperm.xlu1 %4468, %v4387_v8   ;;  %v4391_v38 = vcvt.f32.s32 %v4390_v9  ;;  %v4394_v48 = vtrunc.f32 %v2663_v6  ;;  %v2583_v7 = vmax.f32 %v2535_v25, 0.0  ;;  %v2544_v39 = vceil.f32 %v4091_v26  ;;  %v2358_v9 = vld [vmem:[%s5570_s11 + $0x78] sm:$0xff] }
 0x173   : > { %v2665_v17 = vmin.f32 %v2617_v27, 14.0  ;;  %v2619_v53 = vmax.f32 %v2571_v23, 0.0  ;;  %v2573_v57 = vceil.f32 %v4120_v58  ;;  %v4093_v32 = vadd.f32 -0.5, %v4045_v2  ;;  %v2360_v23 = vld [vmem:[%s5570_s11 + $0x88] sm:$0xff] }
 0x174   : > { %v4572_v59 = vpop.eup %4571  ;;  %v4395_v33 = vcvt.f32.s32 %v4394_v48  ;;  %v2631_v44 = vmin.f32 %v2583_v7, 14.0  ;;  %v2592_v47 = vmax.f32 %v2544_v39, 0.0  ;;  %v4047_v61 = vadd.f32 -0.5, %v2356_v35  ;;  %v2389_v48 = vld [vmem:[%s5570_s11 + $0x170] sm:$0xff] }
 0x175   : > { %v4574_v31 = vpop.eup %4573  ;;  %v1081_v54 = vmul.f32 %v4572_v59, %v937_v50  ;;  %v4398_v13 = vtrunc.f32 %v2665_v17  ;;  %v2667_v22 = vmin.f32 %v2619_v53, 14.0  ;;  %v2621_v41 = vmax.f32 %v2573_v57, 0.0 }
 0x176   : > { %v1080_v10 = vmul.f32 %v4574_v31, %v936_v34  ;;  %2820 = vperm.xlu1 %4468, %v4391_v38   ;;  %v4330_v51 = vtrunc.f32 %v2631_v44  ;;  %v2640_v56 = vmin.f32 %v2592_v47, 14.0  ;;  %v4074_v50 = vadd.f32 -0.5, %v2383_v28  ;;  %v2362_v28 = vld [vmem:[%s5570_s11 + $0x98] sm:$0xff] }
 0x177   : > { %v4402_v36 = vtrunc.f32 %v2667_v22  ;;  %v2669_v34 = vmin.f32 %v2621_v41, 14.0  ;;  %v2546_v43 = vceil.f32 %v4093_v32  ;;  %v4399_v30 = vcvt.f32.s32 %v4398_v13 }
 0x178   : > { %v4576_v55 = vpop.eup %4575  ;;  %v1106_v62 = vpack.c.bf16 %v1081_v54, %v1080_v10  ;;  %v4331_v52 = vcvt.f32.s32 %v4330_v51  ;;  %v4348_v42 = vtrunc.f32 %v2640_v56  ;;  %v4122_v49 = vadd.f32 -0.5, %v4074_v50 }
 0x179   : > { %v4578_v37 = vpop.eup %4577  ;;  %v1083_v46 = vmul.f32 %v4576_v55, %v939_v14  ;;  %v5798_v8 = vtrunc.f32 %v2669_v34  ;;  %v2247_v45 = vadd.s32 %v5653_v40, %v5638_v4  ;;  %v2594_v1 = vmax.f32 %v2546_v43, 0.0 }
 0x17a   : > { %4246 = vmatprep.mubr.msk.bf16.mxu0 %vm363_vm0, %v1106_v62  ;;  %v1082_v60 = vmul.f32 %v4578_v37, %v938_v12  ;;  %2826 = vperm.xlu1 %4468, %v4395_v33   ;;  %v4349_v3 = vcvt.f32.s32 %v4348_v42  ;;  %v4403_v14 = vcvt.f32.s32 %v4402_v36  ;;  %v2575_v15 = vceil.f32 %v4122_v49 }
 0x17b   : > { %2730 = vperm.xlu0 %4467, %v4331_v52   ;;  %v4095_v18 = vadd.f32 -0.5, %v4047_v61  ;;  %v4076_v19 = vadd.f32 -0.5, %v2385_v21  ;;  %vm2295_vm3 = vcmp.lt.s32.totalorder %v2247_v45, 600  ;;  %v2642_v24 = vmin.f32 %v2594_v1, 14.0  ;;  %v2366_v45 = vld [vmem:[%s5570_s11 + $0xb8] sm:$0xff] }
 0x17c   : > { %v1107_v5 = vpack.c.bf16 %v1083_v46, %v1082_v60  ;;  %v4049_v12 = vadd.f32 -0.5, %v2358_v9  ;;  %v4078_v6 = vadd.f32 -0.5, %v2387_v11  ;;  %v5806_v25 = vsel %vm2295_vm3, %v5774_v63, 0.0 }
 0x17d   : > { %7600 = vst [vmem:[#allocation6_spill] sm:$0xff] %v5806_v25  ;;  %v2623_v26 = vmax.f32 %v2575_v15, 0.0  ;;  %v2548_v0 = vceil.f32 %v4095_v18  ;;  %v4124_v27 = vadd.f32 -0.5, %v4076_v19  ;;  %v3791_v58 = vsel %vm3689_vm2, %v5806_v25, 0.0 }
 0x17e   : > { %4247 = vmatmul.mubr.msk.bf16.gmra.mrb[44].mxu0 %vm363_vm0, %v1107_v5  ;;  %2832 = vperm.xlu1 %4468, %v4399_v30   ;;  %v4407_v2 = vcvt.f32.s32 %v5798_v8  ;;  %v4352_v59 = vtrunc.f32 %v2642_v24  ;;  %v4097_v38 = vadd.f32 -0.5, %v4049_v12  ;;  %v5813_v7 = vadd.f32 %v3792_v20, %v3791_v58  ;;  %v2364_v20 = vld [vmem:[%s5570_s11 + $0xa8] sm:$0xff] }
 0x17f   : > { %2757 = vperm.xlu0 %4467, %v4349_v3   ;;  %v2671_v39 = vmin.f32 %v2623_v26, 14.0  ;;  %v2596_v63 = vmax.f32 %v2548_v0, 0.0  ;;  %v2577_v31 = vceil.f32 %v4124_v27  ;;  %v4126_v53 = vadd.f32 -0.5, %v4078_v6  ;;  %v2368_v0 = vld [vmem:[%s5570_s11 + $0xc8] sm:$0xff] }
 0x180   : > { %v4353_v54 = vcvt.f32.s32 %v4352_v59  ;;  %v2550_v17 = vceil.f32 %v4097_v38  ;;  %v4051_v57 = vadd.f32 -0.5, %v2360_v23  ;;  %v4080_v47 = vadd.f32 -0.5, %v2389_v48 }
 0x181   : > { %v4410_v10 = vtrunc.f32 %v2671_v39  ;;  %v2644_v33 = vmin.f32 %v2596_v63, 14.0  ;;  %v2625_v44 = vmax.f32 %v2577_v31, 0.0  ;;  %v2579_v22 = vceil.f32 %v4126_v53  ;;  %v2370_v31 = vld [vmem:[%s5570_s11 + $0xd8] sm:$0xff] }
 0x182   : > { %2838 = vperm.xlu1 %4468, %v4403_v14   ;;  %v2598_v13 = vmax.f32 %v2550_v17, 0.0  ;;  %v4099_v41 = vadd.f32 -0.5, %v4051_v57  ;;  %v4053_v32 = vadd.f32 -0.5, %v2362_v28  ;;  %v4128_v56 = vadd.f32 -0.5, %v4080_v47  ;;  %v2372_v47 = vld [vmem:[%s5570_s11 + $0xe8] sm:$0xff] }
 0x183   : > { %2763 = vperm.xlu0 %4467, %v4353_v54   ;;  %v4411_v55 = vcvt.f32.s32 %v4410_v10  ;;  %v4356_v62 = vtrunc.f32 %v2644_v33  ;;  %v2673_v51 = vmin.f32 %v2625_v44, 14.0  ;;  %v2627_v35 = vmax.f32 %v2579_v22, 0.0 }
 0x184   : > { %v2646_v50 = vmin.f32 %v2598_v13, 14.0  ;;  %v2552_v37 = vceil.f32 %v4099_v41  ;;  %v4101_v46 = vadd.f32 -0.5, %v4053_v32  ;;  %v2581_v60 = vceil.f32 %v4128_v56  ;;  %v2374_v56 = vld [vmem:[%s5570_s11 + $0xf8] sm:$0xff] }
 0x185   : > { %v4357_v36 = vcvt.f32.s32 %v4356_v62  ;;  %v4414_v34 = vtrunc.f32 %v2673_v51  ;;  %v4055_v52 = vadd.f32 -0.5, %v2364_v20  ;;  %v2675_v43 = vmin.f32 %v2627_v35, 14.0 }
 0x186   : > { %2844 = vperm.xlu1 %4468, %v4407_v2   ;;  %v4360_v42 = vtrunc.f32 %v2646_v50  ;;  %v2600_v21 = vmax.f32 %v2552_v37, 0.0  ;;  %v2554_v30 = vceil.f32 %v4101_v46  ;;  %v2629_v8 = vmax.f32 %v2581_v60, 0.0  ;;  %v2376_v60 = vld [vmem:[%s5570_s11 + $0x108] sm:$0xff] }
 0x187   : > { %2769 = vperm.xlu0 %4467, %v4357_v36   ;;  %v4103_v49 = vadd.f32 -0.5, %v4055_v52  ;;  %v4415_v3 = vcvt.f32.s32 %v4414_v34  ;;  %v4057_v11 = vadd.f32 -0.5, %v2366_v45  ;;  %v4418_v14 = vtrunc.f32 %v2675_v43 }
 0x188   : > { %v4361_v61 = vcvt.f32.s32 %v4360_v42  ;;  %v2648_v9 = vmin.f32 %v2600_v21, 14.0  ;;  %v2602_v5 = vmax.f32 %v2554_v30, 0.0  ;;  %v2677_v18 = vmin.f32 %v2629_v8, 14.0  ;;  %v5826_v21 = vld [vmem:[%s7508_s3] ss:$0 sm:$0xff] }
 0x189   : > { %v2556_v1 = vceil.f32 %v4103_v49  ;;  %v4105_v12 = vadd.f32 -0.5, %v4057_v11  ;;  %v4059_v58 = vadd.f32 -0.5, %v2368_v0  ;;  %v4419_v2 = vcvt.f32.s32 %v4418_v14 }
 0x18a   : > { %2850 = vperm.xlu1 %4468, %v4411_v55   ;;  %v4364_v15 = vtrunc.f32 %v2648_v9  ;;  %v2650_v19 = vmin.f32 %v2602_v5, 14.0  ;;  %v4422_v59 = vtrunc.f32 %v2677_v18  ;;  %v4061_v53 = vadd.f32 -0.5, %v2370_v31  ;;  %v2378_v5 = vld [vmem:[%s5570_s11 + $0x118] sm:$0xff] }
 0x18b   : > { %2775 = vperm.xlu0 %4467, %v4361_v61   ;;  %v2604_v24 = vmax.f32 %v2556_v1, 0.0  ;;  %v2558_v23 = vceil.f32 %v4105_v12  ;;  %v4107_v63 = vadd.f32 -0.5, %v4059_v58  ;;  %v4063_v41 = vadd.f32 -0.5, %v2372_v47  ;;  %v2380_v58 = vld [vmem:[%s5570_s11 + $0x128] sm:$0xff] }
 0x18c   : > { %v4365_v6 = vcvt.f32.s32 %v4364_v15  ;;  %v4368_v26 = vtrunc.f32 %v2650_v19  ;;  %v4423_v57 = vcvt.f32.s32 %v4422_v59  ;;  %v4109_v44 = vadd.f32 -0.5, %v4061_v53 }
 0x18d   : > { %v2652_v27 = vmin.f32 %v2604_v24, 14.0  ;;  %v2606_v39 = vmax.f32 %v2558_v23, 0.0  ;;  %v2560_v17 = vceil.f32 %v4107_v63  ;;  %v4111_v51 = vadd.f32 -0.5, %v4063_v41 }
 0x18e   : > { %2856 = vperm.xlu1 %4468, %v4415_v3   ;;  %v4369_v38 = vcvt.f32.s32 %v4368_v26  ;;  %v2562_v22 = vceil.f32 %v4109_v44  ;;  %v4065_v37 = vadd.f32 -0.5, %v2374_v56  ;;  %v4067_v43 = vadd.f32 -0.5, %v2376_v60 }
 0x18f   : > { %2781 = vperm.xlu0 %4467, %v4365_v6   ;;  %v4372_v48 = vtrunc.f32 %v2652_v27  ;;  %v2654_v54 = vmin.f32 %v2606_v39, 14.0  ;;  %v2608_v33 = vmax.f32 %v2560_v17, 0.0  ;;  %v2564_v35 = vceil.f32 %v4111_v51 }
 0x190   : > { %v2610_v62 = vmax.f32 %v2562_v22, 0.0  ;;  %v4113_v34 = vadd.f32 -0.5, %v4065_v37  ;;  %v4115_v61 = vadd.f32 -0.5, %v4067_v43  ;;  %v4069_v26 = vadd.f32 -0.5, %v2378_v5 }
 0x191   : > { %v4373_v28 = vcvt.f32.s32 %v4372_v48  ;;  %v4376_v10 = vtrunc.f32 %v2654_v54  ;;  %v2656_v13 = vmin.f32 %v2608_v33, 14.0  ;;  %v2612_v36 = vmax.f32 %v2564_v35, 0.0 }
 0x192   : > { %2862 = vperm.xlu1 %4468, %v4419_v2   ;;  %v2658_v50 = vmin.f32 %v2610_v62, 14.0  ;;  %v2566_v42 = vceil.f32 %v4113_v34  ;;  %v2568_v11 = vceil.f32 %v4115_v61  ;;  %v4117_v17 = vadd.f32 -0.5, %v4069_v26 }
 0x193   : > { %2787 = vperm.xlu0 %4467, %v4369_v38   ;;  %v4377_v32 = vcvt.f32.s32 %v4376_v10  ;;  %v4380_v55 = vtrunc.f32 %v2656_v13  ;;  %v2660_v52 = vmin.f32 %v2612_v36, 14.0  ;;  %v4071_v53 = vadd.f32 -0.5, %v2380_v58 }
 0x194   : > { %v4384_v20 = vtrunc.f32 %v2658_v50  ;;  %v2614_v49 = vmax.f32 %v2566_v42, 0.0  ;;  %v2616_v23 = vmax.f32 %v2568_v11, 0.0  ;;  %v2570_v47 = vceil.f32 %v4117_v17 }
 0x195   : > { %v4381_v46 = vcvt.f32.s32 %v4380_v55  ;;  %v4388_v8 = vtrunc.f32 %v2660_v52  ;;  %v4119_v41 = vadd.f32 -0.5, %v4071_v53 }
 0x196   : > { %2868 = vperm.xlu1 %4468, %v4423_v57   ;;  %v4385_v30 = vcvt.f32.s32 %v4384_v20  ;;  %v2662_v1 = vmin.f32 %v2614_v49, 14.0  ;;  %v2664_v63 = vmin.f32 %v2616_v23, 14.0  ;;  %v2618_v35 = vmax.f32 %v2570_v47, 0.0 }
 0x197   : > { %2793 = vperm.xlu0 %4467, %v4373_v28   ;;  %v4389_v18 = vcvt.f32.s32 %v4388_v8  ;;  %v2572_v37 = vceil.f32 %v4119_v41 }
 0x198   : > { %v4392_v6 = vtrunc.f32 %v2662_v1  ;;  %v4396_v10 = vtrunc.f32 %v2664_v63  ;;  %v2666_v52 = vmin.f32 %v2618_v35, 14.0  ;;  %v2386_v1 = vld [vmem:[%s5570_s11 + $0x158] sm:$0xff] }
 0x199   : > { %v2620_v42 = vmax.f32 %v2572_v37, 0.0 }
 0x19a   : > { %v4393_v39 = vcvt.f32.s32 %v4392_v6  ;;  %v4397_v51 = vcvt.f32.s32 %v4396_v10  ;;  %v4400_v49 = vtrunc.f32 %v2666_v52 }
 0x19b   : > { %2799 = vperm.xlu0 %4467, %v4377_v32   ;;  %v2382_v32 = vld [vmem:[%s5570_s11 + $0x138] sm:$0xff]  ;;  %v2668_v61 = vmin.f32 %v2620_v42, 14.0 }
 0x19c   : > { %v4073_v36 = vadd.f32 -0.5, %v2382_v32 }
 0x19e   : > { %v4121_v43 = vadd.f32 -0.5, %v4073_v36 }
 0x19f   : > { %2805 = vperm.xlu0 %4467, %v4381_v46   ;;  %v2384_v46 = vld [vmem:[%s5570_s11 + $0x148] sm:$0xff] }
 0x1a0   : > { %v4075_v34 = vadd.f32 -0.5, %v2384_v46 }
 0x1a1   : > { %v4204_v9 = vpop.f32.mrb[0].mxu0 }
 0x1a2   : > { %v5830_v45 = vadd.f32 %v4204_v9, %v5826_v21  ;;  %v1253_v3 = vpop.f32.mrb[1].mxu0 }
 0x1a3   : > { %v5833_v14 = vadd.f32 %v5826_v21, %v1253_v3  ;;  %v4205_v15 = vpop.f32.mrb[2].mxu0  ;;  %2811 = vperm.xlu0 %4467, %v4385_v30   ;;  %v4123_v30 = vadd.f32 -0.5, %v4075_v34  ;;  %v2574_v3 = vceil.f32 %v4121_v43 }
 0x1a4   : > { %v1494_v19 = vmul.f32 0.044715, %v5830_v45  ;;  %v5837_v24 = vadd.f32 %v4205_v15, %v5826_v21  ;;  %v1256_v12 = vpop.f32.mrb[3].mxu0 }
 0x1a5   : > { %v1492_v0 = vmul.f32 0.044715, %v5833_v14  ;;  %v5841_v27 = vadd.f32 %v5826_v21, %v1256_v12  ;;  %v2576_v23 = vceil.f32 %v4123_v30  ;;  %v2388_v30 = vld [vmem:[%s5570_s11 + $0x168] sm:$0xff] }
 0x1a6   : > { %v1542_v2 = vmul.f32 %v1494_v19, %v5830_v45  ;;  %v1495_v59 = vmul.f32 0.044715, %v5837_v24  ;;  %v4404_v19 = vtrunc.f32 %v2668_v61 }
 0x1a7   : > { %v1540_v38 = vmul.f32 %v1492_v0, %v5833_v14  ;;  %v1493_v48 = vmul.f32 0.044715, %v5841_v27  ;;  %2817 = vperm.xlu0 %4467, %v4389_v18   ;;  %v4401_v18 = vcvt.f32.s32 %v4400_v49  ;;  %v2622_v0 = vmax.f32 %v2574_v3, 0.0 }
 0x1a8   : > { %v1590_v31 = vmul.f32 %v1542_v2, %v5830_v45  ;;  %v1543_v54 = vmul.f32 %v1495_v59, %v5837_v24  ;;  %v4405_v59 = vcvt.f32.s32 %v4404_v19  ;;  %v4079_v19 = vadd.f32 -0.5, %v2388_v30 }
 0x1a9   : > { %v1588_v57 = vmul.f32 %v1540_v38, %v5833_v14  ;;  %v1541_v28 = vmul.f32 %v1493_v48, %v5841_v27  ;;  %v4077_v38 = vadd.f32 -0.5, %v2386_v1  ;;  %v1446_v48 = vmul.f32 0.5, %v5830_v45 }
 0x1aa   : > { %v1638_v33 = vadd.f32 %v1590_v31, %v5830_v45  ;;  %v1591_v44 = vmul.f32 %v1543_v54, %v5837_v24  ;;  %v1444_v31 = vmul.f32 0.5, %v5833_v14  ;;  %v1447_v54 = vmul.f32 0.5, %v5837_v24 }
 0x1ab   : > { %v1589_v13 = vmul.f32 %v1541_v28, %v5841_v27  ;;  %v1636_v22 = vadd.f32 %v1588_v57, %v5833_v14  ;;  %2823 = vperm.xlu0 %4467, %v4393_v39   ;;  %v2670_v57 = vmin.f32 %v2622_v0, 14.0  ;;  %v1445_v45 = vmul.f32 0.5, %v5841_v27 }
 0x1ac   : > { %v1686_v55 = vmul.f32 0.7978846, %v1638_v33  ;;  %v1639_v62 = vadd.f32 %v1591_v44, %v5837_v24  ;;  %v2624_v44 = vmax.f32 %v2576_v23, 0.0  ;;  %v4125_v24 = vadd.f32 -0.5, %v4077_v38 }
 0x1ad   : > { %v1637_v56 = vadd.f32 %v1589_v13, %v5841_v27  ;;  %v1684_v50 = vmul.f32 0.7978846, %v1636_v22  ;;  %v4127_v38 = vadd.f32 -0.5, %v4079_v19 }
 0x1ae   : > { %4579 = vtanh.f32 %v1686_v55  ;;  %v1687_v20 = vmul.f32 0.7978846, %v1639_v62  ;;  %v2672_v37 = vmin.f32 %v2624_v44, 14.0 }
 0x1af   : > { %v1685_v60 = vmul.f32 0.7978846, %v1637_v56  ;;  %4581 = vtanh.f32 %v1684_v50  ;;  %2829 = vperm.xlu0 %4467, %v4397_v51   ;;  %v4408_v51 = vtrunc.f32 %v2670_v57 }
 0x1b0   : > { %4583 = vtanh.f32 %v1687_v20  ;;  %v4412_v1 = vtrunc.f32 %v2672_v37 }
 0x1b1   : > { %v4208_v8 = vpop.f32.mrb[4].mxu0  ;;  %4585 = vtanh.f32 %v1685_v60  ;;  %v4409_v61 = vcvt.f32.s32 %v4408_v51 }
 0x1b2   : > { %v5861_v9 = vadd.f32 %v4208_v8, %v5826_v21  ;;  %v1269_v5 = vpop.f32.mrb[5].mxu0  ;;  %v4413_v0 = vcvt.f32.s32 %v4412_v1 }
 0x1b3   : > { %v5865_v11 = vadd.f32 %v5826_v21, %v1269_v5  ;;  %v4209_v15 = vpop.f32.mrb[6].mxu0  ;;  %2835 = vperm.xlu0 %4467, %v4401_v18   ;;  %v2578_v18 = vceil.f32 %v4125_v24 }
 0x1b4   : > { %v1498_v12 = vmul.f32 0.044715, %v5861_v9  ;;  %v5869_v6 = vadd.f32 %v4209_v15, %v5826_v21  ;;  %v1272_v26 = vpop.f32.mrb[7].mxu0 }
 0x1b5   : > { %v1496_v58 = vmul.f32 0.044715, %v5865_v11  ;;  %v5873_v2 = vadd.f32 %v5826_v21, %v1272_v26 }
 0x1b6   : > { %v1546_v39 = vmul.f32 %v1498_v12, %v5861_v9  ;;  %v1499_v63 = vmul.f32 0.044715, %v5869_v6  ;;  %v2390_v12 = vld [vmem:[%s5570_s11 + $0x178] sm:$0xff] }
 0x1b7   : > { %v1497_v17 = vmul.f32 0.044715, %v5873_v2  ;;  %v1544_v53 = vmul.f32 %v1496_v58, %v5865_v11  ;;  %2841 = vperm.xlu0 %4467, %v4405_v59   ;;  %v2626_v59 = vmax.f32 %v2578_v18, 0.0 }
 0x1b8   : > { %v4580_v28 = vpop.eup %4579  ;;  %v1594_v10 = vmul.f32 %v1546_v39, %v5861_v9  ;;  %v1547_v33 = vmul.f32 %v1499_v63, %v5869_v6  ;;  %v4081_v63 = vadd.f32 -0.5, %v2390_v12 }
 0x1b9   : > { %v4582_v47 = vpop.eup %4581  ;;  %v1782_v13 = vadd.f32 1.0, %v4580_v28  ;;  %v1545_v22 = vmul.f32 %v1497_v17, %v5873_v2  ;;  %v1592_v14 = vmul.f32 %v1544_v53, %v5865_v11  ;;  %v2674_v53 = vmin.f32 %v2626_v59, 14.0 }
 0x1ba   : > { %v4584_v41 = vpop.eup %4583  ;;  %v1595_v32 = vmul.f32 %v1547_v33, %v5869_v6  ;;  %v1780_v55 = vadd.f32 1.0, %v4582_v47  ;;  %v1642_v62 = vadd.f32 %v1594_v10, %v5861_v9  ;;  %v1450_v10 = vmul.f32 0.5, %v5861_v9 }
 0x1bb   : > { %v4586_v56 = vpop.eup %4585  ;;  %v1783_v50 = vadd.f32 1.0, %v4584_v41  ;;  %v1593_v27 = vmul.f32 %v1545_v22, %v5873_v2  ;;  %v1640_v35 = vadd.f32 %v1592_v14, %v5865_v11  ;;  %v1830_v20 = vmul.f32 %v1782_v13, %v1446_v48  ;;  %2847 = vperm.xlu0 %4467, %v4409_v61  }
 0x1bc   : > { %v1781_v46 = vadd.f32 1.0, %v4586_v56  ;;  %v1643_v36 = vadd.f32 %v1595_v32, %v5869_v6  ;;  %v1690_v34 = vmul.f32 0.7978846, %v1642_v62  ;;  %v1828_v60 = vmul.f32 %v1780_v55, %v1444_v31 }
 0x1bd   : > { %v1831_v52 = vmul.f32 %v1783_v50, %v1447_v54  ;;  %v1641_v42 = vadd.f32 %v1593_v27, %v5873_v2  ;;  %v1688_v43 = vmul.f32 0.7978846, %v1640_v35  ;;  %v2580_v33 = vceil.f32 %v4127_v38 }
 0x1be   : > { %v1829_v8 = vmul.f32 %v1781_v46, %v1445_v45  ;;  %v1691_v49 = vmul.f32 0.7978846, %v1643_v36  ;;  %4587 = vtanh.f32 %v1690_v34  ;;  %v1448_v47 = vmul.f32 0.5, %v5865_v11 }
 0x1bf   : > { %v1877_v5 = vpack.c.bf16 %v1831_v52, %v1830_v20  ;;  %v1689_v3 = vmul.f32 0.7978846, %v1641_v42  ;;  %4589 = vtanh.f32 %v1688_v43  ;;  %2853 = vperm.xlu0 %4467, %v4413_v0   ;;  %v1451_v13 = vmul.f32 0.5, %v5869_v6 }
 0x1c0   : > { %v1876_v15 = vpack.c.bf16 %v1829_v8, %v1828_v60  ;;  %4591 = vtanh.f32 %v1691_v49  ;;  %v4416_v24 = vtrunc.f32 %v2674_v53  ;;  %v4129_v41 = vadd.f32 -0.5, %v4081_v63 }
 0x1c1   : > { %v4212_v26 = vpop.f32.mrb[8].mxu0  ;;  %4593 = vtanh.f32 %v1689_v3  ;;  %v1449_v62 = vmul.f32 0.5, %v5873_v2  ;;  %v2628_v51 = vmax.f32 %v2580_v33, 0.0 }
 0x1c2   : > { %v5896_v23 = vadd.f32 %v4212_v26, %v5826_v21  ;;  %v1285_v58 = vpop.f32.mrb[9].mxu0  ;;  %4266 = vmatprep.mubr.bf16.mxu0 %v1876_v15  ;;  %v4417_v27 = vcvt.f32.s32 %v4416_v24  ;;  %v2582_v42 = vceil.f32 %v4129_v41 }
 0x1c3   : > { %v5899_v48 = vadd.f32 %v5826_v21, %v1285_v58  ;;  %v4213_v39 = vpop.f32.mrb[10].mxu0  ;;  %4267 = vmatmul.mubr.bf16.vlgmr.msra.gmra.mrb[48].mxu0 %v1877_v5  ;;  %v2676_v36 = vmin.f32 %v2628_v51, 14.0 }
 0x1c4   : > { %v1502_v31 = vmul.f32 0.044715, %v5896_v23  ;;  %v5903_v54 = vadd.f32 %v4213_v39, %v5826_v21  ;;  %v1288_v17 = vpop.f32.mrb[11].mxu0  ;;  %2859 = vperm.xlu0 %4467, %v4417_v27   ;;  %v2630_v59 = vmax.f32 %v2582_v42, 0.0 }
 0x1c5   : > { %v1500_v57 = vmul.f32 0.044715, %v5899_v48  ;;  %v5907_v28 = vadd.f32 %v5826_v21, %v1288_v17  ;;  %v4420_v19 = vtrunc.f32 %v2676_v36 }
 0x1c6   : > { %v1550_v45 = vmul.f32 %v1502_v31, %v5896_v23  ;;  %v1503_v44 = vmul.f32 0.044715, %v5903_v54  ;;  %v2678_v31 = vmin.f32 %v2630_v59, 14.0 }
 0x1c7   : > { %v1548_v22 = vmul.f32 %v1500_v57, %v5899_v48  ;;  %v1501_v14 = vmul.f32 0.044715, %v5907_v28  ;;  %v4421_v58 = vcvt.f32.s32 %v4420_v19 }
 0x1c8   : > { %v4588_v32 = vpop.eup %4587  ;;  %v1598_v55 = vmul.f32 %v1550_v45, %v5896_v23  ;;  %v1551_v9 = vmul.f32 %v1503_v44, %v5903_v54  ;;  %v4424_v45 = vtrunc.f32 %v2678_v31 }
 0x1c9   : > { %v4590_v56 = vpop.eup %4589  ;;  %v1596_v50 = vmul.f32 %v1548_v22, %v5899_v48  ;;  %v1549_v11 = vmul.f32 %v1501_v14, %v5907_v28  ;;  %v1786_v6 = vadd.f32 1.0, %v4588_v32  ;;  %2865 = vperm.xlu0 %4467, %v4421_v58  }
 0x1ca   : > { %v4592_v35 = vpop.eup %4591  ;;  %v1599_v37 = vmul.f32 %v1551_v9, %v5903_v54  ;;  %v1784_v46 = vadd.f32 1.0, %v4590_v56  ;;  %v1646_v20 = vadd.f32 %v1598_v55, %v5896_v23  ;;  %v4425_v14 = vcvt.f32.s32 %v4424_v45 }
 0x1cb   : > { %v4594_v34 = vpop.eup %4593  ;;  %v1597_v60 = vmul.f32 %v1549_v11, %v5907_v28  ;;  %v1787_v52 = vadd.f32 1.0, %v4592_v35  ;;  %v1644_v2 = vadd.f32 %v1596_v50, %v5899_v48  ;;  %v1834_v30 = vmul.f32 %v1786_v6, %v1450_v10 }
 0x1cc   : > { %v1785_v43 = vadd.f32 1.0, %v4594_v34  ;;  %v1647_v8 = vadd.f32 %v1599_v37, %v5903_v54  ;;  %v1694_v49 = vmul.f32 0.7978846, %v1646_v20  ;;  %v1832_v61 = vmul.f32 %v1784_v46, %v1448_v47 }
 0x1cd   : > { %v1835_v5 = vmul.f32 %v1787_v52, %v1451_v13  ;;  %v1645_v3 = vadd.f32 %v1597_v60, %v5907_v28  ;;  %v1692_v1 = vmul.f32 0.7978846, %v1644_v2  ;;  %2871 = vperm.xlu0 %4467, %v4425_v14   ;;  %v1454_v50 = vmul.f32 0.5, %v5896_v23 }
 0x1ce   : > { %v1833_v15 = vmul.f32 %v1785_v43, %v1449_v62  ;;  %v1695_v18 = vmul.f32 0.7978846, %v1647_v8  ;;  %4595 = vtanh.f32 %v1694_v49  ;;  %v1452_v35 = vmul.f32 0.5, %v5899_v48 }
 0x1cf   : > { %v1879_v12 = vpack.c.bf16 %v1835_v5, %v1834_v30  ;;  %v1693_v26 = vmul.f32 0.7978846, %v1645_v3  ;;  %4597 = vtanh.f32 %v1692_v1  ;;  %v1455_v34 = vmul.f32 0.5, %v5903_v54 }
 0x1d0   : > { %v1878_v0 = vpack.c.bf16 %v1833_v15, %v1832_v61  ;;  %4599 = vtanh.f32 %v1695_v18  ;;  %v1453_v2 = vmul.f32 0.5, %v5907_v28 }
 0x1d1   : > { %v4216_v38 = vpop.f32.mrb[12].mxu0  ;;  %4601 = vtanh.f32 %v1693_v26 }
 0x1d2   : > { %v5928_v39 = vadd.f32 %v4216_v38, %v5826_v21  ;;  %v1301_v63 = vpop.f32.mrb[13].mxu0  ;;  %4270 = vmatprep.mubr.bf16.mxu1 %v1878_v0 }
 0x1d3   : > { %v5931_v17 = vadd.f32 %v5826_v21, %v1301_v63  ;;  %v4217_v53 = vpop.f32.mrb[14].mxu0  ;;  %4271 = vmatmul.mubr.bf16.vlgmr.msra.gmra.mrb[0].mxu1 %v1879_v12 }
 0x1d4   : > { %v1506_v57 = vmul.f32 0.044715, %v5928_v39  ;;  %v5935_v10 = vadd.f32 %v4217_v53, %v5826_v21  ;;  %v1304_v33 = vpop.f32.mrb[15].mxu0 }
 0x1d5   : > { %v1504_v44 = vmul.f32 0.044715, %v5931_v17  ;;  %v5939_v47 = vadd.f32 %v5826_v21, %v1304_v33 }
 0x1d6   : > { %v1554_v13 = vmul.f32 %v1506_v57, %v5928_v39  ;;  %v1507_v22 = vmul.f32 0.044715, %v5935_v10 }
 0x1d7   : > { %v1552_v24 = vmul.f32 %v1504_v44, %v5931_v17  ;;  %v1505_v41 = vmul.f32 0.044715, %v5939_v47 }
 0x1d8   : > { %v4596_v32 = vpop.eup %4595  ;;  %v1602_v55 = vmul.f32 %v1554_v13, %v5928_v39  ;;  %v1555_v9 = vmul.f32 %v1507_v22, %v5935_v10 }
 0x1d9   : > { %v4598_v62 = vpop.eup %4597  ;;  %v1600_v51 = vmul.f32 %v1552_v24, %v5931_v17  ;;  %v1553_v56 = vmul.f32 %v1505_v41, %v5939_v47  ;;  %v1790_v11 = vadd.f32 1.0, %v4596_v32  ;;  %v1458_v41 = vmul.f32 0.5, %v5928_v39 }
 0x1da   : > { %v4600_v6 = vpop.eup %4599  ;;  %v1603_v27 = vmul.f32 %v1555_v9, %v5935_v10  ;;  %v1788_v37 = vadd.f32 1.0, %v4598_v62  ;;  %v1650_v46 = vadd.f32 %v1602_v55, %v5928_v39  ;;  %v1456_v62 = vmul.f32 0.5, %v5931_v17 }
 0x1db   : > { %v4602_v20 = vpop.eup %4601  ;;  %v1601_v36 = vmul.f32 %v1553_v56, %v5939_v47  ;;  %v1791_v60 = vadd.f32 1.0, %v4600_v6  ;;  %v1648_v52 = vadd.f32 %v1600_v51, %v5931_v17  ;;  %v1838_v30 = vmul.f32 %v1790_v11, %v1454_v50 }
 0x1dc   : > { %v1789_v23 = vadd.f32 1.0, %v4602_v20  ;;  %v1651_v42 = vadd.f32 %v1603_v27, %v5935_v10  ;;  %v1698_v43 = vmul.f32 0.7978846, %v1650_v46  ;;  %v1836_v61 = vmul.f32 %v1788_v37, %v1452_v35 }
 0x1dd   : > { %v1839_v8 = vmul.f32 %v1791_v60, %v1455_v34  ;;  %v1649_v48 = vadd.f32 %v1601_v36, %v5939_v47  ;;  %v1696_v49 = vmul.f32 0.7978846, %v1648_v52  ;;  %v1459_v6 = vmul.f32 0.5, %v5935_v10 }
 0x1de   : > { %v1837_v5 = vmul.f32 %v1789_v23, %v1453_v2  ;;  %v1699_v3 = vmul.f32 0.7978846, %v1651_v42  ;;  %4603 = vtanh.f32 %v1698_v43  ;;  %v1457_v37 = vmul.f32 0.5, %v5939_v47 }
 0x1df   : > { %v1881_v1 = vpack.c.bf16 %v1839_v8, %v1838_v30  ;;  %v1697_v54 = vmul.f32 0.7978846, %v1649_v48  ;;  %4605 = vtanh.f32 %v1696_v49 }
 0x1e0   : > { %v1880_v15 = vpack.c.bf16 %v1837_v5, %v1836_v61  ;;  %4607 = vtanh.f32 %v1699_v3 }
 0x1e1   : > { %v4220_v18 = vpop.f32.mrb[16].mxu0  ;;  %4609 = vtanh.f32 %v1697_v54 }
 0x1e2   : > { %v5960_v28 = vadd.f32 %v4220_v18, %v5826_v21  ;;  %v1317_v19 = vpop.f32.mrb[17].mxu0  ;;  %4274 = vmatprep.mubr.bf16.mxu1 %v1880_v15 }
 0x1e3   : > { %v5963_v12 = vadd.f32 %v5826_v21, %v1317_v19  ;;  %v4221_v26 = vpop.f32.mrb[18].mxu0  ;;  %4275 = vmatmul.mubr.bf16.gmra.mrb[4].mxu1 %v1881_v1 }
 0x1e4   : > { %v1510_v0 = vmul.f32 0.044715, %v5960_v28  ;;  %v5967_v58 = vadd.f32 %v4221_v26, %v5826_v21  ;;  %v1320_v59 = vpop.f32.mrb[19].mxu0 }
 0x1e5   : > { %v1508_v38 = vmul.f32 0.044715, %v5963_v12  ;;  %v5971_v63 = vadd.f32 %v5826_v21, %v1320_v59 }
 0x1e6   : > { %v1558_v31 = vmul.f32 %v1510_v0, %v5960_v28  ;;  %v1511_v53 = vmul.f32 0.044715, %v5967_v58 }
 0x1e7   : > { %v1556_v57 = vmul.f32 %v1508_v38, %v5963_v12  ;;  %v1509_v33 = vmul.f32 0.044715, %v5971_v63 }
 0x1e8   : > { %v4604_v45 = vpop.eup %4603  ;;  %v1606_v44 = vmul.f32 %v1558_v31, %v5960_v28  ;;  %v1559_v13 = vmul.f32 %v1511_v53, %v5967_v58 }
 0x1e9   : > { %v4606_v22 = vpop.eup %4605  ;;  %v1604_v14 = vmul.f32 %v1556_v57, %v5963_v12  ;;  %v1557_v24 = vmul.f32 %v1509_v33, %v5971_v63  ;;  %v1794_v32 = vadd.f32 1.0, %v4604_v45  ;;  %v1462_v33 = vmul.f32 0.5, %v5960_v28 }
 0x1ea   : > { %v4608_v55 = vpop.eup %4607  ;;  %v1607_v9 = vmul.f32 %v1559_v13, %v5967_v58  ;;  %v1792_v51 = vadd.f32 1.0, %v4606_v22  ;;  %v1654_v56 = vadd.f32 %v1606_v44, %v5960_v28  ;;  %v1460_v22 = vmul.f32 0.5, %v5963_v12 }
 0x1eb   : > { %v4610_v50 = vpop.eup %4609  ;;  %v1605_v11 = vmul.f32 %v1557_v24, %v5971_v63  ;;  %v1795_v27 = vadd.f32 1.0, %v4608_v55  ;;  %v1652_v35 = vadd.f32 %v1604_v14, %v5963_v12  ;;  %v1842_v36 = vmul.f32 %v1794_v32, %v1458_v41 }
 0x1ec   : > { %v1793_v39 = vadd.f32 1.0, %v4610_v50  ;;  %v1655_v46 = vadd.f32 %v1607_v9, %v5967_v58  ;;  %v1702_v20 = vmul.f32 0.7978846, %v1654_v56  ;;  %v1840_v52 = vmul.f32 %v1792_v51, %v1456_v62 }
 0x1ed   : > { %v1843_v34 = vmul.f32 %v1795_v27, %v1459_v6  ;;  %v1653_v17 = vadd.f32 %v1605_v11, %v5971_v63  ;;  %v1700_v60 = vmul.f32 0.7978846, %v1652_v35  ;;  %v1463_v55 = vmul.f32 0.5, %v5967_v58 }
 0x1ee   : > { %v1841_v2 = vmul.f32 %v1793_v39, %v1457_v37  ;;  %v1703_v23 = vmul.f32 0.7978846, %v1655_v46  ;;  %4611 = vtanh.f32 %v1702_v20  ;;  %v1461_v51 = vmul.f32 0.5, %v5971_v63 }
 0x1ef   : > { %v1883_v42 = vpack.c.bf16 %v1843_v34, %v1842_v36  ;;  %v1701_v10 = vmul.f32 0.7978846, %v1653_v17  ;;  %4613 = vtanh.f32 %v1700_v60 }
 0x1f0   : > { %v1882_v43 = vpack.c.bf16 %v1841_v2, %v1840_v52  ;;  %4615 = vtanh.f32 %v1703_v23 }
 0x1f1   : > { %v4224_v30 = vpop.f32.mrb[20].mxu0  ;;  %4617 = vtanh.f32 %v1701_v10 }
 0x1f2   : > { %v5992_v47 = vadd.f32 %v4224_v30, %v5826_v21  ;;  %v1333_v8 = vpop.f32.mrb[21].mxu0  ;;  %4278 = vmatprep.mubr.bf16.mxu1 %v1882_v43 }
 0x1f3   : > { %v5995_v48 = vadd.f32 %v5826_v21, %v1333_v8  ;;  %v4225_v49 = vpop.f32.mrb[22].mxu0  ;;  %4279 = vmatmul.mubr.bf16.gmra.mrb[8].mxu1 %v1883_v42 }
 0x1f4   : > { %v1514_v61 = vmul.f32 0.044715, %v5992_v47  ;;  %v5999_v5 = vadd.f32 %v4225_v49, %v5826_v21  ;;  %v1336_v3 = vpop.f32.mrb[23].mxu0 }
 0x1f5   : > { %v1512_v1 = vmul.f32 0.044715, %v5995_v48  ;;  %v6003_v54 = vadd.f32 %v5826_v21, %v1336_v3 }
 0x1f6   : > { %v1562_v15 = vmul.f32 %v1514_v61, %v5992_v47  ;;  %v1515_v18 = vmul.f32 0.044715, %v5999_v5 }
 0x1f7   : > { %v1560_v19 = vmul.f32 %v1512_v1, %v5995_v48  ;;  %v1513_v26 = vmul.f32 0.044715, %v6003_v54 }
 0x1f8   : > { %v4612_v0 = vpop.eup %4611  ;;  %v1610_v59 = vmul.f32 %v1562_v15, %v5992_v47  ;;  %v1563_v38 = vmul.f32 %v1515_v18, %v5999_v5 }
 0x1f9   : > { %v4614_v31 = vpop.eup %4613  ;;  %v1608_v53 = vmul.f32 %v1560_v19, %v5995_v48  ;;  %v1561_v57 = vmul.f32 %v1513_v26, %v6003_v54  ;;  %v1798_v45 = vadd.f32 1.0, %v4612_v0  ;;  %v1466_v26 = vmul.f32 0.5, %v5992_v47 }
 0x1fa   : > { %v4616_v44 = vpop.eup %4615  ;;  %v1611_v13 = vmul.f32 %v1563_v38, %v5999_v5  ;;  %v1796_v14 = vadd.f32 1.0, %v4614_v31  ;;  %v1658_v24 = vadd.f32 %v1610_v59, %v5992_v47  ;;  %v1464_v31 = vmul.f32 0.5, %v5995_v48 }
 0x1fb   : > { %v4618_v41 = vpop.eup %4617  ;;  %v1609_v32 = vmul.f32 %v1561_v57, %v6003_v54  ;;  %v1799_v9 = vadd.f32 1.0, %v4616_v44  ;;  %v1656_v62 = vadd.f32 %v1608_v53, %v5995_v48  ;;  %v1846_v11 = vmul.f32 %v1798_v45, %v1462_v33 }
 0x1fc   : > { %v1797_v28 = vadd.f32 1.0, %v4618_v41  ;;  %v1659_v56 = vadd.f32 %v1611_v13, %v5999_v5  ;;  %v1706_v50 = vmul.f32 0.7978846, %v1658_v24  ;;  %v1844_v35 = vmul.f32 %v1796_v14, %v1460_v22 }
 0x1fd   : > { %v1847_v6 = vmul.f32 %v1799_v9, %v1463_v55  ;;  %v1657_v12 = vadd.f32 %v1609_v32, %v6003_v54  ;;  %v1704_v27 = vmul.f32 0.7978846, %v1656_v62  ;;  %v1467_v44 = vmul.f32 0.5, %v5999_v5 }
 0x1fe   : > { %v1845_v37 = vmul.f32 %v1797_v28, %v1461_v51  ;;  %v1707_v39 = vmul.f32 0.7978846, %v1659_v56  ;;  %4619 = vtanh.f32 %v1706_v50  ;;  %v1465_v14 = vmul.f32 0.5, %v6003_v54 }
 0x1ff   : > { %v1885_v46 = vpack.c.bf16 %v1847_v6, %v1846_v11  ;;  %v1705_v58 = vmul.f32 0.7978846, %v1657_v12  ;;  %4621 = vtanh.f32 %v1704_v27 }
 0x200   : > { %v1884_v20 = vpack.c.bf16 %v1845_v37, %v1844_v35  ;;  %4623 = vtanh.f32 %v1707_v39 }
 0x201   : > { %v4228_v36 = vpop.f32.mrb[24].mxu0  ;;  %4625 = vtanh.f32 %v1705_v58 }
 0x202   : > { %v6024_v63 = vadd.f32 %v4228_v36, %v5826_v21  ;;  %v1349_v34 = vpop.f32.mrb[25].mxu0  ;;  %4282 = vmatprep.mubr.bf16.mxu1 %v1884_v20 }
 0x203   : > { %v6027_v17 = vadd.f32 %v5826_v21, %v1349_v34  ;;  %v4229_v60 = vpop.f32.mrb[26].mxu0  ;;  %4283 = vmatmul.mubr.bf16.gmra.mrb[12].mxu1 %v1885_v46 }
 0x204   : > { %v1518_v52 = vmul.f32 0.044715, %v6024_v63  ;;  %v6031_v2 = vadd.f32 %v4229_v60, %v5826_v21  ;;  %v1352_v23 = vpop.f32.mrb[27].mxu0 }
 0x205   : > { %v1516_v42 = vmul.f32 0.044715, %v6027_v17  ;;  %v6035_v10 = vadd.f32 %v5826_v21, %v1352_v23 }
 0x206   : > { %v1566_v43 = vmul.f32 %v1518_v52, %v6024_v63  ;;  %v1519_v30 = vmul.f32 0.044715, %v6031_v2 }
 0x207   : > { %v1564_v8 = vmul.f32 %v1516_v42, %v6027_v17  ;;  %v1517_v49 = vmul.f32 0.044715, %v6035_v10 }
 0x208   : > { %v4620_v61 = vpop.eup %4619  ;;  %v1614_v3 = vmul.f32 %v1566_v43, %v6024_v63  ;;  %v1567_v1 = vmul.f32 %v1519_v30, %v6031_v2 }
 0x209   : > { %v4622_v15 = vpop.eup %4621  ;;  %v1612_v18 = vmul.f32 %v1564_v8, %v6027_v17  ;;  %v1565_v19 = vmul.f32 %v1517_v49, %v6035_v10  ;;  %v1802_v0 = vadd.f32 1.0, %v4620_v61  ;;  %v1470_v61 = vmul.f32 0.5, %v6024_v63 }
 0x20a   : > { %v4624_v59 = vpop.eup %4623  ;;  %v1615_v38 = vmul.f32 %v1567_v1, %v6031_v2  ;;  %v1800_v53 = vadd.f32 1.0, %v4622_v15  ;;  %v1662_v57 = vadd.f32 %v1614_v3, %v6024_v63  ;;  %v1469_v63 = vmul.f32 0.5, %v6035_v10 }
 0x20b   : > { %v4626_v33 = vpop.eup %4625  ;;  %v1613_v45 = vmul.f32 %v1565_v19, %v6035_v10  ;;  %v1803_v13 = vadd.f32 1.0, %v4624_v59  ;;  %v1660_v22 = vadd.f32 %v1612_v18, %v6027_v17  ;;  %v1850_v32 = vmul.f32 %v1802_v0, %v1466_v26 }
 0x20c   : > { %v1801_v47 = vadd.f32 1.0, %v4626_v33  ;;  %v1663_v24 = vadd.f32 %v1615_v38, %v6031_v2  ;;  %v1710_v41 = vmul.f32 0.7978846, %v1662_v57  ;;  %v1848_v62 = vmul.f32 %v1800_v53, %v1464_v31 }
 0x20d   : > { %v1851_v55 = vmul.f32 %v1803_v13, %v1467_v44  ;;  %v1661_v48 = vadd.f32 %v1613_v45, %v6035_v10  ;;  %v1708_v9 = vmul.f32 0.7978846, %v1660_v22  ;;  %v1468_v19 = vmul.f32 0.5, %v6027_v17 }
 0x20e   : > { %v1849_v51 = vmul.f32 %v1801_v47, %v1465_v14  ;;  %v1711_v28 = vmul.f32 0.7978846, %v1663_v24  ;;  %4627 = vtanh.f32 %v1710_v41  ;;  %v1471_v38 = vmul.f32 0.5, %v6031_v2 }
 0x20f   : > { %v1887_v56 = vpack.c.bf16 %v1851_v55, %v1850_v32  ;;  %v1709_v5 = vmul.f32 0.7978846, %v1661_v48  ;;  %4629 = vtanh.f32 %v1708_v9 }
 0x210   : > { %v1886_v11 = vpack.c.bf16 %v1849_v51, %v1848_v62  ;;  %4631 = vtanh.f32 %v1711_v28 }
 0x211   : > { %v4232_v50 = vpop.f32.mrb[28].mxu0  ;;  %4633 = vtanh.f32 %v1709_v5 }
 0x212   : > { %v6056_v54 = vadd.f32 %v4232_v50, %v5826_v21  ;;  %v1365_v6 = vpop.f32.mrb[29].mxu0  ;;  %4286 = vmatprep.mubr.bf16.mxu1 %v1886_v11 }
 0x213   : > { %v6059_v12 = vadd.f32 %v5826_v21, %v1365_v6  ;;  %v4233_v27 = vpop.f32.mrb[30].mxu0  ;;  %4287 = vmatmul.mubr.bf16.gmra.mrb[16].mxu1 %v1887_v56 }
 0x214   : > { %v1522_v35 = vmul.f32 0.044715, %v6056_v54  ;;  %v6063_v37 = vadd.f32 %v4233_v27, %v5826_v21  ;;  %v1368_v39 = vpop.f32.mrb[31].mxu0 }
 0x215   : > { %v1520_v46 = vmul.f32 0.044715, %v6059_v12  ;;  %v6067_v58 = vadd.f32 %v5826_v21, %v1368_v39 }
 0x216   : > { %v1570_v20 = vmul.f32 %v1522_v35, %v6056_v54  ;;  %v1523_v36 = vmul.f32 0.044715, %v6063_v37 }
 0x217   : > { %v1568_v34 = vmul.f32 %v1520_v46, %v6059_v12  ;;  %v1521_v60 = vmul.f32 0.044715, %v6067_v58 }
 0x218   : > { %v1618_v52 = vmul.f32 %v1570_v20, %v6056_v54  ;;  %v1571_v23 = vmul.f32 %v1523_v36, %v6063_v37  ;;  %v4628_v42 = vpop.eup %4627 }
 0x219   : > { %v1616_v43 = vmul.f32 %v1568_v34, %v6059_v12  ;;  %v1569_v30 = vmul.f32 %v1521_v60, %v6067_v58  ;;  %v4630_v8 = vpop.eup %4629  ;;  %v1806_v3 = vadd.f32 1.0, %v4628_v42  ;;  %v1472_v42 = vmul.f32 0.5, %v6059_v12 }
 0x21a   : > { %v1619_v49 = vmul.f32 %v1571_v23, %v6063_v37  ;;  %v1666_v1 = vadd.f32 %v1618_v52, %v6056_v54  ;;  %v4632_v15 = vpop.eup %4631  ;;  %v1804_v26 = vadd.f32 1.0, %v4630_v8 }
 0x21b   : > { %v1617_v18 = vmul.f32 %v1569_v30, %v6067_v58  ;;  %v1664_v0 = vadd.f32 %v1616_v43, %v6059_v12  ;;  %v4634_v59 = vpop.eup %4633  ;;  %v1807_v31 = vadd.f32 1.0, %v4632_v15  ;;  %v1854_v13 = vmul.f32 %v1806_v3, %v1470_v61 }
 0x21c   : > { %v1667_v53 = vadd.f32 %v1619_v49, %v6063_v37  ;;  %v1714_v57 = vmul.f32 0.7978846, %v1666_v1  ;;  %v1805_v33 = vadd.f32 1.0, %v4634_v59  ;;  %v1852_v17 = vmul.f32 %v1804_v26, %v1468_v19 }
 0x21d   : > { %v1665_v45 = vadd.f32 %v1617_v18, %v6067_v58  ;;  %v1712_v44 = vmul.f32 0.7978846, %v1664_v0  ;;  %v1855_v22 = vmul.f32 %v1807_v31, %v1471_v38  ;;  %v1475_v61 = vmul.f32 0.5, %v6063_v37 }
 0x21e   : > { %v1715_v14 = vmul.f32 0.7978846, %v1667_v53  ;;  %4635 = vtanh.f32 %v1714_v57  ;;  %v1853_v47 = vmul.f32 %v1805_v33, %v1469_v63  ;;  %v1473_v15 = vmul.f32 0.5, %v6067_v58  ;;  %v6122_v58 = vld [vmem:[%s7508_s3] ss:$0 sm:$0xff] }
 0x21f   : > { %v1713_v24 = vmul.f32 0.7978846, %v1665_v45  ;;  %4637 = vtanh.f32 %v1712_v44  ;;  %v1889_v41 = vpack.c.bf16 %v1855_v22, %v1854_v13 }
 0x220   : > { %4639 = vtanh.f32 %v1715_v14  ;;  %v1888_v32 = vpack.c.bf16 %v1853_v47, %v1852_v17 }
 0x221   : > { %v4236_v2 = vpop.f32.mrb[32].mxu0  ;;  %4641 = vtanh.f32 %v1713_v24 }
 0x222   : > { %v6088_v55 = vadd.f32 %v4236_v2, %v5826_v21  ;;  %v1381_v10 = vpop.f32.mrb[33].mxu0  ;;  %4290 = vmatprep.mubr.bf16.mxu1 %v1888_v32 }
 0x223   : > { %v6091_v48 = vadd.f32 %v5826_v21, %v1381_v10  ;;  %v4237_v9 = vpop.f32.mrb[34].mxu0  ;;  %4291 = vmatmul.mubr.bf16.gmra.mrb[20].mxu1 %v1889_v41 }
 0x224   : > { %v1526_v62 = vmul.f32 0.044715, %v6088_v55  ;;  %v6095_v51 = vadd.f32 %v4237_v9, %v5826_v21  ;;  %v1384_v28 = vpop.f32.mrb[35].mxu0 }
 0x225   : > { %v1524_v56 = vmul.f32 0.044715, %v6091_v48  ;;  %v6099_v5 = vadd.f32 %v5826_v21, %v1384_v28  ;;  %v1474_v21 = vmul.f32 0.5, %v6056_v54 }
 0x226   : > { %v1574_v50 = vmul.f32 %v1526_v62, %v6088_v55  ;;  %v1527_v11 = vmul.f32 0.044715, %v6095_v51 }
 0x227   : > { %v1572_v6 = vmul.f32 %v1524_v56, %v6091_v48  ;;  %v1525_v27 = vmul.f32 0.044715, %v6099_v5 }
 0x228   : > { %v4636_v35 = vpop.eup %4635  ;;  %v1622_v39 = vmul.f32 %v1574_v50, %v6088_v55  ;;  %v1575_v46 = vmul.f32 %v1527_v11, %v6095_v51 }
 0x229   : > { %v4638_v20 = vpop.eup %4637  ;;  %v1620_v36 = vmul.f32 %v1572_v6, %v6091_v48  ;;  %v1573_v34 = vmul.f32 %v1525_v27, %v6099_v5  ;;  %v1810_v60 = vadd.f32 1.0, %v4636_v35  ;;  %v1478_v27 = vmul.f32 0.5, %v6088_v55 }
 0x22a   : > { %v4640_v52 = vpop.eup %4639  ;;  %v1623_v23 = vmul.f32 %v1575_v46, %v6095_v51  ;;  %v1808_v43 = vadd.f32 1.0, %v4638_v20  ;;  %v1670_v30 = vadd.f32 %v1622_v39, %v6088_v55  ;;  %v1476_v20 = vmul.f32 0.5, %v6091_v48 }
 0x22b   : > { %v4642_v8 = vpop.eup %4641  ;;  %v1621_v49 = vmul.f32 %v1573_v34, %v6099_v5  ;;  %v1811_v3 = vadd.f32 1.0, %v4640_v52  ;;  %v1668_v1 = vadd.f32 %v1620_v36, %v6091_v48  ;;  %v1858_v26 = vmul.f32 %v1810_v60, %v1474_v21 }
 0x22c   : > { %v1809_v54 = vadd.f32 1.0, %v4642_v8  ;;  %v1671_v18 = vadd.f32 %v1623_v23, %v6095_v51  ;;  %v1718_v19 = vmul.f32 0.7978846, %v1670_v30  ;;  %v1856_v38 = vmul.f32 %v1808_v43, %v1472_v42 }
 0x22d   : > { %v1859_v0 = vmul.f32 %v1811_v3, %v1475_v61  ;;  %v1669_v12 = vadd.f32 %v1621_v49, %v6099_v5  ;;  %v1716_v59 = vmul.f32 0.7978846, %v1668_v1  ;;  %v1479_v52 = vmul.f32 0.5, %v6095_v51 }
 0x22e   : > { %v1857_v31 = vmul.f32 %v1809_v54, %v1473_v15  ;;  %v1719_v53 = vmul.f32 0.7978846, %v1671_v18  ;;  %4643 = vtanh.f32 %v1718_v19  ;;  %v1477_v43 = vmul.f32 0.5, %v6099_v5 }
 0x22f   : > { %v1891_v57 = vpack.c.bf16 %v1859_v0, %v1858_v26  ;;  %v1717_v37 = vmul.f32 0.7978846, %v1669_v12  ;;  %4645 = vtanh.f32 %v1716_v59 }
 0x230   : > { %v1890_v63 = vpack.c.bf16 %v1857_v31, %v1856_v38  ;;  %4647 = vtanh.f32 %v1719_v53 }
 0x231   : > { %v4240_v33 = vpop.f32.mrb[36].mxu0  ;;  %4649 = vtanh.f32 %v1717_v37 }
 0x232   : > { %v6125_v45 = vadd.f32 %v6122_v58, %v4240_v33  ;;  %v1397_v44 = vpop.f32.mrb[37].mxu0  ;;  %4294 = vmatprep.mubr.bf16.mxu1 %v1890_v63 }
 0x233   : > { %v6128_v13 = vadd.f32 %v6122_v58, %v1397_v44  ;;  %v4241_v22 = vpop.f32.mrb[38].mxu0  ;;  %4295 = vmatmul.mubr.bf16.gmra.mrb[24].mxu1 %v1891_v57 }
 0x234   : > { %v1530_v14 = vmul.f32 0.044715, %v6125_v45  ;;  %v6132_v17 = vadd.f32 %v6122_v58, %v4241_v22  ;;  %v1400_v47 = vpop.f32.mrb[39].mxu0 }
 0x235   : > { %v1528_v24 = vmul.f32 0.044715, %v6128_v13  ;;  %v6136_v41 = vadd.f32 %v6122_v58, %v1400_v47 }
 0x236   : > { %v1578_v2 = vmul.f32 %v1530_v14, %v6125_v45  ;;  %v1531_v32 = vmul.f32 0.044715, %v6132_v17 }
 0x237   : > { %v1576_v10 = vmul.f32 %v1528_v24, %v6128_v13  ;;  %v1529_v9 = vmul.f32 0.044715, %v6136_v41 }
 0x238   : > { %v4644_v62 = vpop.eup %4643  ;;  %v1626_v28 = vmul.f32 %v1578_v2, %v6125_v45  ;;  %v1579_v56 = vmul.f32 %v1531_v32, %v6132_v17 }
 0x239   : > { %v4646_v50 = vpop.eup %4645  ;;  %v1624_v11 = vmul.f32 %v1576_v10, %v6128_v13  ;;  %v1577_v6 = vmul.f32 %v1529_v9, %v6136_v41  ;;  %v1814_v35 = vadd.f32 1.0, %v4644_v62  ;;  %v1482_v9 = vmul.f32 0.5, %v6125_v45 }
 0x23a   : > { %v4648_v39 = vpop.eup %4647  ;;  %v1627_v46 = vmul.f32 %v1579_v56, %v6132_v17  ;;  %v1812_v36 = vadd.f32 1.0, %v4646_v50  ;;  %v1674_v34 = vadd.f32 %v1626_v28, %v6125_v45  ;;  %v1480_v50 = vmul.f32 0.5, %v6128_v13 }
 0x23b   : > { %v4650_v21 = vpop.eup %4649  ;;  %v1625_v60 = vmul.f32 %v1577_v6, %v6136_v41  ;;  %v1815_v23 = vadd.f32 1.0, %v4648_v39  ;;  %v1672_v42 = vadd.f32 %v1624_v11, %v6128_v13  ;;  %v1862_v49 = vmul.f32 %v1814_v35, %v1478_v27 }
 0x23c   : > { %v1813_v55 = vadd.f32 1.0, %v4650_v21  ;;  %v1675_v30 = vadd.f32 %v1627_v46, %v6132_v17  ;;  %v1722_v8 = vmul.f32 0.7978846, %v1674_v34  ;;  %v1860_v1 = vmul.f32 %v1812_v36, %v1476_v20 }
 0x23d   : > { %v1863_v61 = vmul.f32 %v1815_v23, %v1479_v52  ;;  %v1673_v48 = vadd.f32 %v1625_v60, %v6136_v41  ;;  %v1720_v3 = vmul.f32 0.7978846, %v1672_v42  ;;  %v1483_v39 = vmul.f32 0.5, %v6132_v17 }
 0x23e   : > { %v1861_v15 = vmul.f32 %v1813_v55, %v1477_v43  ;;  %v1723_v54 = vmul.f32 0.7978846, %v1675_v30  ;;  %4651 = vtanh.f32 %v1722_v8  ;;  %v1481_v36 = vmul.f32 0.5, %v6136_v41 }
 0x23f   : > { %v1893_v18 = vpack.c.bf16 %v1863_v61, %v1862_v49  ;;  %v1721_v51 = vmul.f32 0.7978846, %v1673_v48  ;;  %4653 = vtanh.f32 %v1720_v3 }
 0x240   : > { %v1892_v19 = vpack.c.bf16 %v1861_v15, %v1860_v1  ;;  %4655 = vtanh.f32 %v1723_v54 }
 0x241   : > { %v4244_v26 = vpop.f32.mrb[40].mxu0  ;;  %4657 = vtanh.f32 %v1721_v51 }
 0x242   : > { %v6157_v5 = vadd.f32 %v6122_v58, %v4244_v26  ;;  %v1413_v0 = vpop.f32.mrb[41].mxu0  ;;  %4298 = vmatprep.mubr.bf16.mxu1 %v1892_v19 }
 0x243   : > { %v6160_v12 = vadd.f32 %v6122_v58, %v1413_v0  ;;  %v4245_v59 = vpop.f32.mrb[42].mxu0  ;;  %4299 = vmatmul.mubr.bf16.gmra.mrb[28].mxu1 %v1893_v18 }
 0x244   : > { %v1534_v38 = vmul.f32 0.044715, %v6157_v5  ;;  %v6164_v31 = vadd.f32 %v6122_v58, %v4245_v59  ;;  %v1416_v53 = vpop.f32.mrb[43].mxu0 }
 0x245   : > { %v1532_v57 = vmul.f32 0.044715, %v6160_v12  ;;  %v6168_v37 = vadd.f32 %v6122_v58, %v1416_v53 }
 0x246   : > { %v1582_v63 = vmul.f32 %v1534_v38, %v6157_v5  ;;  %v1535_v33 = vmul.f32 0.044715, %v6164_v31 }
 0x247   : > { %v1580_v44 = vmul.f32 %v1532_v57, %v6160_v12  ;;  %v1533_v22 = vmul.f32 0.044715, %v6168_v37 }
 0x248   : > { %v4652_v14 = vpop.eup %4651  ;;  %v1630_v47 = vmul.f32 %v1582_v63, %v6157_v5  ;;  %v1583_v24 = vmul.f32 %v1535_v33, %v6164_v31 }
 0x249   : > { %v4654_v2 = vpop.eup %4653  ;;  %v1628_v32 = vmul.f32 %v1580_v44, %v6160_v12  ;;  %v1581_v10 = vmul.f32 %v1533_v22, %v6168_v37  ;;  %v1818_v62 = vadd.f32 1.0, %v4652_v14  ;;  %v1486_v22 = vmul.f32 0.5, %v6157_v5 }
 0x24a   : > { %v4656_v28 = vpop.eup %4655  ;;  %v1631_v56 = vmul.f32 %v1583_v24, %v6164_v31  ;;  %v1816_v11 = vadd.f32 1.0, %v4654_v2  ;;  %v1678_v6 = vadd.f32 %v1630_v47, %v6157_v5  ;;  %v1484_v2 = vmul.f32 0.5, %v6160_v12 }
 0x24b   : > { %v4658_v27 = vpop.eup %4657  ;;  %v1629_v35 = vmul.f32 %v1581_v10, %v6168_v37  ;;  %v1819_v46 = vadd.f32 1.0, %v4656_v28  ;;  %v1676_v20 = vadd.f32 %v1628_v32, %v6160_v12  ;;  %v1866_v60 = vmul.f32 %v1818_v62, %v1482_v9 }
 0x24c   : > { %v1817_v45 = vadd.f32 1.0, %v4658_v27  ;;  %v1679_v34 = vadd.f32 %v1631_v56, %v6164_v31  ;;  %v1726_v21 = vmul.f32 0.7978846, %v1678_v6  ;;  %v1864_v42 = vmul.f32 %v1816_v11, %v1480_v50 }
 0x24d   : > { %v1867_v52 = vmul.f32 %v1819_v46, %v1483_v39  ;;  %v1677_v13 = vadd.f32 %v1629_v35, %v6168_v37  ;;  %v1724_v23 = vmul.f32 0.7978846, %v1676_v20  ;;  %v1487_v62 = vmul.f32 0.5, %v6164_v31 }
 0x24e   : > { %v1865_v43 = vmul.f32 %v1817_v45, %v1481_v36  ;;  %v1727_v55 = vmul.f32 0.7978846, %v1679_v34  ;;  %4659 = vtanh.f32 %v1726_v21  ;;  %v1485_v50 = vmul.f32 0.5, %v6168_v37 }
 0x24f   : > { %v1895_v30 = vpack.c.bf16 %v1867_v52, %v1866_v60  ;;  %v1725_v17 = vmul.f32 0.7978846, %v1677_v13  ;;  %4661 = vtanh.f32 %v1724_v23 }
 0x250   : > { %v1894_v8 = vpack.c.bf16 %v1865_v43, %v1864_v42  ;;  %4663 = vtanh.f32 %v1727_v55 }
 0x251   : > { %v4248_v49 = vpop.f32.mrb[44].mxu0  ;;  %4665 = vtanh.f32 %v1725_v17 }
 0x252   : > { %v1438_v41 = vadd.f32 %v6122_v58, %v4248_v49  ;;  %v1429_v61 = vpop.f32.mrb[45].mxu0  ;;  %4302 = vmatprep.mubr.bf16.mxu1 %v1894_v8 }
 0x253   : > { %v1430_v48 = vadd.f32 %v6122_v58, %v1429_v61  ;;  %v4249_v3 = vpop.f32.mrb[46].mxu0  ;;  %4303 = vmatmul.mubr.bf16.gmra.mrb[32].mxu1 %v1895_v30 }
 0x254   : > { %v1538_v1 = vmul.f32 0.044715, %v1438_v41  ;;  %v1441_v15 = vadd.f32 %v6122_v58, %v4249_v3  ;;  %v1432_v54 = vpop.f32.mrb[47].mxu0  ;;  %v1490_v60 = vmul.f32 0.5, %v1438_v41 }
 0x255   : > { %v1536_v18 = vmul.f32 0.044715, %v1430_v48  ;;  %v1433_v51 = vadd.f32 %v6122_v58, %v1432_v54  ;;  %v1488_v30 = vmul.f32 0.5, %v1430_v48 }
 0x256   : > { %v1586_v19 = vmul.f32 %v1538_v1, %v1438_v41  ;;  %v1539_v26 = vmul.f32 0.044715, %v1441_v15  ;;  %v1491_v43 = vmul.f32 0.5, %v1441_v15 }
 0x257   : > { %v1584_v0 = vmul.f32 %v1536_v18, %v1430_v48  ;;  %v1537_v59 = vmul.f32 0.044715, %v1433_v51  ;;  %v1489_v17 = vmul.f32 0.5, %v1433_v51 }
 0x258   : > { %v4660_v38 = vpop.eup %4659  ;;  %v1634_v53 = vmul.f32 %v1586_v19, %v1438_v41  ;;  %v1587_v57 = vmul.f32 %v1539_v26, %v1441_v15  ;;  %v2734_v19 = vpop.permute.xlu1 %2733 }
 0x259   : > { %v4662_v63 = vpop.eup %4661  ;;  %v1632_v33 = vmul.f32 %v1584_v0, %v1430_v48  ;;  %v1585_v44 = vmul.f32 %v1537_v59, %v1433_v51  ;;  %v1822_v14 = vadd.f32 1.0, %v4660_v38  ;;  %v6197_v0 = vand.u32 127, %v2196_v29 }
 0x25a   : > { %v4664_v47 = vpop.eup %4663  ;;  %v1635_v24 = vmul.f32 %v1587_v57, %v1441_v15  ;;  %v1820_v32 = vadd.f32 1.0, %v4662_v63  ;;  %v1682_v10 = vadd.f32 %v1634_v53, %v1438_v41 }
 0x25b   : > { %v4666_v58 = vpop.eup %4665  ;;  %v1633_v9 = vmul.f32 %v1585_v44, %v1433_v51  ;;  %v1823_v28 = vadd.f32 1.0, %v4664_v47  ;;  %v1680_v56 = vadd.f32 %v1632_v33, %v1430_v48  ;;  %v1870_v35 = vmul.f32 %v1822_v14, %v1486_v22  ;;  %v6202_v48 = vld [vmem:[%s7510_s5] ss:$0 sm:$0xff]  ;;  %v2731_v14 = vpop.permute.xlu0 %2730 }
 0x25c   : > { %v1821_v11 = vadd.f32 1.0, %v4666_v58  ;;  %v1683_v6 = vadd.f32 %v1635_v24, %v1441_v15  ;;  %v1730_v27 = vmul.f32 0.7978846, %v1682_v10  ;;  %v1868_v20 = vmul.f32 %v1820_v32, %v1484_v2  ;;  %v2737_v26 = vpop.permute.xlu1 %2736 }
 0x25d   : > { %v1871_v5 = vmul.f32 %v1823_v28, %v1487_v62  ;;  %v1681_v39 = vadd.f32 %v1633_v9, %v1433_v51  ;;  %v1728_v46 = vmul.f32 0.7978846, %v1680_v56  ;;  %vm2875_vm4 = vcmp.eq.s32.totalorder %v6197_v0, %v2737_v26 }
 0x25e   : > { %v1869_v36 = vmul.f32 %v1821_v11, %v1485_v50  ;;  %v1731_v12 = vmul.f32 0.7978846, %v1683_v6  ;;  %4667 = vtanh.f32 %v1730_v27  ;;  %vm2873_vm6 = vcmp.eq.s32.totalorder %v6197_v0, %v2731_v14 }
 0x25f   : > { %v1897_v45 = vpack.c.bf16 %v1871_v5, %v1870_v35  ;;  %v1729_v34 = vmul.f32 0.7978846, %v1681_v39  ;;  %4669 = vtanh.f32 %v1728_v46  ;;  %vm2874_vm7 = vcmp.eq.s32.totalorder %v6197_v0, %v2734_v19  ;;  %v2758_v5 = vpop.permute.xlu0 %2757 }
 0x260   : > { %v1896_v21 = vpack.c.bf16 %v1869_v36, %v1868_v20  ;;  %4671 = vtanh.f32 %v1731_v12  ;;  %v2740_v41 = vpop.permute.xlu1 %2739  ;;  %vm2882_vm0 = vcmp.eq.s32.totalorder %v6197_v0, %v2758_v5 }
 0x261   : > { %4673 = vtanh.f32 %v1729_v34  ;;  %vm2876_vm5 = vcmp.eq.s32.totalorder %v6197_v0, %v2740_v41 }
 0x262   : > { %4306 = vmatprep.mubr.bf16.mxu1 %v1896_v21 }
 0x263   : > { %4307 = vmatmul.mubr.bf16.gmra.mrb[36].mxu1 %v1897_v45 }
 0x264   : > { %v2743_v53 = vpop.permute.xlu1 %2742 }
 0x265   : > { %vm2877_vm9 = vcmp.eq.s32.totalorder %v6197_v0, %v2743_v53 }
 0x268   : > { %v4668_v31 = vpop.eup %4667  ;;  %v2746_v22 = vpop.permute.xlu1 %2745 }
 0x269   : > { %v4670_v37 = vpop.eup %4669  ;;  %v1826_v52 = vadd.f32 1.0, %v4668_v31  ;;  %v2764_v31 = vpop.permute.xlu0 %2763  ;;  %vm2878_vm11 = vcmp.eq.s32.totalorder %v6197_v0, %v2746_v22 }
 0x26a   : > { %v4672_v13 = vpop.eup %4671  ;;  %v1824_v23 = vadd.f32 1.0, %v4670_v37  ;;  %vm2884_vm15 = vcmp.eq.s32.totalorder %v6197_v0, %v2764_v31 }
 0x26b   : > { %v4674_v42 = vpop.eup %4673  ;;  %v1827_v55 = vadd.f32 1.0, %v4672_v13  ;;  %v1874_v49 = vmul.f32 %v1826_v52, %v1490_v60 }
 0x26c   : > { %v1825_v8 = vadd.f32 1.0, %v4674_v42  ;;  %v1872_v3 = vmul.f32 %v1824_v23, %v1488_v30  ;;  %v2749_v2 = vpop.permute.xlu1 %2748 }
 0x26d   : > { %v1875_v61 = vmul.f32 %v1827_v55, %v1491_v43  ;;  %vm2879_vm8 = vcmp.eq.s32.totalorder %v6197_v0, %v2749_v2  ;;  %v6260_v13 = vpop.permute.xlu0 %2769 }
 0x26e   : > { %v1873_v1 = vmul.f32 %v1825_v8, %v1489_v17 }
 0x26f   : > { %v1899_v54 = vpack.c.bf16 %v1875_v61, %v1874_v49 }
 0x270   : > { %v1898_v18 = vpack.c.bf16 %v1873_v1, %v1872_v3  ;;  %v2752_v50 = vpop.permute.xlu1 %2751 }
 0x271   : > { %vm2880_vm10 = vcmp.eq.s32.totalorder %v6197_v0, %v2752_v50  ;;  %v2776_v55 = vpop.permute.xlu0 %2775 }
 0x272   : > { %4310 = vmatprep.mubr.bf16.mxu1 %v1898_v18  ;;  %vm2888_vm3 = vcmp.eq.s32.totalorder %v6197_v0, %v2776_v55 }
 0x273   : > { %4311 = vmatmul.mubr.bf16.gmra.mrb[40].mxu1 %v1899_v54 }
 0x274   : > { %v2755_v27 = vpop.permute.xlu1 %2754 }
 0x275   : > { %vm2881_vm14 = vcmp.eq.s32.totalorder %v6197_v0, %v2755_v27  ;;  %v6280_v18 = vpop.permute.xlu0 %2781 }
 0x278   : > { %v2761_v20 = vpop.permute.xlu1 %2760 }
 0x279   : > { %vm2883_vm12 = vcmp.eq.s32.totalorder %v6197_v0, %v2761_v20 }
 0x27c   : > { %v2767_v37 = vpop.permute.xlu1 %2766 }
 0x27d   : > { %vm2885_vm1 = vcmp.eq.s32.totalorder %v6197_v0, %v2767_v37 }
 0x280   : > { %v2773_v42 = vpop.permute.xlu1 %2772 }
 0x281   : > { %vm2887_vm13 = vcmp.eq.s32.totalorder %v6197_v0, %v2773_v42 }
 0x284   : > { %v6275_v61 = vpop.permute.xlu1 %2778 }
 0x288   : > { %v2785_v41 = vpop.permute.xlu1 %2784 }
 0x28c   : > { %v6296_v53 = vpop.permute.xlu1 %2790 }
 0x296   : > { %v4268_v15 = vpop.f32.mrb[48].mxu0 }
 0x297   : > { %v6205_v51 = vadd.f32 %v4268_v15, %v6202_v48  ;;  %v2005_v59 = vpop.f32.mrb[49].mxu0 }
 0x298   : > { %v4269_v38 = vpop.f32.mrb[50].mxu0  ;;  %v6211_v63 = vadd.f32 %v6202_v48, %v2005_v59 }
 0x299   : > { %3069 = vmax.xlane.f32.xlu0 %v6205_v51  ;;  %v2008_v57 = vpop.f32.mrb[51].mxu0  ;;  %v2923_v29 = vsel %vm2875_vm4, %v6205_v51, 0.0  ;;  %v6217_v44 = vadd.f32 %v4269_v38, %v6202_v48  ;;  %v6293_v38 = vpop.permute.xlu0 %2787  ;;  %vm2886_vm4 = vcmp.eq.s32.totalorder %v6197_v0, %v6260_v13 }
 0x29a   : > { %2973 = vadd.xlane.f32.xlu1 %v2923_v29  ;;  %v6214_v33 = vadd.f32 %v6202_v48, %v2008_v57  ;;  %v2921_v24 = vsel %vm2873_vm6, %v6211_v63, 0.0  ;;  %vm2889_vm6 = vcmp.eq.s32.totalorder %v6197_v0, %v6275_v61 }
 0x29b   : > { %v2924_v47 = vsel %vm2876_vm5, %v6217_v44, 0.0  ;;  %vm2891_vm5 = vcmp.eq.s32.totalorder %v6197_v0, %v2785_v41 }
 0x29c   : > { %v2922_v32 = vsel %vm2874_vm7, %v6214_v33, 0.0  ;;  %vm2892_vm7 = vcmp.eq.s32.totalorder %v6197_v0, %v6293_v38 }
 0x29d   : > { %3065 = vmax.xlane.f32.xlu0 %v6211_v63  ;;  %v6299_v14 = vpop.permute.xlu0 %2793 }
 0x29e   : > { %3067 = vmax.xlane.f32.xlu1 %v6214_v33 }
 0x2a1   : > { %3071 = vmax.xlane.f32.xlu0 %v6217_v44 }
 0x2a2   : > { %2975 = vadd.xlane.f32.xlu1 %v2924_v47 }
 0x2a5   : > { %2969 = vadd.xlane.f32.xlu0 %v2921_v24 }
 0x2a6   : > { %v4272_v10 = vpop.f32.mrb[0].mxu1  ;;  %2971 = vadd.xlane.f32.xlu1 %v2922_v32  ;;  %v6305_v32 = vpop.permute.xlu1 %2796 }
 0x2a7   : > { %v6229_v58 = vadd.f32 %v4272_v10, %v6202_v48  ;;  %v2021_v9 = vpop.f32.mrb[1].mxu1 }
 0x2a8   : > { %v4273_v62 = vpop.f32.mrb[2].mxu1  ;;  %v6237_v11 = vadd.f32 %v6202_v48, %v2021_v9 }
 0x2a9   : > { %v6232_v28 = vadd.f32 %v4273_v62, %v6202_v48  ;;  %v2024_v56 = vpop.f32.mrb[3].mxu1  ;;  %v2927_v35 = vsel %vm2879_vm8, %v6229_v58, 0.0  ;;  %v6314_v62 = vpop.permute.xlu0 %2799  ;;  %vm2890_vm8 = vcmp.eq.s32.totalorder %v6197_v0, %v6280_v18 }
 0x2aa   : > { %3077 = vmax.xlane.f32.xlu1 %v6229_v58  ;;  %v6240_v6 = vadd.f32 %v6202_v48, %v2024_v56  ;;  %v2925_v39 = vsel %vm2877_vm9, %v6237_v11, 0.0  ;;  %v6319_v56 = vpop.permute.xlu1 %2802  ;;  %vm2895_vm9 = vcmp.eq.s32.totalorder %v6197_v0, %v6305_v32 }
 0x2ab   : > { %3079 = vmax.xlane.f32.xlu0 %v6232_v28  ;;  %v2928_v21 = vsel %vm2880_vm10, %v6232_v28, 0.0  ;;  %vm2893_vm10 = vcmp.eq.s32.totalorder %v6197_v0, %v6296_v53 }
 0x2ac   : > { %v2926_v52 = vsel %vm2878_vm11, %v6240_v6, 0.0  ;;  %vm2896_vm11 = vcmp.eq.s32.totalorder %v6197_v0, %v6314_v62 }
 0x2ad   : > { %v6323_v27 = vpop.permute.xlu0 %2805 }
 0x2ae   : > { %3073 = vmax.xlane.f32.xlu1 %v6237_v11 }
 0x2af   : > { %3075 = vmax.xlane.f32.xlu0 %v6240_v6 }
 0x2b2   : > { %2981 = vadd.xlane.f32.xlu1 %v2927_v35 }
 0x2b6   : > { %v4276_v46 = vpop.f32.mrb[4].mxu1  ;;  %2977 = vadd.xlane.f32.xlu1 %v2925_v39  ;;  %v6326_v39 = vpop.permute.xlu1 %2808 }
 0x2b7   : > { %v2037_v36 = vpop.f32.mrb[5].mxu1  ;;  %v6263_v23 = vadd.f32 %v4276_v46, %v6202_v48 }
 0x2b8   : > { %v4277_v12 = vpop.f32.mrb[6].mxu1  ;;  %v6267_v43 = vadd.f32 %v6202_v48, %v2037_v36 }
 0x2b9   : > { %v6250_v45 = vadd.f32 %v4277_v12, %v6202_v48  ;;  %v2040_v34 = vpop.f32.mrb[7].mxu1  ;;  %v2931_v1 = vsel %vm2883_vm12, %v6263_v23, 0.0  ;;  %vm2894_vm12 = vcmp.eq.s32.totalorder %v6197_v0, %v6299_v14 }
 0x2ba   : > { %2983 = vadd.xlane.f32.xlu1 %v2928_v21  ;;  %v6256_v60 = vadd.f32 %v6202_v48, %v2040_v34  ;;  %v2929_v26 = vsel %vm2881_vm14, %v6267_v43, 0.0  ;;  %v6334_v21 = vpop.permute.xlu0 %2811  ;;  %v6340_v37 = vpop.permute.xlu1 %2814  ;;  %vm2897_vm14 = vcmp.eq.s32.totalorder %v6197_v0, %v6319_v56 }
 0x2bb   : > { %3087 = vmax.xlane.f32.xlu0 %v6250_v45  ;;  %v2932_v59 = vsel %vm2884_vm15, %v6250_v45, 0.0  ;;  %vm2898_vm15 = vcmp.eq.s32.totalorder %v6197_v0, %v6323_v27 }
 0x2bc   : > { %v2930_v57 = vsel %vm2882_vm0, %v6256_v60, 0.0  ;;  %vm2900_vm0 = vcmp.eq.s32.totalorder %v6197_v0, %v6334_v21 }
 0x2be   : > { %2979 = vadd.xlane.f32.xlu1 %v2926_v52  ;;  %v6347_v13 = vpop.permute.xlu0 %2817  ;;  %v6353_v55 = vpop.permute.xlu1 %2820 }
 0x2bf   : > { %3083 = vmax.xlane.f32.xlu0 %v6256_v60 }
 0x2c2   : > { %3085 = vmax.xlane.f32.xlu1 %v6263_v23 }
 0x2c6   : > { %v4280_v30 = vpop.f32.mrb[8].mxu1  ;;  %3081 = vmax.xlane.f32.xlu1 %v6267_v43 }
 0x2c7   : > { %v6271_v17 = vadd.f32 %v4280_v30, %v6202_v48  ;;  %v2053_v8 = vpop.f32.mrb[9].mxu1 }
 0x2c8   : > { %v4281_v49 = vpop.f32.mrb[10].mxu1  ;;  %v6309_v10 = vadd.f32 %v6202_v48, %v2053_v8  ;;  %v6357_v8 = vpop.permute.xlu0 %2823 }
 0x2c9   : > { %v2056_v3 = vpop.f32.mrb[11].mxu1  ;;  %v2935_v54 = vsel %vm2887_vm13, %v6271_v17, 0.0  ;;  %v6283_v19 = vadd.f32 %v4281_v49, %v6202_v48  ;;  %vm2899_vm13 = vcmp.eq.s32.totalorder %v6197_v0, %v6326_v39 }
 0x2ca   : > { %2989 = vadd.xlane.f32.xlu1 %v2931_v1  ;;  %2997 = vadd.xlane.f32.xlu0 %v2935_v54  ;;  %v6289_v15 = vadd.f32 %v6202_v48, %v2056_v3  ;;  %v2933_v50 = vsel %vm2885_vm1, %v6309_v10, 0.0  ;;  %v6363_v54 = vpop.permute.xlu1 %2826  ;;  %vm2901_vm1 = vcmp.eq.s32.totalorder %v6197_v0, %v6340_v37 }
 0x2cb   : > { %v2936_v35 = vsel %vm2888_vm3, %v6283_v19, 0.0  ;;  %7601 = vst [vmem:[#allocation7_spill] sm:$0xff] %v6363_v54 }
 0x2cc   : > { %v2934_v34 = vsel %vm2886_vm4, %v6289_v15, 0.0 }
 0x2ce   : > { %2985 = vadd.xlane.f32.xlu1 %v2929_v26  ;;  %3095 = vmax.xlane.f32.xlu0 %v6283_v19 }
 0x2d2   : > { %3091 = vmax.xlane.f32.xlu0 %v6289_v15  ;;  %2991 = vadd.xlane.f32.xlu1 %v2932_v59 }
 0x2d6   : > { %v4284_v29 = vpop.f32.mrb[12].mxu1  ;;  %2987 = vadd.xlane.f32.xlu1 %v2930_v57  ;;  %v6372_v57 = vpop.permute.xlu0 %2829 }
 0x2d7   : > { %v2069_v22 = vpop.f32.mrb[13].mxu1  ;;  %v6338_v31 = vadd.f32 %v4284_v29, %v6202_v48  ;;  %7602 = vst [vmem:[#allocation8_spill] sm:$0xff] %v6372_v57 }
 0x2d8   : > { %v4285_v47 = vpop.f32.mrb[14].mxu1  ;;  %v6350_v42 = vadd.f32 %v6202_v48, %v2069_v22  ;;  %v6378_v22 = vpop.permute.xlu1 %2832 }
 0x2d9   : > { %v6302_v24 = vadd.f32 %v4285_v47, %v6202_v48  ;;  %v2072_v2 = vpop.f32.mrb[15].mxu1  ;;  %v2939_v30 = vsel %vm2891_vm5, %v6338_v31, 0.0  ;;  %7603 = vst [vmem:[#allocation9_spill] sm:$0xff] %v6378_v22 }
 0x2da   : > { %3093 = vmax.xlane.f32.xlu1 %v6271_v17  ;;  %v6312_v9 = vadd.f32 %v6202_v48, %v2072_v2  ;;  %v2937_v41 = vsel %vm2889_vm6, %v6350_v42, 0.0  ;;  %v6384_v2 = vpop.permute.xlu0 %2835 }
 0x2db   : > { %3103 = vmax.xlane.f32.xlu0 %v6302_v24  ;;  %v2940_v61 = vsel %vm2892_vm7, %v6302_v24, 0.0  ;;  %7604 = vst [vmem:[#allocation10_spill] sm:$0xff] %v6384_v2 }
 0x2dc   : > { %v2938_v47 = vsel %vm2890_vm8, %v6312_v9, 0.0 }
 0x2de   : > { %3089 = vmax.xlane.f32.xlu1 %v6309_v10 }
 0x2df   : > { %3099 = vmax.xlane.f32.xlu0 %v6312_v9 }
 0x2e2   : > { %2993 = vadd.xlane.f32.xlu1 %v2933_v50  ;;  %v6389_v50 = vpop.permute.xlu1 %2838 }
 0x2e3   : > { %7605 = vst [vmem:[#allocation11_spill] sm:$0xff] %v6389_v50 }
 0x2e6   : > { %v4288_v5 = vpop.f32.mrb[16].mxu1  ;;  %2999 = vadd.xlane.f32.xlu1 %v2936_v35 }
 0x2e7   : > { %v2085_v46 = vpop.f32.mrb[17].mxu1  ;;  %v6387_v38 = vadd.f32 %v4288_v5, %v6202_v48  ;;  %v6406_v5 = vpop.permute.xlu1 %2844 }
 0x2e8   : > { %v4289_v20 = vpop.f32.mrb[18].mxu1  ;;  %v6399_v18 = vadd.f32 %v6202_v48, %v2085_v46  ;;  %7607 = vst [vmem:[#allocation13_spill] sm:$0xff] %v6406_v5 }
 0x2e9   : > { %v6331_v36 = vadd.f32 %v4289_v20, %v6202_v48  ;;  %v2088_v12 = vpop.f32.mrb[19].mxu1 }
 0x2ea   : > { %2995 = vadd.xlane.f32.xlu1 %v2934_v34  ;;  %v6343_v52 = vadd.f32 %v6202_v48, %v2088_v12  ;;  %v6396_v34 = vpop.permute.xlu0 %2841 }
 0x2eb   : > { %3111 = vmax.xlane.f32.xlu0 %v6331_v36  ;;  %7606 = vst [vmem:[#allocation12_spill] sm:$0xff] %v6396_v34 }
 0x2ee   : > { %3101 = vmax.xlane.f32.xlu1 %v6338_v31  ;;  %v6414_v46 = vpop.permute.xlu0 %2847 }
 0x2ef   : > { %3107 = vmax.xlane.f32.xlu0 %v6343_v52  ;;  %7608 = vst [vmem:[#allocation14_spill] sm:$0xff] %v6414_v46  ;;  %v2942_v46 = vsel %vm2894_vm12, %v6343_v52, 0.0 }
 0x2f2   : > { %3097 = vmax.xlane.f32.xlu1 %v6350_v42  ;;  %v6424_v32 = vpop.permute.xlu0 %2853 }
 0x2f3   : > { %7610 = vst [vmem:[#allocation16_spill] sm:$0xff] %v6424_v32 }
 0x2f6   : > { %v4292_v49 = vpop.f32.mrb[20].mxu1  ;;  %3005 = vadd.xlane.f32.xlu1 %v2939_v30  ;;  %v6435_v62 = vpop.permute.xlu0 %2859 }
 0x2f7   : > { %v6359_v3 = vpop.f32.mrb[21].mxu1  ;;  %7613 = vst [vmem:[#allocation19_spill] sm:$0xff] %v6435_v62 }
 0x2f8   : > { %v4293_v1 = vpop.f32.mrb[22].mxu1  ;;  %v6452_v14 = vadd.f32 %v6202_v48, %v6359_v3 }
 0x2f9   : > { %v6366_v26 = vadd.f32 %v4293_v1, %v6202_v48  ;;  %v2104_v59 = vpop.f32.mrb[23].mxu1 }
 0x2fa   : > { %3001 = vadd.xlane.f32.xlu1 %v2937_v41  ;;  %v6375_v29 = vadd.f32 %v6202_v48, %v2104_v59  ;;  %v2943_v41 = vsel %vm2895_vm9, %v6387_v38, 0.0 }
 0x2fb   : > { %3119 = vmax.xlane.f32.xlu0 %v6366_v26 }
 0x2fc   : > { %v2946_v56 = vsel %vm2898_vm15, %v6375_v29, 0.0 }
 0x2fe   : > { %3007 = vadd.xlane.f32.xlu1 %v2940_v61  ;;  %v6419_v61 = vpop.permute.xlu1 %2850 }
 0x2ff   : > { %3115 = vmax.xlane.f32.xlu0 %v6375_v29  ;;  %7609 = vst [vmem:[#allocation15_spill] sm:$0xff] %v6419_v61  ;;  %v2945_v61 = vsel %vm2897_vm14, %v6452_v14, 0.0 }
 0x302   : > { %3003 = vadd.xlane.f32.xlu1 %v2938_v47  ;;  %v2941_v47 = vsel %vm2893_vm10, %v6399_v18, 0.0  ;;  %v6427_v16 = vpop.permute.xlu1 %2856 }
 0x303   : > { %7611 = vst [vmem:[#allocation17_spill] sm:$0xff] %v6427_v16 }
 0x306   : > { %v6391_v35 = vpop.f32.mrb[24].mxu1  ;;  %3109 = vmax.xlane.f32.xlu1 %v6387_v38  ;;  %v6444_v16 = vpop.permute.xlu1 %2862 }
 0x307   : > { %v6394_v20 = vpop.f32.mrb[25].mxu1  ;;  %7615 = vst [vmem:[#allocation21_spill] sm:$0xff] %v6444_v16 }
 0x308   : > { %v4297_v12 = vpop.f32.mrb[26].mxu1  ;;  %v6495_v27 = vadd.f32 %v6202_v48, %v6394_v20 }
 0x309   : > { %v6402_v30 = vadd.f32 %v4297_v12, %v6202_v48  ;;  %v2120_v1 = vpop.f32.mrb[27].mxu1 }
 0x30a   : > { %3105 = vmax.xlane.f32.xlu1 %v6399_v18  ;;  %v6411_v59 = vadd.f32 %v6202_v48, %v2120_v1  ;;  %v2944_v1 = vsel %vm2896_vm11, %v6331_v36, 0.0 }
 0x30b   : > { %3127 = vmax.xlane.f32.xlu0 %v6402_v30 }
 0x30e   : > { %3013 = vadd.xlane.f32.xlu1 %v2943_v41 }
 0x30f   : > { %3123 = vmax.xlane.f32.xlu0 %v6411_v59 }
 0x312   : > { %3009 = vadd.xlane.f32.xlu1 %v2941_v47 }
 0x316   : > { %v4300_v12 = vpop.f32.mrb[28].mxu1  ;;  %3015 = vadd.xlane.f32.xlu1 %v2944_v1  ;;  %v6439_v1 = vadd.f32 %v4292_v49, %v6202_v48 }
 0x317   : > { %v2133_v41 = vpop.f32.mrb[29].mxu1 }
 0x318   : > { %v4301_v25 = vpop.f32.mrb[30].mxu1 }
 0x319   : > { %v6432_v53 = vadd.f32 %v4301_v25, %v6202_v48  ;;  %v2136_v47 = vpop.f32.mrb[31].mxu1  ;;  %v6448_v25 = vpop.permute.xlu0 %2865 }
 0x31a   : > { %3011 = vadd.xlane.f32.xlu1 %v2942_v46  ;;  %v6442_v32 = vadd.f32 %v6202_v48, %v2136_v47  ;;  %7616 = vst [vmem:[#allocation22_spill] sm:$0xff] %v6448_v25  ;;  %v6455_v46 = vpop.permute.xlu1 %2868  ;;  %v2947_v47 = vsel %vm2899_vm13, %v6439_v1, 0.0 }
 0x31b   : > { %7612 = vst [vmem:[#allocation18_spill] sm:$0xff] %v6432_v53  ;;  %3135 = vmax.xlane.f32.xlu0 %v6432_v53  ;;  %7617 = vst [vmem:[#allocation23_spill] sm:$0xff] %v6455_v46 }
 0x31c   : > { %7614 = vst [vmem:[#allocation20_spill] sm:$0xff] %v6442_v32 }
 0x31d   : > { %v6460_v62 = vpop.permute.xlu0 %2871 }
 0x31e   : > { %3117 = vmax.xlane.f32.xlu1 %v6439_v1  ;;  %7618 = vst [vmem:[#allocation24_spill] sm:$0xff] %v6460_v62 }
 0x31f   : > { %3131 = vmax.xlane.f32.xlu0 %v6442_v32 }
 0x322   : > { %3113 = vmax.xlane.f32.xlu1 %v6452_v14 }
 0x326   : > { %v4304_v49 = vpop.f32.mrb[32].mxu1  ;;  %3021 = vadd.xlane.f32.xlu1 %v2947_v47  ;;  %v6470_v39 = vpop.xlane.xlu0 %3069 }
 0x327   : > { %v2149_v16 = vpop.f32.mrb[33].mxu1  ;;  %v6462_v34 = vpop.xlane.xlu1 %2973  ;;  %7621 = vst [vmem:[#allocation27_spill] sm:$0xff] %v6470_v39 }
 0x328   : > { %7619 = vst [vmem:[#allocation25_spill] sm:$0xff] %v6462_v34  ;;  %v4305_v25 = vpop.f32.mrb[34].mxu1  ;;  %v6537_v57 = vadd.f32 %v6202_v48, %v2149_v16 }
 0x329   : > { %v6467_v3 = vadd.f32 %v4305_v25, %v6202_v48  ;;  %v2152_v46 = vpop.f32.mrb[35].mxu1 }
 0x32a   : > { %3017 = vadd.xlane.f32.xlu1 %v2945_v61  ;;  %v6478_v47 = vadd.f32 %v6202_v48, %v2152_v46  ;;  %v6486_v61 = vadd.f32 %v6391_v35, %v6202_v48  ;;  %v6488_v34 = vpop.xlane.xlu0 %3065 }
 0x32b   : > { %7620 = vst [vmem:[#allocation26_spill] sm:$0xff] %v6467_v3  ;;  %3143 = vmax.xlane.f32.xlu0 %v6467_v3  ;;  %v6473_v62 = vpop.xlane.xlu1 %3067  ;;  %7624 = vst [vmem:[#allocation30_spill] sm:$0xff] %v6488_v34  ;;  %v6513_v3 = vadd.f32 %v6202_v48, %v2133_v41  ;;  %v3161_v41 = vsub.f32 %v6211_v63, %v6488_v34 }
 0x32c   : > { %7622 = vst [vmem:[#allocation28_spill] sm:$0xff] %v6478_v47 }
 0x32e   : > { %3019 = vadd.xlane.f32.xlu1 %v2946_v56  ;;  %v6497_v56 = vpop.xlane.xlu0 %3071 }
 0x32f   : > { %3139 = vmax.xlane.f32.xlu0 %v6478_v47  ;;  %v6482_v25 = vpop.xlane.xlu1 %2975  ;;  %v6503_v47 = vadd.f32 %v4300_v12, %v6202_v48 }
 0x330   : > { %7623 = vst [vmem:[#allocation29_spill] sm:$0xff] %v6482_v25 }
 0x332   : > { %3125 = vmax.xlane.f32.xlu1 %v6486_v61  ;;  %v6515_v22 = vpop.xlane.xlu0 %2969 }
 0x333   : > { %v6491_v5 = vpop.xlane.xlu1 %2971  ;;  %7627 = vst [vmem:[#allocation33_spill] sm:$0xff] %v6515_v22 }
 0x334   : > { %7625 = vst [vmem:[#allocation31_spill] sm:$0xff] %v6491_v5 }
 0x336   : > { %v4308_v46 = vpop.f32.mrb[36].mxu1  ;;  %3121 = vmax.xlane.f32.xlu1 %v6495_v27 }
 0x337   : > { %v2165_v25 = vpop.f32.mrb[37].mxu1  ;;  %v6500_v50 = vpop.xlane.xlu1 %3077 }
 0x338   : > { %v4309_v35 = vpop.f32.mrb[38].mxu1 }
 0x339   : > { %v6506_v2 = vadd.f32 %v4309_v35, %v6202_v48  ;;  %v2168_v5 = vpop.f32.mrb[39].mxu1  ;;  %v6525_v35 = vadd.f32 %v4304_v49, %v6202_v48 }
 0x33a   : > { %3133 = vmax.xlane.f32.xlu1 %v6503_v47  ;;  %v6518_v32 = vadd.f32 %v6202_v48, %v2168_v5  ;;  %v3163_v5 = vsub.f32 %v6205_v51, %v6470_v39  ;;  %v3164_v51 = vsub.f32 %v6217_v44, %v6497_v56  ;;  %v3162_v44 = vsub.f32 %v6214_v33, %v6473_v62 }
 0x33b   : > { %7626 = vst [vmem:[#allocation32_spill] sm:$0xff] %v6506_v2  ;;  %3151 = vmax.xlane.f32.xlu0 %v6506_v2  ;;  %v6510_v20 = vpop.xlane.xlu1 %3073  ;;  %v6527_v2 = vpop.xlane.xlu0 %3079  ;;  %v3167_v33 = vsub.f32 %v6229_v58, %v6500_v50 }
 0x33c   : > { %7628 = vst [vmem:[#allocation34_spill] sm:$0xff] %v6518_v32  ;;  %7630 = vst [vmem:[#allocation36_spill] sm:$0xff] %v6527_v2  ;;  %v3168_v49 = vsub.f32 %v6232_v28, %v6527_v2  ;;  %v3213_v34 = vmul.f32 1.442695, %v3163_v5  ;;  %v3215_v5 = vmul.f32 1.442695, %v3164_v51 }
 0x33e   : > { %3129 = vmax.xlane.f32.xlu1 %v6513_v3  ;;  %v3223_v2 = vmul.f32 1.442695, %v3168_v49 }
 0x33f   : > { %3147 = vmax.xlane.f32.xlu0 %v6518_v32  ;;  %v6522_v12 = vpop.xlane.xlu1 %2981  ;;  %v3209_v32 = vmul.f32 1.442695, %v3161_v41  ;;  %v6541_v53 = vpop.xlane.xlu0 %3075  ;;  %v6552_v41 = vadd.f32 %v4308_v46, %v6202_v48 }
 0x340   : > { %7629 = vst [vmem:[#allocation35_spill] sm:$0xff] %v6522_v12 }
 0x341   : > { %4675 = vpow2.f32 %v3209_v32 }
 0x342   : > { %3141 = vmax.xlane.f32.xlu1 %v6525_v35  ;;  %4677 = vpow2.f32 %v3213_v34  ;;  %v3211_v34 = vmul.f32 1.442695, %v3162_v44  ;;  %v3221_v44 = vmul.f32 1.442695, %v3167_v33 }
 0x343   : > { %v6534_v22 = vpop.xlane.xlu1 %2977  ;;  %4679 = vpow2.f32 %v3223_v2 }
 0x344   : > { %7631 = vst [vmem:[#allocation37_spill] sm:$0xff] %v6534_v22  ;;  %4681 = vpow2.f32 %v3215_v5 }
 0x346   : > { %v4312_v12 = vpop.f32.mrb[40].mxu1  ;;  %3137 = vmax.xlane.f32.xlu1 %v6537_v57 }
 0x347   : > { %v6544_v54 = vadd.f32 %v4312_v12, %v6202_v48  ;;  %v2181_v63 = vpop.f32.mrb[41].mxu1  ;;  %v6549_v22 = vpop.xlane.xlu1 %2983  ;;  %v3166_v12 = vsub.f32 %v6240_v6, %v6541_v53 }
 0x348   : > { %7632 = vst [vmem:[#allocation38_spill] sm:$0xff] %v6549_v22  ;;  %v4313_v16 = vpop.f32.mrb[42].mxu1  ;;  %v6566_v22 = vadd.f32 %v6202_v48, %v2165_v25  ;;  %v6568_v32 = vpop.xlane.xlu0 %3087  ;;  %v6580_v25 = vadd.f32 %v6202_v48, %v2181_v63 }
 0x349   : > { %v2184_v28 = vpop.f32.mrb[43].mxu1  ;;  %3157 = vmax.xlane.f32.xlu0 %v6544_v54  ;;  %v6558_v39 = vadd.f32 %v4313_v16, %v6202_v48  ;;  %7633 = vst [vmem:[#allocation39_spill] sm:$0xff] %v6568_v32  ;;  %v3219_v6 = vmul.f32 1.442695, %v3166_v12  ;;  %v3172_v2 = vsub.f32 %v6250_v45, %v6568_v32 }
 0x34a   : > { %3149 = vmax.xlane.f32.xlu1 %v6552_v41  ;;  %v6572_v49 = vadd.f32 %v6202_v48, %v2184_v28  ;;  %v3165_v48 = vsub.f32 %v6237_v11, %v6510_v20 }
 0x34b   : > { %v6563_v46 = vpop.xlane.xlu1 %2979  ;;  %4683 = vpow2.f32 %v3219_v6  ;;  %v4676_v58 = vpop.eup %4675  ;;  %v3231_v5 = vmul.f32 1.442695, %v3172_v2 }
 0x34c   : > { %v6587_v28 = vpop.xlane.xlu0 %3083  ;;  %4685 = vpow2.f32 %v3211_v34 }
 0x34d   : > { %3159 = vmax.xlane.f32.xlu0 %v6558_v39  ;;  %v3170_v6 = vsub.f32 %v6256_v60, %v6587_v28 }
 0x34e   : > { %3145 = vmax.xlane.f32.xlu1 %v6566_v22 }
 0x34f   : > { %v6577_v51 = vpop.xlane.xlu1 %3085  ;;  %v3227_v11 = vmul.f32 1.442695, %v3170_v6 }
 0x350   : > { %v3171_v16 = vsub.f32 %v6263_v23, %v6577_v51  ;;  %v4678_v23 = vpop.eup %4677 }
 0x351   : > { %3155 = vmax.xlane.f32.xlu0 %v6572_v49  ;;  %v4680_v45 = vpop.eup %4679 }
 0x352   : > { %v3229_v12 = vmul.f32 1.442695, %v3171_v16  ;;  %3153 = vmax.xlane.f32.xlu1 %v6580_v25  ;;  %v3217_v16 = vmul.f32 1.442695, %v3165_v48  ;;  %v4682_v33 = vpop.eup %4681 }
 0x353   : > { %v6592_v63 = vpop.xlane.xlu1 %3081 }
 0x354   : > { %4687 = vpow2.f32 %v3229_v12  ;;  %v3169_v2 = vsub.f32 %v6267_v43, %v6592_v63 }
 0x355   : > { %3305 = vadd.xlane.f32.xlu0 %v4676_v58  ;;  %4689 = vpow2.f32 %v3221_v44  ;;  %v4684_v58 = vpop.eup %4683 }
 0x356   : > { %3309 = vadd.xlane.f32.xlu1 %v4678_v23  ;;  %4691 = vpow2.f32 %v3231_v5  ;;  %v4686_v12 = vpop.eup %4685  ;;  %v3225_v23 = vmul.f32 1.442695, %v3169_v2 }
 0x357   : > { %v6596_v32 = vpop.xlane.xlu1 %2989  ;;  %v6598_v34 = vpop.xlane.xlu0 %2997  ;;  %4693 = vpow2.f32 %v3217_v16 }
 0x358   : > { %7634 = vst [vmem:[#allocation40_spill] sm:$0xff] %v6598_v34  ;;  %4695 = vpow2.f32 %v3227_v11 }
 0x359   : > { %3319 = vadd.xlane.f32.xlu0 %v4680_v45  ;;  %4697 = vpow2.f32 %v3225_v23  ;;  %v2948_v23 = vsel %vm2900_vm0, %v6366_v26, 0.0 }
 0x35a   : > { %3311 = vadd.xlane.f32.xlu1 %v4682_v33 }
 0x35b   : > { %v6602_v60 = vpop.xlane.xlu1 %2985  ;;  %v6604_v44 = vpop.xlane.xlu0 %3095 }
 0x35c   : > { %7635 = vst [vmem:[#allocation41_spill] sm:$0xff] %v6602_v60  ;;  %7636 = vst [vmem:[#allocation42_spill] sm:$0xff] %v6604_v44  ;;  %v3176_v34 = vsub.f32 %v6283_v19, %v6604_v44 }
 0x35d   : > { %3315 = vadd.xlane.f32.xlu0 %v4684_v58 }
 0x35e   : > { %3307 = vadd.xlane.f32.xlu1 %v4686_v12  ;;  %v4688_v48 = vpop.eup %4687  ;;  %v3239_v19 = vmul.f32 1.442695, %v3176_v34 }
 0x35f   : > { %v6606_v45 = vpop.xlane.xlu1 %2991  ;;  %v4690_v5 = vpop.eup %4689 }
 0x360   : > { %7637 = vst [vmem:[#allocation43_spill] sm:$0xff] %v6606_v45  ;;  %v4692_v6 = vpop.eup %4691  ;;  %v6610_v43 = vpop.xlane.xlu0 %3091 }
 0x361   : > { %3325 = vadd.xlane.f32.xlu0 %v4688_v48  ;;  %7638 = vst [vmem:[#allocation44_spill] sm:$0xff] %v6610_v43  ;;  %v4694_v33 = vpop.eup %4693 }
 0x362   : > { %3317 = vadd.xlane.f32.xlu1 %v4690_v5  ;;  %v4696_v11 = vpop.eup %4695 }
 0x363   : > { %v6608_v16 = vpop.xlane.xlu1 %2987 }
 0x365   : > { %3327 = vadd.xlane.f32.xlu0 %v4692_v6 }
 0x366   : > { %3313 = vadd.xlane.f32.xlu1 %v4694_v33 }
 0x367   : > { %v6612_v58 = vpop.xlane.xlu1 %3093 }
 0x368   : > { %7639 = vst [vmem:[#allocation45_spill] sm:$0xff] %v6612_v58  ;;  %v3175_v2 = vsub.f32 %v6271_v17, %v6612_v58  ;;  %v6618_v12 = vpop.xlane.xlu0 %3103  ;;  %v2213_v58 = vadd.s32 128, %v5638_v4 }
 0x369   : > { %7640 = vst [vmem:[#allocation46_spill] sm:$0xff] %v6618_v12  ;;  %3323 = vadd.xlane.f32.xlu0 %v4696_v11  ;;  %v3180_v48 = vsub.f32 %v6302_v24, %v6618_v12  ;;  %v4698_v11 = vpop.eup %4697 }
 0x36a   : > { %v3237_v5 = vmul.f32 1.442695, %v3175_v2  ;;  %3023 = vadd.xlane.f32.xlu1 %v2948_v23  ;;  %v3174_v23 = vsub.f32 %v6289_v15, %v6610_v43 }
 0x36b   : > { %v3247_v6 = vmul.f32 1.442695, %v3180_v48  ;;  %v6623_v33 = vpop.xlane.xlu1 %3089 }
 0x36c   : > { %7641 = vst [vmem:[#allocation47_spill] sm:$0xff] %v6623_v33  ;;  %4699 = vpow2.f32 %v3237_v5  ;;  %v3173_v17 = vsub.f32 %v6309_v10, %v6623_v33  ;;  %v6629_v21 = vpop.xlane.xlu0 %3099  ;;  %v2949_v10 = vsel %vm2901_vm1, %v6495_v27, 0.0  ;;  %vm2902_vm1 = vcmp.eq.s32.totalorder %v6197_v0, %v6347_v13 }
 0x36d   : > { %7642 = vst [vmem:[#allocation48_spill] sm:$0xff] %v6629_v21  ;;  %4701 = vpow2.f32 %v3247_v6  ;;  %v3178_v24 = vsub.f32 %v6312_v9, %v6629_v21  ;;  %v3235_v9 = vmul.f32 1.442695, %v3174_v23 }
 0x36e   : > { %v3233_v12 = vmul.f32 1.442695, %v3173_v17  ;;  %3321 = vadd.xlane.f32.xlu1 %v4698_v11 }
 0x36f   : > { %v3243_v2 = vmul.f32 1.442695, %v3178_v24  ;;  %v6633_v48 = vpop.xlane.xlu1 %2993 }
 0x370   : > { %7643 = vst [vmem:[#allocation49_spill] sm:$0xff] %v6633_v48  ;;  %4703 = vpow2.f32 %v3233_v12 }
 0x371   : > { %4705 = vpow2.f32 %v3243_v2 }
 0x372   : > { %3025 = vadd.xlane.f32.xlu1 %v2949_v10  ;;  %4707 = vpow2.f32 %v3239_v19 }
 0x373   : > { %v6640_v5 = vpop.xlane.xlu1 %2999  ;;  %4709 = vpow2.f32 %v3235_v9 }
 0x374   : > { %7644 = vst [vmem:[#allocation50_spill] sm:$0xff] %v6640_v5 }
 0x376   : > { %v4700_v6 = vpop.eup %4699 }
 0x377   : > { %v4702_v17 = vpop.eup %4701  ;;  %v6642_v11 = vpop.xlane.xlu1 %2995  ;;  %3333 = vadd.xlane.f32.xlu0 %v4700_v6 }
 0x378   : > { %7645 = vst [vmem:[#allocation51_spill] sm:$0xff] %v6642_v11  ;;  %3343 = vadd.xlane.f32.xlu1 %v4702_v17 }
 0x37a   : > { %v4704_v37 = vpop.eup %4703 }
 0x37b   : > { %v4706_v34 = vpop.eup %4705  ;;  %v6644_v24 = vpop.xlane.xlu1 %3101  ;;  %3329 = vadd.xlane.f32.xlu0 %v4704_v37 }
 0x37c   : > { %7646 = vst [vmem:[#allocation52_spill] sm:$0xff] %v6644_v24  ;;  %v3179_v15 = vsub.f32 %v6338_v31, %v6644_v24  ;;  %3339 = vadd.xlane.f32.xlu1 %v4706_v34  ;;  %v4708_v12 = vpop.eup %4707  ;;  %v2199_v31 = vadd.s32 16, %v5638_v4 }
 0x37d   : > { %v4710_v10 = vpop.eup %4709 }
 0x37e   : > { %v3245_v2 = vmul.f32 1.442695, %v3179_v15  ;;  %v2249_v15 = vadd.s32 %v5653_v40, %v2199_v31 }
 0x37f   : > { %v6648_v19 = vpop.xlane.xlu1 %3097  ;;  %3335 = vadd.xlane.f32.xlu0 %v4708_v12  ;;  %v2200_v12 = vadd.s32 24, %v5638_v4 }
 0x380   : > { %7647 = vst [vmem:[#allocation53_spill] sm:$0xff] %v6648_v19  ;;  %4711 = vpow2.f32 %v3245_v2  ;;  %v3177_v23 = vsub.f32 %v6350_v42, %v6648_v19  ;;  %v6661_v2 = vpop.xlane.xlu0 %3111  ;;  %vm2297_vm3 = vcmp.lt.s32.totalorder %v2249_v15, 600 }
 0x381   : > { %7651 = vst [vmem:[#allocation57_spill] sm:$0xff] %v6661_v2  ;;  %v3184_v31 = vsub.f32 %v6331_v36, %v6661_v2 }
 0x382   : > { %v3241_v9 = vmul.f32 1.442695, %v3177_v23 }
 0x383   : > { %v6652_v6 = vpop.xlane.xlu1 %3005  ;;  %3331 = vadd.xlane.f32.xlu0 %v4710_v10  ;;  %v2250_v10 = vadd.s32 %v5653_v40, %v2200_v12  ;;  %v3255_v2 = vmul.f32 1.442695, %v3184_v31 }
 0x384   : > { %7648 = vst [vmem:[#allocation54_spill] sm:$0xff] %v6652_v6  ;;  %4713 = vpow2.f32 %v3241_v9  ;;  %v2201_v9 = vadd.s32 32, %v5638_v4  ;;  %v6680_v24 = vpop.xlane.xlu0 %3107 }
 0x385   : > { %vm2298_vm4 = vcmp.lt.s32.totalorder %v2250_v10, 600  ;;  %7654 = vst [vmem:[#allocation60_spill] sm:$0xff] %v6680_v24 }
 0x386   : > { %v2251_v12 = vadd.s32 %v5653_v40, %v2201_v9  ;;  %v3182_v9 = vsub.f32 %v6343_v52, %v6680_v24 }
 0x387   : > { %v6654_v17 = vpop.xlane.xlu1 %3001 }
 0x388   : > { %7649 = vst [vmem:[#allocation55_spill] sm:$0xff] %v6654_v17  ;;  %v4891_v17 = vld [vmem:[%s5570_s11 + $0x10] sm:$0xff]  ;;  %vm2299_vm5 = vcmp.lt.s32.totalorder %v2251_v12, 600  ;;  %v3251_v21 = vmul.f32 1.442695, %v3182_v9 }
 0x389   : > { %v6668_v6 = vsel %vm2297_vm3, %v4891_v17, 0.0 }
 0x38a   : > { %v4712_v37 = vpop.eup %4711  ;;  %v3794_v19 = vsel %vm3689_vm2, %v6668_v6, 0.0 }
 0x38b   : > { %v6657_v34 = vpop.xlane.xlu1 %3007  ;;  %3341 = vadd.xlane.f32.xlu0 %v4712_v37 }
 0x38c   : > { %7650 = vst [vmem:[#allocation56_spill] sm:$0xff] %v6657_v34  ;;  %v3795_v34 = vadd.f32 %v3794_v19, %v5813_v7 }
 0x38e   : > { %v4714_v42 = vpop.eup %4713 }
 0x38f   : > { %v6663_v23 = vpop.xlane.xlu1 %3003  ;;  %3337 = vadd.xlane.f32.xlu0 %v4714_v42  ;;  %v2202_v42 = vadd.s32 40, %v5638_v4 }
 0x390   : > { %7652 = vst [vmem:[#allocation58_spill] sm:$0xff] %v6663_v23  ;;  %v4892_v23 = vld [vmem:[%s5570_s11 + $0x18] sm:$0xff] }
 0x391   : > { %v6684_v36 = vsel %vm2298_vm4, %v4892_v23, 0.0  ;;  %v2252_v5 = vadd.s32 %v5653_v40, %v2202_v42  ;;  %v2204_v23 = vadd.s32 56, %v5638_v4  ;;  %v4893_v42 = vld [vmem:[%s5570_s11 + $0x20] sm:$0xff]  ;;  %vm2903_vm4 = vcmp.eq.s32.totalorder %v6197_v0, %v6353_v55 }
 0x392   : > { %v3796_v10 = vsel %vm3689_vm2, %v6684_v36, 0.0 }
 0x393   : > { %v6672_v37 = vpop.xlane.xlu1 %3109  ;;  %vm2300_vm6 = vcmp.lt.s32.totalorder %v2252_v5, 600 }
 0x394   : > { %7653 = vst [vmem:[#allocation59_spill] sm:$0xff] %v6672_v37  ;;  %v3183_v15 = vsub.f32 %v6387_v38, %v6672_v37  ;;  %v2203_v38 = vadd.s32 48, %v5638_v4  ;;  %v6700_v37 = vsel %vm2299_vm5, %v4893_v42, 0.0  ;;  %v4895_v42 = vld [vmem:[%s5570_s11 + $0x30] sm:$0xff] }
 0x396   : > { %v3253_v17 = vmul.f32 1.442695, %v3183_v15  ;;  %v3797_v15 = vadd.f32 %v3796_v10, %v3795_v34  ;;  %v2253_v52 = vadd.s32 %v5653_v40, %v2203_v38  ;;  %v2205_v10 = vadd.s32 64, %v5638_v4  ;;  %v6714_v38 = vpop.xlane.xlu0 %3119 }
 0x397   : > { %v6686_v11 = vpop.xlane.xlu1 %3105  ;;  %7658 = vst [vmem:[#allocation64_spill] sm:$0xff] %v6714_v38 }
 0x398   : > { %7655 = vst [vmem:[#allocation61_spill] sm:$0xff] %v6686_v11  ;;  %4715 = vpow2.f32 %v3253_v17  ;;  %v3181_v7 = vsub.f32 %v6399_v18, %v6686_v11  ;;  %v3798_v18 = vsel %vm3689_vm2, %v6700_v37, 0.0  ;;  %v2254_v17 = vadd.s32 %v5653_v40, %v2204_v23 }
 0x399   : > { %4717 = vpow2.f32 %v3255_v2  ;;  %v4894_v2 = vld [vmem:[%s5570_s11 + $0x28] sm:$0xff]  ;;  %v3799_v34 = vadd.f32 %v3798_v18, %v3797_v15  ;;  %vm2301_vm7 = vcmp.lt.s32.totalorder %v2253_v52, 600  ;;  %v2206_v15 = vadd.s32 72, %v5638_v4 }
 0x39a   : > { %v3249_v19 = vmul.f32 1.442695, %v3181_v7  ;;  %v6709_v7 = vsel %vm2300_vm6, %v4894_v2, 0.0  ;;  %v6719_v23 = vsel %vm2301_vm7, %v4895_v42, 0.0  ;;  %vm2302_vm8 = vcmp.lt.s32.totalorder %v2254_v17, 600 }
 0x39b   : > { %v6697_v31 = vpop.xlane.xlu1 %3013  ;;  %v3800_v5 = vsel %vm3689_vm2, %v6709_v7, 0.0  ;;  %v2255_v52 = vadd.s32 %v5653_v40, %v2205_v10  ;;  %v6734_v10 = vpop.xlane.xlu0 %3115  ;;  %vm2904_vm6 = vcmp.eq.s32.totalorder %v6197_v0, %v6357_v8 }
 0x39c   : > { %7656 = vst [vmem:[#allocation62_spill] sm:$0xff] %v6697_v31  ;;  %4719 = vpow2.f32 %v3249_v19  ;;  %v3801_v2 = vadd.f32 %v3800_v5, %v3799_v34  ;;  %v2207_v31 = vadd.s32 80, %v5638_v4  ;;  %v2256_v34 = vadd.s32 %v5653_v40, %v2206_v15  ;;  %7661 = vst [vmem:[#allocation67_spill] sm:$0xff] %v6734_v10 }
 0x39d   : > { %4721 = vpow2.f32 %v3251_v21  ;;  %v3802_v21 = vsel %vm3689_vm2, %v6719_v23, 0.0  ;;  %vm2303_vm9 = vcmp.lt.s32.totalorder %v2255_v52, 600 }
 0x39e   : > { %v3803_v17 = vadd.f32 %v3802_v21, %v3801_v2  ;;  %v2257_v11 = vadd.s32 %v5653_v40, %v2207_v31  ;;  %vm2304_vm10 = vcmp.lt.s32.totalorder %v2256_v34, 600  ;;  %v4897_v2 = vld [vmem:[%s5570_s11 + $0x40] sm:$0xff] }
 0x39f   : > { %v6705_v12 = vpop.xlane.xlu1 %3009  ;;  %v6743_v15 = vsel %vm2303_vm9, %v4897_v2, 0.0  ;;  %v6749_v31 = vpop.xlane.xlu0 %3127 }
 0x3a0   : > { %7657 = vst [vmem:[#allocation63_spill] sm:$0xff] %v6705_v12  ;;  %7663 = vst [vmem:[#allocation69_spill] sm:$0xff] %v6749_v31  ;;  %vm2305_vm11 = vcmp.lt.s32.totalorder %v2257_v11, 600  ;;  %v2209_v11 = vadd.s32 96, %v5638_v4 }
 0x3a2   : > { %v4716_v9 = vpop.eup %4715 }
 0x3a3   : > { %v6716_v19 = vpop.xlane.xlu1 %3015  ;;  %3349 = vadd.xlane.f32.xlu1 %v4716_v9  ;;  %v4718_v18 = vpop.eup %4717  ;;  %v4896_v9 = vld [vmem:[%s5570_s11 + $0x38] sm:$0xff] }
 0x3a4   : > { %7659 = vst [vmem:[#allocation65_spill] sm:$0xff] %v6716_v19  ;;  %v6729_v42 = vsel %vm2302_vm8, %v4896_v9, 0.0 }
 0x3a5   : > { %v3804_v5 = vsel %vm3689_vm2, %v6729_v42, 0.0 }
 0x3a6   : > { %v4720_v24 = vpop.eup %4719  ;;  %v3805_v21 = vadd.f32 %v3804_v5, %v3803_v17  ;;  %v3186_v5 = vsub.f32 %v6375_v29, %v6734_v10 }
 0x3a7   : > { %v6726_v12 = vpop.xlane.xlu1 %3011  ;;  %3345 = vadd.xlane.f32.xlu0 %v4720_v24  ;;  %3351 = vadd.xlane.f32.xlu1 %v4718_v18  ;;  %v4722_v19 = vpop.eup %4721  ;;  %v2208_v24 = vadd.s32 88, %v5638_v4  ;;  %v3188_v18 = vsub.f32 %v6366_v26, %v6714_v38  ;;  %v4898_v26 = vld [vmem:[%s5570_s11 + $0x48] sm:$0xff] }
 0x3a8   : > { %7660 = vst [vmem:[#allocation66_spill] sm:$0xff] %v6726_v12  ;;  %v3806_v12 = vsel %vm3689_vm2, %v6743_v15, 0.0  ;;  %v6752_v38 = vsel %vm2304_vm10, %v4898_v26, 0.0 }
 0x3a9   : > { %v2258_v2 = vadd.s32 %v5653_v40, %v2208_v24  ;;  %v3808_v17 = vsel %vm3689_vm2, %v6752_v38, 0.0  ;;  %v6767_v24 = vpop.xlane.xlu0 %3123 }
 0x3aa   : > { %7665 = vst [vmem:[#allocation71_spill] sm:$0xff] %v6767_v24  ;;  %v3190_v13 = vsub.f32 %v6411_v59, %v6767_v24 }
 0x3ab   : > { %v6740_v9 = vpop.xlane.xlu1 %3117  ;;  %3347 = vadd.xlane.f32.xlu1 %v4722_v19  ;;  %v3263_v19 = vmul.f32 1.442695, %v3188_v18  ;;  %v4899_v18 = vld [vmem:[%s5570_s11 + $0x50] sm:$0xff]  ;;  %vm2306_vm12 = vcmp.lt.s32.totalorder %v2258_v2, 600 }
 0x3ac   : > { %7662 = vst [vmem:[#allocation68_spill] sm:$0xff] %v6740_v9  ;;  %v3187_v52 = vsub.f32 %v6439_v1, %v6740_v9  ;;  %v3807_v1 = vadd.f32 %v3806_v12, %v3805_v21  ;;  %v6765_v9 = vsel %vm2305_vm11, %v4899_v18, 0.0  ;;  %v2210_v21 = vadd.s32 104, %v5638_v4 }
 0x3ad   : > { %v3810_v12 = vsel %vm3689_vm2, %v6765_v9, 0.0 }
 0x3ae   : > { %v3261_v43 = vmul.f32 1.442695, %v3187_v52  ;;  %v3809_v29 = vadd.f32 %v3808_v17, %v3807_v1  ;;  %v2260_v17 = vadd.s32 %v5653_v40, %v2210_v21 }
 0x3af   : > { %v6754_v34 = vpop.xlane.xlu1 %3113 }
 0x3b0   : > { %7664 = vst [vmem:[#allocation70_spill] sm:$0xff] %v6754_v34  ;;  %4723 = vpow2.f32 %v3261_v43  ;;  %v3185_v52 = vsub.f32 %v6452_v14, %v6754_v34  ;;  %v3259_v43 = vmul.f32 1.442695, %v3186_v5  ;;  %v2259_v14 = vadd.s32 %v5653_v40, %v2209_v11 }
 0x3b1   : > { %4725 = vpow2.f32 %v3263_v19  ;;  %v4900_v19 = vld [vmem:[%s5570_s11 + $0x58] sm:$0xff]  ;;  %v3811_v34 = vadd.f32 %v3810_v12, %v3809_v29  ;;  %v2212_v29 = vadd.s32 120, %v5638_v4  ;;  %vm2308_vm14 = vcmp.lt.s32.totalorder %v2260_v17, 600 }
 0x3b2   : > { %v3257_v26 = vmul.f32 1.442695, %v3185_v52  ;;  %v6775_v52 = vpop.xlane.xlu0 %3135  ;;  %v6780_v10 = vsel %vm2306_vm12, %v4900_v19, 0.0  ;;  %vm2307_vm13 = vcmp.lt.s32.totalorder %v2259_v14, 600 }
 0x3b3   : > { %v6769_v44 = vpop.xlane.xlu1 %3021  ;;  %7667 = vst [vmem:[#allocation73_spill] sm:$0xff] %v6775_v52  ;;  %v3812_v2 = vsel %vm3689_vm2, %v6780_v10, 0.0 }
 0x3b4   : > { %7666 = vst [vmem:[#allocation72_spill] sm:$0xff] %v6769_v44  ;;  %4727 = vpow2.f32 %v3257_v26  ;;  %v2211_v44 = vadd.s32 112, %v5638_v4  ;;  %v4901_v26 = vld [vmem:[%s5570_s11 + $0x60] sm:$0xff] }
 0x3b5   : > { %4729 = vpow2.f32 %v3259_v43  ;;  %v6790_v19 = vsel %vm2307_vm13, %v4901_v26, 0.0 }
 0x3b6   : > { %v2261_v11 = vadd.s32 %v5653_v40, %v2211_v44  ;;  %7670 = vst [vmem:[#allocation76_spill] sm:$0xff] %v6790_v19  ;;  %v3814_v12 = vsel %vm3689_vm2, %v6790_v19, 0.0  ;;  %v6795_v14 = vpop.xlane.xlu0 %3131 }
 0x3b7   : > { %v6777_v18 = vpop.xlane.xlu1 %3017  ;;  %7671 = vst [vmem:[#allocation77_spill] sm:$0xff] %v6795_v14 }
 0x3b8   : > { %7668 = vst [vmem:[#allocation74_spill] sm:$0xff] %v6777_v18  ;;  %v3813_v18 = vadd.f32 %v3812_v2, %v3811_v34  ;;  %vm2309_vm15 = vcmp.lt.s32.totalorder %v2261_v11, 600  ;;  %v2262_v2 = vadd.s32 %v5653_v40, %v2212_v29 }
 0x3ba   : > { %v4724_v1 = vpop.eup %4723  ;;  %v3815_v44 = vadd.f32 %v3814_v12, %v3813_v18  ;;  %v6808_v48 = vpop.xlane.xlu0 %3143  ;;  %v2214_v18 = vadd.s32 136, %v5638_v4  ;;  %v3192_v12 = vsub.f32 %v6402_v30, %v6749_v31  ;;  %vm2310_vm0 = vcmp.lt.s32.totalorder %v2262_v2, 600 }
 0x3bb   : > { %v6786_v5 = vpop.xlane.xlu1 %3019  ;;  %3357 = vadd.xlane.f32.xlu0 %v4724_v1  ;;  %v4726_v43 = vpop.eup %4725  ;;  %v4902_v1 = vld [vmem:[%s5570_s11 + $0x68] sm:$0xff]  ;;  %7674 = vst [vmem:[#allocation80_spill] sm:$0xff] %v6808_v48  ;;  %v2950_v31 = vsel %vm2902_vm1, %v6411_v59, 0.0 }
 0x3bc   : > { %7669 = vst [vmem:[#allocation75_spill] sm:$0xff] %v6786_v5  ;;  %v6800_v26 = vsel %vm2308_vm14, %v4902_v1, 0.0  ;;  %v2264_v33 = vadd.s32 %v5653_v40, %v2214_v18 }
 0x3bd   : > { %7673 = vst [vmem:[#allocation79_spill] sm:$0xff] %v6800_v26  ;;  %v3816_v17 = vsel %vm3689_vm2, %v6800_v26, 0.0 }
 0x3be   : > { %v4728_v21 = vpop.eup %4727  ;;  %v6827_v45 = vpop.xlane.xlu0 %3139  ;;  %vm2312_vm5 = vcmp.lt.s32.totalorder %v2264_v33, 600  ;;  %v2952_v33 = vsel %vm2904_vm6, %v6402_v30, 0.0 }
 0x3bf   : > { %v6797_v5 = vpop.xlane.xlu1 %3125  ;;  %3353 = vadd.xlane.f32.xlu1 %v4728_v21  ;;  %3359 = vadd.xlane.f32.xlu0 %v4726_v43  ;;  %v4730_v19 = vpop.eup %4729  ;;  %v4903_v43 = vld [vmem:[%s5570_s11 + $0x70] sm:$0xff]  ;;  %7677 = vst [vmem:[#allocation83_spill] sm:$0xff] %v6827_v45 }
 0x3c0   : > { %7672 = vst [vmem:[#allocation78_spill] sm:$0xff] %v6797_v5  ;;  %v3191_v34 = vsub.f32 %v6486_v61, %v6797_v5  ;;  %v6811_v11 = vsel %vm2309_vm15, %v4903_v43, 0.0  ;;  %v3817_v5 = vadd.f32 %v3816_v17, %v3815_v44  ;;  %v2263_v43 = vadd.s32 %v5653_v40, %v2213_v58  ;;  %v4904_v44 = vld [vmem:[%s5570_s11 + $0x78] sm:$0xff] }
 0x3c1   : > { %7675 = vst [vmem:[#allocation81_spill] sm:$0xff] %v6811_v11  ;;  %v3818_v29 = vsel %vm3689_vm2, %v6811_v11, 0.0  ;;  %v2215_v58 = vadd.s32 144, %v5638_v4 }
 0x3c2   : > { %v3269_v21 = vmul.f32 1.442695, %v3191_v34  ;;  %v3819_v2 = vadd.f32 %v3818_v29, %v3817_v5  ;;  %vm2311_vm3 = vcmp.lt.s32.totalorder %v2263_v43, 600 }
 0x3c3   : > { %v6816_v1 = vpop.xlane.xlu1 %3121  ;;  %3355 = vadd.xlane.f32.xlu1 %v4730_v19  ;;  %v3271_v19 = vmul.f32 1.442695, %v3192_v12  ;;  %v2265_v59 = vadd.s32 %v5653_v40, %v2215_v58 }
 0x3c4   : > { %7676 = vst [vmem:[#allocation82_spill] sm:$0xff] %v6816_v1  ;;  %4731 = vpow2.f32 %v3269_v21  ;;  %v3189_v34 = vsub.f32 %v6495_v27, %v6816_v1  ;;  %v6832_v27 = vsel %vm2310_vm0, %v4904_v44, 0.0  ;;  %v2216_v21 = vadd.s32 152, %v5638_v4  ;;  %v4906_v44 = vld [vmem:[%s5570_s11 + $0x88] sm:$0xff] }
 0x3c5   : > { %7679 = vst [vmem:[#allocation85_spill] sm:$0xff] %v6832_v27  ;;  %v3820_v17 = vsel %vm3689_vm2, %v6832_v27, 0.0  ;;  %v6859_v58 = vsel %vm2312_vm5, %v4906_v44, 0.0  ;;  %vm2313_vm7 = vcmp.lt.s32.totalorder %v2265_v59, 600  ;;  %v7688_v59 = vld [vmem:[#allocation18_spill] sm:$0xff] }
 0x3c6   : > { %v3265_v26 = vmul.f32 1.442695, %v3189_v34  ;;  %v3821_v29 = vadd.f32 %v3820_v17, %v3819_v2  ;;  %v3267_v34 = vmul.f32 1.442695, %v3190_v13  ;;  %7683 = vst [vmem:[#allocation89_spill] sm:$0xff] %v6859_v58  ;;  %v3824_v2 = vsel %vm3689_vm2, %v6859_v58, 0.0 }
 0x3c7   : > { %v6829_v11 = vpop.xlane.xlu1 %3133  ;;  %3027 = vadd.xlane.f32.xlu1 %v2950_v31  ;;  %v2951_v31 = vsel %vm2903_vm4, %v6486_v61, 0.0  ;;  %v2217_v17 = vadd.s32 160, %v5638_v4 }
 0x3c8   : > { %7678 = vst [vmem:[#allocation84_spill] sm:$0xff] %v6829_v11  ;;  %4733 = vpow2.f32 %v3265_v26  ;;  %v6843_v18 = vpop.xlane.xlu0 %3151  ;;  %v4905_v26 = vld [vmem:[%s5570_s11 + $0x80] sm:$0xff]  ;;  %v3195_v55 = vsub.f32 %v6503_v47, %v6829_v11 }
 0x3c9   : > { %7680 = vst [vmem:[#allocation86_spill] sm:$0xff] %v6843_v18  ;;  %v6849_v12 = vsel %vm2311_vm3, %v4905_v26, 0.0  ;;  %4735 = vpow2.f32 %v3271_v19  ;;  %v2266_v19 = vadd.s32 %v5653_v40, %v2216_v21  ;;  %v7685_v26 = vld [vmem:[#allocation7_spill] sm:$0xff] }
 0x3ca   : > { %7682 = vst [vmem:[#allocation88_spill] sm:$0xff] %v6849_v12  ;;  %v3822_v61 = vsel %vm3689_vm2, %v6849_v12, 0.0  ;;  %4737 = vpow2.f32 %v3267_v34  ;;  %v3277_v8 = vmul.f32 1.442695, %v3195_v55  ;;  %vm2905_vm8 = vcmp.eq.s32.totalorder %v6197_v0, %v7685_v26 }
 0x3cb   : > { %v6845_v5 = vpop.xlane.xlu1 %3129  ;;  %3029 = vadd.xlane.f32.xlu1 %v2951_v31  ;;  %v3823_v13 = vadd.f32 %v3822_v61, %v3821_v29  ;;  %v2953_v21 = vsel %vm2905_vm8, %v6513_v3, 0.0  ;;  %v3196_v29 = vsub.f32 %v7688_v59, %v6775_v52  ;;  %vm2314_vm9 = vcmp.lt.s32.totalorder %v2266_v19, 600 }
 0x3cc   : > { %7681 = vst [vmem:[#allocation87_spill] sm:$0xff] %v6845_v5  ;;  %v3193_v30 = vsub.f32 %v6513_v3, %v6845_v5  ;;  %v6871_v44 = vpop.xlane.xlu0 %3147  ;;  %4739 = vpow2.f32 %v3277_v8  ;;  %v2267_v3 = vadd.s32 %v5653_v40, %v2217_v17  ;;  %v7690_v5 = vld [vmem:[#allocation8_spill] sm:$0xff]  ;;  %v2219_v8 = vadd.s32 176, %v5638_v4 }
 0x3cd   : > { %7686 = vst [vmem:[#allocation7_spill] sm:$0xff] %v6871_v44  ;;  %v3825_v61 = vadd.f32 %v3824_v2, %v3823_v13  ;;  %vm2906_vm10 = vcmp.eq.s32.totalorder %v6197_v0, %v7690_v5  ;;  %v3279_v12 = vmul.f32 1.442695, %v3196_v29  ;;  %v4908_v2 = vld [vmem:[%s5570_s11 + $0x98] sm:$0xff] }
 0x3ce   : > { %v4732_v43 = vpop.eup %4731  ;;  %v3273_v26 = vmul.f32 1.442695, %v3193_v30  ;;  %v6896_v13 = vsel %vm2314_vm9, %v4908_v2, 0.0  ;;  %vm2315_vm11 = vcmp.lt.s32.totalorder %v2267_v3, 600  ;;  %v7695_v29 = vld [vmem:[#allocation9_spill] sm:$0xff] }
 0x3cf   : > { %v6861_v31 = vpop.xlane.xlu1 %3141  ;;  %3365 = vadd.xlane.f32.xlu0 %v4732_v43  ;;  %3031 = vadd.xlane.f32.xlu1 %v2952_v33  ;;  %v4907_v33 = vld [vmem:[%s5570_s11 + $0x90] sm:$0xff]  ;;  %7694 = vst [vmem:[#allocation92_spill] sm:$0xff] %v6896_v13  ;;  %v3828_v30 = vsel %vm3689_vm2, %v6896_v13, 0.0  ;;  %vm2907_vm12 = vcmp.eq.s32.totalorder %v6197_v0, %v7695_v29  ;;  %v4909_v3 = vld [vmem:[%s5570_s11 + $0xa0] sm:$0xff] }
 0x3d0   : > { %7684 = vst [vmem:[#allocation90_spill] sm:$0xff] %v6861_v31  ;;  %v6875_v11 = vsel %vm2313_vm7, %v4907_v33, 0.0  ;;  %v2218_v33 = vadd.s32 168, %v5638_v4  ;;  %4741 = vpow2.f32 %v3273_v26  ;;  %v2269_v26 = vadd.s32 %v5653_v40, %v2219_v8  ;;  %v7705_v13 = vld [vmem:[#allocation11_spill] sm:$0xff] }
 0x3d1   : > { %7687 = vst [vmem:[#allocation91_spill] sm:$0xff] %v6875_v11  ;;  %v3826_v55 = vsel %vm3689_vm2, %v6875_v11, 0.0  ;;  %4743 = vpow2.f32 %v3279_v12  ;;  %v7700_v12 = vld [vmem:[#allocation10_spill] sm:$0xff]  ;;  %vm2909_vm0 = vcmp.eq.s32.totalorder %v6197_v0, %v7705_v13 }
 0x3d2   : > { %v4734_v43 = vpop.eup %4733  ;;  %v3827_v5 = vadd.f32 %v3826_v55, %v3825_v61  ;;  %v2268_v17 = vadd.s32 %v5653_v40, %v2218_v33  ;;  %v2955_v55 = vsel %vm2907_vm12, %v6503_v47, 0.0  ;;  %v6913_v33 = vsel %vm2315_vm11, %v4909_v3, 0.0 }
 0x3d3   : > { %v6879_v34 = vpop.xlane.xlu1 %3137  ;;  %3361 = vadd.xlane.f32.xlu0 %v4734_v43  ;;  %3033 = vadd.xlane.f32.xlu1 %v2953_v21  ;;  %v4736_v24 = vpop.eup %4735  ;;  %v7692_v43 = vld [vmem:[#allocation20_spill] sm:$0xff]  ;;  %7699 = vst [vmem:[#allocation93_spill] sm:$0xff] %v6913_v33  ;;  %v3830_v47 = vsel %vm3689_vm2, %v6913_v33, 0.0  ;;  %vm2908_vm14 = vcmp.eq.s32.totalorder %v6197_v0, %v7700_v12  ;;  %vm2317_vm15 = vcmp.lt.s32.totalorder %v2269_v26, 600  ;;  %v4910_v12 = vld [vmem:[%s5570_s11 + $0xa8] sm:$0xff]  ;;  %v2222_v26 = vadd.s32 200, %v5638_v4 }
 0x3d4   : > { %7689 = vst [vmem:[#allocation18_spill] sm:$0xff] %v6879_v34  ;;  %v3194_v21 = vsub.f32 %v7692_v43, %v6795_v14  ;;  %v2954_v1 = vsel %vm2906_vm10, %v7692_v43, 0.0  ;;  %v7697_v43 = vld [vmem:[#allocation26_spill] sm:$0xff]  ;;  %v3829_v29 = vadd.f32 %v3828_v30, %v3827_v5  ;;  %v3199_v14 = vsub.f32 %v6525_v35, %v6861_v31  ;;  %v7702_v5 = vld [vmem:[#allocation28_spill] sm:$0xff] }
 0x3d5   : > { %v3200_v2 = vsub.f32 %v7697_v43, %v6808_v48  ;;  %vm2316_vm13 = vcmp.lt.s32.totalorder %v2268_v17, 600  ;;  %v3198_v30 = vsub.f32 %v7702_v5, %v6827_v45  ;;  %v2956_v3 = vsel %vm2908_vm14, %v7688_v59, 0.0 }
 0x3d6   : > { %v6887_v52 = vpop.xlane.xlu0 %3157  ;;  %v3275_v19 = vmul.f32 1.442695, %v3194_v21  ;;  %v2220_v21 = vadd.s32 184, %v5638_v4  ;;  %v3197_v48 = vsub.f32 %v6537_v57, %v6879_v34  ;;  %v3831_v17 = vadd.f32 %v3830_v47, %v3829_v29  ;;  %v7706_v34 = vld [vmem:[#allocation13_spill] sm:$0xff] }
 0x3d7   : > { %7691 = vst [vmem:[#allocation8_spill] sm:$0xff] %v6887_v52  ;;  %v6892_v11 = vpop.xlane.xlu1 %3149  ;;  %3035 = vadd.xlane.f32.xlu1 %v2954_v1  ;;  %3367 = vadd.xlane.f32.xlu0 %v4736_v24  ;;  %v4738_v24 = vpop.eup %4737  ;;  %v6932_v33 = vsel %vm2316_vm13, %v4910_v12, 0.0  ;;  %v2221_v59 = vadd.s32 192, %v5638_v4  ;;  %vm2911_vm1 = vcmp.eq.s32.totalorder %v6197_v0, %v7706_v34  ;;  %v4911_v12 = vld [vmem:[%s5570_s11 + $0xb0] sm:$0xff] }
 0x3d8   : > { %7693 = vst [vmem:[#allocation20_spill] sm:$0xff] %v6892_v11  ;;  %v4740_v8 = vpop.eup %4739  ;;  %4745 = vpow2.f32 %v3275_v19  ;;  %7704 = vst [vmem:[#allocation94_spill] sm:$0xff] %v6932_v33  ;;  %v3285_v19 = vmul.f32 1.442695, %v3199_v14  ;;  %v3832_v45 = vsel %vm3689_vm2, %v6932_v33, 0.0  ;;  %v6947_v33 = vsel %vm2317_vm15, %v4911_v12, 0.0 }
 0x3d9   : > { %v3283_v14 = vmul.f32 1.442695, %v3198_v30  ;;  %7708 = vst [vmem:[#allocation11_spill] sm:$0xff] %v6947_v33  ;;  %v3281_v27 = vmul.f32 1.442695, %v3197_v48  ;;  %v3834_v13 = vsel %vm3689_vm2, %v6947_v33, 0.0  ;;  %v3833_v60 = vadd.f32 %v3832_v45, %v3831_v17 }
 0x3da   : > { %v6904_v1 = vpop.xlane.xlu0 %3159  ;;  %v7710_v30 = vld [vmem:[#allocation12_spill] sm:$0xff]  ;;  %v7712_v17 = vld [vmem:[#allocation17_spill] sm:$0xff]  ;;  %v7714_v12 = vld [vmem:[#allocation14_spill] sm:$0xff] }
 0x3db   : > { %7696 = vst [vmem:[#allocation9_spill] sm:$0xff] %v6904_v1  ;;  %v6909_v61 = vpop.xlane.xlu1 %3145  ;;  %3037 = vadd.xlane.f32.xlu1 %v2955_v55  ;;  %3363 = vadd.xlane.f32.xlu0 %v4738_v24  ;;  %v3287_v55 = vmul.f32 1.442695, %v3200_v2  ;;  %v2270_v2 = vadd.s32 %v5653_v40, %v2220_v21  ;;  %v2957_v21 = vsel %vm2909_vm0, %v6537_v57, 0.0  ;;  %v2271_v57 = vadd.s32 %v5653_v40, %v2221_v59  ;;  %v7715_v33 = vld [vmem:[#allocation21_spill] sm:$0xff] }
 0x3dc   : > { %7698 = vst [vmem:[#allocation26_spill] sm:$0xff] %v6909_v61  ;;  %vm2910_vm5 = vcmp.eq.s32.totalorder %v6197_v0, %v7710_v30  ;;  %vm2915_vm6 = vcmp.eq.s32.totalorder %v6197_v0, %v7712_v17  ;;  %v2223_v59 = vadd.s32 208, %v5638_v4  ;;  %vm2912_vm8 = vcmp.eq.s32.totalorder %v6197_v0, %v7714_v12 }
 0x3dd   : > { %4747 = vpow2.f32 %v3287_v55  ;;  %vm2318_vm4 = vcmp.lt.s32.totalorder %v2270_v2, 600  ;;  %vm2917_vm9 = vcmp.eq.s32.totalorder %v6197_v0, %v7715_v33  ;;  %vm2319_vm10 = vcmp.lt.s32.totalorder %v2271_v57, 600  ;;  %v7721_v33 = vld [vmem:[#allocation30_spill] sm:$0xff] }
 0x3de   : > { %v6922_v24 = vpop.xlane.xlu0 %3155  ;;  %v3207_v2 = vsub.f32 %v6544_v54, %v6887_v52  ;;  %v7008_v12 = vsel %vm2915_vm6, %v6552_v41, 0.0  ;;  %vm3547_vm0 = vcmp.gt.f32.partialorder %v6668_v6, 0.0  ;;  %vm3552_vm6 = vcmp.gt.f32.partialorder %v6729_v42, 0.0 }
 0x3df   : > { %7701 = vst [vmem:[#allocation10_spill] sm:$0xff] %v6922_v24  ;;  %v6929_v31 = vpop.xlane.xlu1 %3153  ;;  %3039 = vadd.xlane.f32.xlu1 %v2956_v3  ;;  %3373 = vadd.xlane.f32.xlu0 %v4740_v8  ;;  %v7707_v8 = vld [vmem:[#allocation32_spill] sm:$0xff]  ;;  %v4742_v3 = vpop.eup %4741 }
 0x3e0   : > { %7703 = vst [vmem:[#allocation28_spill] sm:$0xff] %v6929_v31  ;;  %v3204_v29 = vsub.f32 %v7707_v8, %v6843_v18  ;;  %v7709_v18 = vld [vmem:[#allocation15_spill] sm:$0xff]  ;;  %v4744_v55 = vpop.eup %4743 }
 0x3e1   : > { %vm2913_vm3 = vcmp.eq.s32.totalorder %v6197_v0, %v7709_v18  ;;  %v4914_v18 = vld [vmem:[%s5570_s11 + $0xc8] sm:$0xff] }
 0x3e2   : > { %v3306_v47 = vpop.xlane.xlu0 %3305  ;;  %v3295_v48 = vmul.f32 1.442695, %v3204_v29 }
 0x3e3   : > { %4749 = vlog2.f32 %v3306_v47  ;;  %v3310_v58 = vpop.xlane.xlu1 %3309  ;;  %3041 = vadd.xlane.f32.xlu1 %v2957_v21  ;;  %3369 = vadd.xlane.f32.xlu0 %v4742_v3  ;;  %v7711_v47 = vld [vmem:[#allocation34_spill] sm:$0xff]  ;;  %v7713_v21 = vld [vmem:[#allocation23_spill] sm:$0xff] }
 0x3e4   : > { %4751 = vpow2.f32 %v3285_v19  ;;  %v3202_v3 = vsub.f32 %v7711_v47, %v6871_v44  ;;  %v2958_v19 = vsel %vm2910_vm5, %v7702_v5, 0.0  ;;  %vm2919_vm7 = vcmp.eq.s32.totalorder %v6197_v0, %v7713_v21 }
 0x3e5   : > { %4753 = vlog2.f32 %v3310_v58  ;;  %v4912_v58 = vld [vmem:[%s5570_s11 + $0xb8] sm:$0xff]  ;;  %v3835_v44 = vadd.f32 %v3834_v13, %v3833_v60  ;;  %v2959_v60 = vsel %vm2911_vm1, %v6525_v35, 0.0  ;;  %v3203_v13 = vsub.f32 %v6552_v41, %v6892_v11 }
 0x3e6   : > { %v3320_v45 = vpop.xlane.xlu0 %3319  ;;  %4755 = vpow2.f32 %v3283_v14  ;;  %v6969_v30 = vsel %vm2318_vm4, %v4912_v58, 0.0  ;;  %v4746_v14 = vpop.eup %4745  ;;  %v2224_v58 = vadd.s32 216, %v5638_v4  ;;  %v2227_v21 = vadd.s32 240, %v5638_v4 }
 0x3e7   : > { %4757 = vpow2.f32 %v3281_v27  ;;  %v3312_v29 = vpop.xlane.xlu1 %3311  ;;  %3043 = vadd.xlane.f32.xlu1 %v2958_v19  ;;  %3375 = vadd.xlane.f32.xlu0 %v4744_v55  ;;  %v3836_v5 = vsel %vm3689_vm2, %v6969_v30, 0.0  ;;  %v2272_v27 = vadd.s32 %v5653_v40, %v2222_v26  ;;  %v3291_v19 = vmul.f32 1.442695, %v3202_v3  ;;  %v4913_v3 = vld [vmem:[%s5570_s11 + $0xc0] sm:$0xff]  ;;  %v6992_v34 = vpop.eup %4747 }
 0x3e8   : > { %4759 = vlog2.f32 %v3312_v29  ;;  %v2273_v29 = vadd.s32 %v5653_v40, %v2223_v59  ;;  %v3201_v26 = vsub.f32 %v6566_v22, %v6909_v61  ;;  %v6990_v52 = vsel %vm2319_vm10, %v4913_v3, 0.0 }
 0x3e9   : > { %4761 = vpow2.f32 %v3295_v48  ;;  %7716 = vst [vmem:[#allocation13_spill] sm:$0xff] %v6990_v52  ;;  %v3837_v35 = vadd.f32 %v3836_v5, %v3835_v44  ;;  %v2960_v59 = vsel %vm2912_vm8, %v7697_v43, 0.0  ;;  %vm2320_vm11 = vcmp.lt.s32.totalorder %v2272_v27, 600 }
 0x3ea   : > { %v3316_v55 = vpop.xlane.xlu0 %3315  ;;  %v2961_v44 = vsel %vm2913_vm3, %v6566_v22, 0.0  ;;  %v3293_v5 = vmul.f32 1.442695, %v3203_v13  ;;  %vm2321_vm12 = vcmp.lt.s32.totalorder %v2273_v29, 600  ;;  %v7014_v17 = vsel %vm2320_vm11, %v4914_v18, 0.0  ;;  %v7718_v13 = vld [vmem:[#allocation6_spill] sm:$0xff] }
 0x3eb   : > { %4763 = vlog2.f32 %v3316_v55  ;;  %v3308_v48 = vpop.xlane.xlu1 %3307  ;;  %3045 = vadd.xlane.f32.xlu1 %v2959_v60  ;;  %3371 = vadd.xlane.f32.xlu0 %v4746_v14  ;;  %v3838_v55 = vsel %vm3689_vm2, %v6990_v52, 0.0  ;;  %v3301_v14 = vmul.f32 1.442695, %v3207_v2  ;;  %v2274_v60 = vadd.s32 %v5653_v40, %v2224_v58  ;;  %7717 = vst [vmem:[#allocation32_spill] sm:$0xff] %v7014_v17 }
 0x3ec   : > { %4765 = vlog2.f32 %v3320_v45  ;;  %v3839_v22 = vadd.f32 %v3838_v55, %v3837_v35  ;;  %vm3545_vm13 = vcmp.gt.f32.partialorder %v7718_v13, 0.0  ;;  %v3206_v58 = vsub.f32 %v6572_v49, %v6922_v24  ;;  %v7720_v24 = vld [vmem:[#allocation5_spill] sm:$0xff] }
 0x3ed   : > { %4767 = vlog2.f32 %v3308_v48  ;;  %v4750_v45 = vpop.eup %4749  ;;  %v3289_v48 = vmul.f32 1.442695, %v3201_v26  ;;  %v7025_v26 = vsel %vm2919_vm7, %v6544_v54, 0.0  ;;  %v3840_v35 = vsel %vm3689_vm2, %v7014_v17, 0.0 }
 0x3ee   : > { %4769 = vpow2.f32 %v3291_v19  ;;  %v3326_v57 = vpop.xlane.xlu0 %3325  ;;  %v4752_v43 = vpop.eup %4751  ;;  %v2225_v19 = vadd.s32 224, %v5638_v4  ;;  %v3402_v3 = vmul.f32 0.6931472, %v4750_v45  ;;  %v7033_v55 = vsel %vm2917_vm9, %v6580_v25, 0.0  ;;  %v4915_v45 = vld [vmem:[%s5570_s11 + $0xd0] sm:$0xff] }
 0x3ef   : > { %v4754_v2 = vpop.eup %4753  ;;  %v3318_v11 = vpop.xlane.xlu1 %3317  ;;  %3047 = vadd.xlane.f32.xlu1 %v2960_v59  ;;  %3381 = vadd.xlane.f32.xlu0 %v4752_v43  ;;  %vm2322_vm14 = vcmp.lt.s32.totalorder %v2274_v60, 600  ;;  %vm3546_vm15 = vcmp.gt.f32.partialorder %v7720_v24, 0.0  ;;  %v3299_v17 = vmul.f32 1.442695, %v3206_v58  ;;  %vm3548_vm1 = vcmp.gt.f32.partialorder %v6684_v36, 0.0 }
 0x3f0   : > { %v7016_v41 = vpop.eup %4755  ;;  %4771 = vlog2.f32 %v3318_v11  ;;  %v7037_v11 = vsel %vm2321_vm12, %v4915_v45, 0.0  ;;  %v3406_v43 = vmul.f32 0.6931472, %v4754_v2  ;;  %v2275_v18 = vadd.s32 %v5653_v40, %v2225_v19 }
 0x3f1   : > { %v4758_v27 = vpop.eup %4757  ;;  %4773 = vpow2.f32 %v3301_v14  ;;  %7719 = vst [vmem:[#allocation15_spill] sm:$0xff] %v7037_v11  ;;  %v3497_v61 = vadd.f32 %v3402_v3, %v7721_v33  ;;  %v3841_v2 = vadd.f32 %v3840_v35, %v3839_v22  ;;  %v3208_v19 = vsub.f32 %v6558_v39, %v6904_v1 }
 0x3f2   : > { %v3328_v59 = vpop.xlane.xlu0 %3327  ;;  %v4760_v54 = vpop.eup %4759  ;;  %4775 = vpow2.f32 %v3293_v5  ;;  %v3842_v5 = vsel %vm3689_vm2, %v7037_v11, 0.0  ;;  %v3205_v3 = vsub.f32 %v6580_v25, %v6929_v31  ;;  %v2277_v22 = vadd.s32 %v5653_v40, %v2227_v21  ;;  %v7722_v11 = vld [vmem:[#allocation27_spill] sm:$0xff]  ;;  %v7723_v25 = vld [vmem:[#allocation33_spill] sm:$0xff] }
 0x3f3   : > { %v7041_v14 = vpop.eup %4761  ;;  %4777 = vpow2.f32 %v3289_v48  ;;  %v3314_v29 = vpop.xlane.xlu1 %3313  ;;  %3049 = vadd.xlane.f32.xlu1 %v2961_v44  ;;  %3377 = vadd.xlane.f32.xlu0 %v4758_v27  ;;  %v3408_v52 = vmul.f32 0.6931472, %v4760_v54  ;;  %v4916_v27 = vld [vmem:[%s5570_s11 + $0xd8] sm:$0xff]  ;;  %v3499_v1 = vadd.f32 %v3406_v43, %v7722_v11  ;;  %vm2323_vm3 = vcmp.lt.s32.totalorder %v2275_v18, 600 }
 0x3f4   : > { %4779 = vlog2.f32 %v3314_v29  ;;  %v7055_v33 = vsel %vm2322_vm14, %v4916_v27, 0.0  ;;  %v2226_v58 = vadd.s32 232, %v5638_v4  ;;  %v3593_v29 = vsub.f32 %v3497_v61, %v7723_v25  ;;  %v7724_v27 = vld [vmem:[#allocation25_spill] sm:$0xff]  ;;  %v7726_v25 = vld [vmem:[#allocation31_spill] sm:$0xff] }
 0x3f5   : > { %v4764_v45 = vpop.eup %4763  ;;  %4781 = vlog2.f32 %v3326_v57  ;;  %v3843_v60 = vadd.f32 %v3842_v5, %v3841_v2  ;;  %v3500_v11 = vadd.f32 %v3408_v52, %v6497_v56  ;;  %vm3550_vm4 = vcmp.gt.f32.partialorder %v6709_v7, 0.0 }
 0x3f6   : > { %v4766_v48 = vpop.eup %4765  ;;  %v3324_v44 = vpop.xlane.xlu0 %3323  ;;  %v3412_v57 = vmul.f32 0.6931472, %v4764_v45  ;;  %v3844_v43 = vsel %vm3689_vm2, %v7055_v33, 0.0  ;;  %vm2325_vm5 = vcmp.lt.s32.totalorder %v2277_v22, 600  ;;  %v2228_v52 = vadd.s32 248, %v5638_v4 }
 0x3f7   : > { %v4768_v35 = vpop.eup %4767  ;;  %4783 = vlog2.f32 %v3324_v44  ;;  %v7063_v31 = vpop.xlane.xlu1 %3023  ;;  %3053 = vadd.xlane.f32.xlu1 %v7008_v12  ;;  %3383 = vadd.xlane.f32.xlu0 %v6992_v34  ;;  %v3297_v44 = vmul.f32 1.442695, %v3205_v3  ;;  %v3416_v61 = vmul.f32 0.6931472, %v4766_v48  ;;  %v3595_v34 = vsub.f32 %v3499_v1, %v7724_v27 }
 0x3f8   : > { %v7060_v54 = vpop.eup %4769  ;;  %4785 = vlog2.f32 %v3328_v59  ;;  %v3404_v21 = vmul.f32 0.6931472, %v4768_v35  ;;  %v4917_v59 = vld [vmem:[%s5570_s11 + $0xe0] sm:$0xff]  ;;  %v3641_v2 = vsel %vm3545_vm13, %v3593_v29, 0.0  ;;  %v3502_v18 = vadd.f32 %v3412_v57, %v6541_v53 }
 0x3f9   : > { %4787 = vpow2.f32 %v3299_v17  ;;  %v7073_v45 = vsel %vm2323_vm3, %v4917_v59, 0.0  ;;  %v2276_v17 = vadd.s32 %v5653_v40, %v2226_v58  ;;  %vm3549_vm7 = vcmp.gt.f32.partialorder %v6700_v37, 0.0  ;;  %v7725_v35 = vld [vmem:[#allocation29_spill] sm:$0xff] }
 0x3fa   : > { %v4772_v12 = vpop.eup %4771  ;;  %v3498_v56 = vadd.f32 %v3404_v21, %v6473_v62  ;;  %v3845_v62 = vadd.f32 %v3844_v43, %v3843_v60  ;;  %v3846_v1 = vsel %vm3689_vm2, %v7073_v45, 0.0  ;;  %v3596_v58 = vsub.f32 %v3500_v11, %v7725_v35  ;;  %v7727_v21 = vld [vmem:[#allocation36_spill] sm:$0xff]  ;;  %v7728_v35 = vld [vmem:[#allocation38_spill] sm:$0xff] }
 0x3fb   : > { %v7080_v5 = vpop.eup %4773  ;;  %v3322_v48 = vpop.xlane.xlu1 %3321  ;;  %3057 = vadd.xlane.f32.xlu1 %v7033_v55  ;;  %3379 = vadd.xlane.f32.xlu0 %v7016_v41  ;;  %v3414_v29 = vmul.f32 0.6931472, %v4772_v12  ;;  %v7092_v57 = vmul.f32 1.442695, %v3208_v19  ;;  %v3504_v59 = vadd.f32 %v3416_v61, %v7727_v21  ;;  %vm3551_vm8 = vcmp.gt.f32.partialorder %v6719_v23, 0.0  ;;  %v4918_v41 = vld [vmem:[%s5570_s11 + $0xf0] sm:$0xff] }
 0x3fc   : > { %v4776_v3 = vpop.eup %4775  ;;  %v3594_v13 = vsub.f32 %v3498_v56, %v7726_v25  ;;  %4789 = vlog2.f32 %v3322_v48  ;;  %v7098_v55 = vsel %vm2325_vm5, %v4918_v41, 0.0  ;;  %v3643_v11 = vsel %vm3547_vm0, %v3595_v34, 0.0  ;;  %v7729_v21 = vld [vmem:[#allocation35_spill] sm:$0xff]  ;;  %v7730_v41 = vld [vmem:[#allocation37_spill] sm:$0xff] }
 0x3fd   : > { %v4778_v53 = vpop.eup %4777  ;;  %4791 = vpow2.f32 %v3297_v44  ;;  %v2278_v12 = vadd.s32 %v5653_v40, %v2228_v52  ;;  %vm2324_vm9 = vcmp.lt.s32.totalorder %v2276_v17, 600  ;;  %v3690_v44 = vsel %vm3689_vm2, %v3641_v2, 0.0 }
 0x3fe   : > { %v4780_v60 = vpop.eup %4779  ;;  %v3642_v43 = vsel %vm3546_vm15, %v3594_v13, 0.0  ;;  %v3598_v61 = vsub.f32 %v3502_v18, %v6563_v46  ;;  %v3847_v27 = vadd.f32 %v3846_v1, %v3845_v62  ;;  %v3644_v24 = vsel %vm3548_vm1, %v3596_v58, 0.0  ;;  %v4919_v13 = vld [vmem:[%s5570_s11 + $0xe8] sm:$0xff] }
 0x3ff   : > { %v4782_v19 = vpop.eup %4781  ;;  %v3691_v22 = vsel %vm3689_vm2, %v3642_v43, 0.0  ;;  %3061 = vadd.xlane.f32.xlu1 %v7025_v26  ;;  %3389 = vadd.xlane.f32.xlu0 %v4776_v3  ;;  %v3503_v56 = vadd.f32 %v3414_v29, %v6500_v50  ;;  %v3410_v52 = vmul.f32 0.6931472, %v4780_v60  ;;  %v3693_v2 = vsel %vm3689_vm2, %v3643_v11, 0.0  ;;  %v7114_v18 = vpop.xlane.xlu1 %3025 }
 0x400   : > { %v3692_v34 = vadd.f32 %v3691_v22, %v3690_v44  ;;  %v3600_v25 = vsub.f32 %v3504_v59, %v7728_v35  ;;  %v7118_v26 = vsel %vm2324_vm9, %v4919_v13, 0.0  ;;  %v3422_v1 = vmul.f32 0.6931472, %v4782_v19  ;;  %v7731_v35 = vld [vmem:[#allocation39_spill] sm:$0xff] }
 0x401   : > { %v4784_v6 = vpop.eup %4783  ;;  %v3501_v3 = vadd.f32 %v3410_v52, %v6510_v20  ;;  %vm3554_vm10 = vcmp.gt.f32.partialorder %v6752_v38, 0.0  ;;  %vm3553_vm11 = vcmp.gt.f32.partialorder %v6743_v15, 0.0  ;;  %v3848_v50 = vsel %vm3689_vm2, %v7118_v26, 0.0 }
 0x402   : > { %v4786_v48 = vpop.eup %4785  ;;  %v3420_v46 = vmul.f32 0.6931472, %v4784_v6  ;;  %v3694_v36 = vadd.f32 %v3693_v2, %v3692_v34  ;;  %v3695_v58 = vsel %vm3689_vm2, %v3644_v24, 0.0  ;;  %v3646_v17 = vsel %vm3550_vm4, %v3598_v61, 0.0  ;;  %v4920_v34 = vld [vmem:[%s5570_s11 + $0xf8] sm:$0xff] }
 0x403   : > { %v7120_v62 = vpop.eup %4787  ;;  %3385 = vadd.xlane.f32.xlu0 %v4778_v53  ;;  %vm2326_vm12 = vcmp.lt.s32.totalorder %v2278_v12, 600  ;;  %v2229_v29 = vadd.s32 256, %v5638_v4  ;;  %v3599_v59 = vsub.f32 %v3503_v56, %v7729_v21  ;;  %v3424_v20 = vmul.f32 0.6931472, %v4786_v48 }
 0x404   : > { %v3597_v60 = vsub.f32 %v3501_v3, %v7730_v41  ;;  %v3696_v11 = vadd.f32 %v3695_v58, %v3694_v36  ;;  %v3334_v43 = vpop.xlane.xlu0 %3333  ;;  %v3648_v19 = vsel %vm3552_vm6, %v3600_v25, 0.0  ;;  %vm3555_vm13 = vcmp.gt.f32.partialorder %v6765_v9, 0.0 }
 0x405   : > { %v3506_v7 = vadd.f32 %v3420_v46, %v6587_v28  ;;  %v3344_v44 = vpop.xlane.xlu1 %3343  ;;  %v3850_v53 = vsel %vm3689_vm2, %v7098_v55, 0.0  ;;  %v3849_v61 = vadd.f32 %v3848_v50, %v3847_v27  ;;  %v3699_v6 = vsel %vm3689_vm2, %v3646_v17, 0.0  ;;  %v7732_v17 = vld [vmem:[#allocation41_spill] sm:$0xff] }
 0x406   : > { %v4790_v22 = vpop.eup %4789  ;;  %v3507_v24 = vadd.f32 %v3422_v1, %v6577_v51  ;;  %vm3556_vm14 = vcmp.gt.f32.partialorder %v6780_v10, 0.0  ;;  %v3645_v42 = vsel %vm3549_vm7, %v3597_v60, 0.0  ;;  %v7146_v56 = vsel %vm2326_vm12, %v4920_v34, 0.0 }
 0x407   : > { %v4792_v28 = vpop.eup %4791  ;;  %v3697_v52 = vsel %vm3689_vm2, %v3645_v42, 0.0  ;;  %v3418_v48 = vmul.f32 0.6931472, %v4790_v22  ;;  %3391 = vadd.xlane.f32.xlu0 %v7041_v14  ;;  %v2231_v27 = vadd.s32 272, %v5638_v4  ;;  %v2279_v2 = vadd.s32 %v5653_v40, %v2229_v29 }
 0x408   : > { %v3647_v51 = vsel %vm3551_vm8, %v3599_v59, 0.0  ;;  %v3508_v37 = vadd.f32 %v3424_v20, %v7731_v35  ;;  %v3698_v25 = vadd.f32 %v3697_v52, %v3696_v11  ;;  %4793 = vlog2.f32 %v3334_v43  ;;  %v3330_v12 = vpop.xlane.xlu0 %3329  ;;  %v4922_v52 = vld [vmem:[%s5570_s11 + $0x108] sm:$0xff] }
 0x409   : > { %v3602_v46 = vsub.f32 %v3506_v7, %v6608_v16  ;;  %v3505_v13 = vadd.f32 %v3418_v48, %v6592_v63  ;;  %4795 = vlog2.f32 %v3330_v12  ;;  %v3851_v36 = vadd.f32 %v3850_v53, %v3849_v61  ;;  %v3340_v16 = vpop.xlane.xlu1 %3339  ;;  %v7733_v63 = vld [vmem:[#allocation43_spill] sm:$0xff]  ;;  %v4921_v7 = vld [vmem:[%s5570_s11 + $0x100] sm:$0xff] }
 0x40a   : > { %v3703_v14 = vsel %vm3689_vm2, %v3648_v19, 0.0  ;;  %v3700_v1 = vadd.f32 %v3699_v6, %v3698_v25  ;;  %v3852_v3 = vsel %vm3689_vm2, %v7146_v56, 0.0  ;;  %v2230_v23 = vadd.s32 264, %v5638_v4  ;;  %v4923_v25 = vld [vmem:[%s5570_s11 + $0x110] sm:$0xff] }
 0x40b   : > { %v3603_v50 = vsub.f32 %v3507_v24, %v6596_v32  ;;  %v3701_v58 = vsel %vm3689_vm2, %v3647_v51, 0.0  ;;  %v3601_v29 = vsub.f32 %v3505_v13, %v7732_v17  ;;  %3387 = vadd.xlane.f32.xlu0 %v7060_v54  ;;  %vm2327_vm15 = vcmp.lt.s32.totalorder %v2279_v2, 600  ;;  %v7736_v17 = vld [vmem:[#allocation16_spill] sm:$0xff] }
 0x40c   : > { %v3604_v21 = vsub.f32 %v3508_v37, %v7733_v63  ;;  %v3702_v59 = vadd.f32 %v3701_v58, %v3700_v1  ;;  %v3336_v20 = vpop.xlane.xlu0 %3335  ;;  %v2281_v41 = vadd.s32 %v5653_v40, %v2231_v27  ;;  %v2280_v60 = vadd.s32 %v5653_v40, %v2230_v23 }
 0x40d   : > { %v3650_v32 = vsel %vm3554_vm10, %v3602_v46, 0.0  ;;  %v3649_v11 = vsel %vm3553_vm11, %v3601_v29, 0.0  ;;  %4797 = vlog2.f32 %v3336_v20  ;;  %v3853_v43 = vadd.f32 %v3852_v3, %v3851_v36  ;;  %v7734_v36 = vld [vmem:[#allocation47_spill] sm:$0xff]  ;;  %v7735_v3 = vld [vmem:[#allocation76_spill] sm:$0xff] }
 0x40e   : > { %v3704_v19 = vadd.f32 %v3703_v14, %v3702_v59  ;;  %v3705_v54 = vsel %vm3689_vm2, %v3649_v11, 0.0  ;;  %4799 = vlog2.f32 %v3340_v16  ;;  %v7174_v53 = vsel %vm2327_vm15, %v4921_v7, 0.0  ;;  %v7737_v29 = vld [vmem:[#allocation19_spill] sm:$0xff]  ;;  %v7738_v16 = vld [vmem:[#allocation49_spill] sm:$0xff] }
 0x40f   : > { %4801 = vpow2.f32 %v7092_v57  ;;  %3397 = vadd.xlane.f32.xlu0 %v7080_v5  ;;  %v3854_v38 = vsel %vm3689_vm2, %v7174_v53, 0.0  ;;  %v2232_v15 = vadd.s32 280, %v5638_v4  ;;  %vm2328_vm0 = vcmp.lt.s32.totalorder %v2280_v60, 600  ;;  %v7739_v11 = vld [vmem:[#allocation45_spill] sm:$0xff] }
 0x410   : > { %v3651_v61 = vsel %vm3555_vm13, %v3603_v50, 0.0  ;;  %v3706_v22 = vadd.f32 %v3705_v54, %v3704_v19  ;;  %4803 = vlog2.f32 %v3344_v44  ;;  %v3332_v6 = vpop.xlane.xlu0 %3331  ;;  %v3652_v24 = vsel %vm3556_vm14, %v3604_v21, 0.0  ;;  %v4924_v54 = vld [vmem:[%s5570_s11 + $0x118] sm:$0xff] }
 0x411   : > { %v3707_v57 = vsel %vm3689_vm2, %v3650_v32, 0.0  ;;  %4805 = vlog2.f32 %v3332_v6  ;;  %vm2329_vm1 = vcmp.lt.s32.totalorder %v2281_v41, 600  ;;  %v3855_v34 = vadd.f32 %v3854_v38, %v3853_v43  ;;  %v7740_v6 = vld [vmem:[#allocation22_spill] sm:$0xff] }
 0x412   : > { %v4794_v5 = vpop.eup %4793  ;;  %v3708_v42 = vadd.f32 %v3707_v57, %v3706_v22  ;;  %v7187_v48 = vsel %vm2328_vm0, %v4922_v52, 0.0  ;;  %v3709_v9 = vsel %vm3689_vm2, %v3651_v61, 0.0  ;;  %v2282_v44 = vadd.s32 %v5653_v40, %v2232_v15 }
 0x413   : > { %v4796_v27 = vpop.eup %4795  ;;  %3393 = vadd.xlane.f32.xlu0 %v4792_v28  ;;  %v3856_v10 = vsel %vm3689_vm2, %v7187_v48, 0.0  ;;  %v2233_v2 = vadd.s32 288, %v5638_v4  ;;  %v3711_v37 = vsel %vm3689_vm2, %v3652_v24, 0.0  ;;  %v7196_v12 = vsel %vm2329_vm1, %v4923_v25, 0.0  ;;  %v7741_v24 = vld [vmem:[#allocation81_spill] sm:$0xff] }
 0x414   : > { %v3710_v51 = vadd.f32 %v3709_v9, %v3708_v42  ;;  %v3426_v35 = vmul.f32 0.6931472, %v4796_v27  ;;  %v3430_v46 = vmul.f32 0.6931472, %v4794_v5  ;;  %v3857_v1 = vadd.f32 %v3856_v10, %v3855_v34  ;;  %v7742_v5 = vld [vmem:[#allocation42_spill] sm:$0xff]  ;;  %v7743_v10 = vld [vmem:[#allocation40_spill] sm:$0xff] }
 0x415   : > { %vm3557_vm3 = vcmp.gt.f32.partialorder %v7735_v3, 0.0  ;;  %v3858_v23 = vsel %vm3689_vm2, %v7196_v12, 0.0  ;;  %vm2330_vm4 = vcmp.lt.s32.totalorder %v2282_v44, 600  ;;  %v2283_v50 = vadd.s32 %v5653_v40, %v2233_v2  ;;  %v7747_v3 = vld [vmem:[#allocation24_spill] sm:$0xff] }
 0x416   : > { %v3712_v13 = vadd.f32 %v3711_v37, %v3710_v51  ;;  %v3509_v14 = vadd.f32 %v3426_v35, %v7734_v36  ;;  %vm2914_vm5 = vcmp.eq.s32.totalorder %v6197_v0, %v7736_v17  ;;  %vm2916_vm6 = vcmp.eq.s32.totalorder %v6197_v0, %v7737_v29  ;;  %v7744_v51 = vld [vmem:[#allocation44_spill] sm:$0xff]  ;;  %v4925_v37 = vld [vmem:[%s5570_s11 + $0x120] sm:$0xff]  ;;  %v7750_v17 = vld [vmem:[#allocation51_spill] sm:$0xff] }
 0x417   : > { %v4798_v28 = vpop.eup %4797  ;;  %3395 = vadd.xlane.f32.xlu0 %v7120_v62  ;;  %v2962_v62 = vsel %vm2914_vm5, %v7711_v47, 0.0  ;;  %v2235_v41 = vadd.s32 304, %v5638_v4  ;;  %v2234_v60 = vadd.s32 296, %v5638_v4  ;;  %v3511_v43 = vadd.f32 %v3430_v46, %v7739_v11  ;;  %v7745_v36 = vld [vmem:[#allocation48_spill] sm:$0xff] }
 0x418   : > { %v4800_v58 = vpop.eup %4799  ;;  %v3605_v63 = vsub.f32 %v3509_v14, %v7738_v16  ;;  %v3432_v21 = vmul.f32 0.6931472, %v4798_v28  ;;  %v3342_v59 = vpop.xlane.xlu0 %3341  ;;  %v7217_v7 = vsel %vm2330_vm4, %v4924_v54, 0.0  ;;  %v3859_v38 = vadd.f32 %v3858_v23, %v3857_v1  ;;  %v7746_v14 = vld [vmem:[#allocation79_spill] sm:$0xff]  ;;  %v7748_v23 = vld [vmem:[#allocation89_spill] sm:$0xff] }
 0x419   : > { %v4802_v20 = vpop.eup %4801  ;;  %4807 = vlog2.f32 %v3342_v59  ;;  %v3436_v22 = vmul.f32 0.6931472, %v4800_v58  ;;  %v3860_v47 = vsel %vm3689_vm2, %v7217_v7, 0.0  ;;  %vm2331_vm7 = vcmp.lt.s32.totalorder %v2283_v50, 600  ;;  %v7749_v50 = vld [vmem:[#allocation50_spill] sm:$0xff] }
 0x41a   : > { %v4804_v32 = vpop.eup %4803  ;;  %v3653_v19 = vsel %vm3557_vm3, %v3605_v63, 0.0  ;;  %vm2918_vm8 = vcmp.eq.s32.totalorder %v6197_v0, %v7740_v6  ;;  %vm3559_vm9 = vcmp.gt.f32.partialorder %v7741_v24, 0.0  ;;  %v3512_v42 = vadd.f32 %v3432_v21, %v7742_v5  ;;  %v7751_v21 = vld [vmem:[#allocation46_spill] sm:$0xff]  ;;  %v7754_v5 = vld [vmem:[#allocation92_spill] sm:$0xff] }
 0x41b   : > { %v4806_v15 = vpop.eup %4805  ;;  %v3713_v61 = vsel %vm3689_vm2, %v3653_v19, 0.0  ;;  %3399 = vadd.xlane.f32.xlu0 %v4802_v20  ;;  %v3440_v27 = vmul.f32 0.6931472, %v4804_v32  ;;  %v2285_v9 = vadd.s32 %v5653_v40, %v2235_v41  ;;  %v2284_v44 = vadd.s32 %v5653_v40, %v2234_v60  ;;  %v7752_v20 = vld [vmem:[#allocation85_spill] sm:$0xff]  ;;  %v7756_v6 = vld [vmem:[#allocation52_spill] sm:$0xff] }
 0x41c   : > { %v3714_v57 = vadd.f32 %v3713_v61, %v3712_v13  ;;  %v3428_v34 = vmul.f32 0.6931472, %v4806_v15  ;;  %v3338_v52 = vpop.xlane.xlu0 %3337  ;;  %v3607_v2 = vsub.f32 %v3511_v43, %v7743_v10  ;;  %v7231_v25 = vsel %vm2331_vm7, %v4925_v37, 0.0  ;;  %v7753_v43 = vld [vmem:[#allocation58_spill] sm:$0xff] }
 0x41d   : > { %4809 = vlog2.f32 %v3338_v52  ;;  %v3861_v46 = vadd.f32 %v3860_v47, %v3859_v38  ;;  %v3514_v13 = vadd.f32 %v3436_v22, %v7745_v36  ;;  %vm3558_vm10 = vcmp.gt.f32.partialorder %v7746_v14, 0.0  ;;  %v4926_v22 = vld [vmem:[%s5570_s11 + $0x128] sm:$0xff]  ;;  %v7755_v52 = vld [vmem:[#allocation56_spill] sm:$0xff] }
 0x41e   : > { %v3510_v35 = vadd.f32 %v3428_v34, %v7744_v51  ;;  %v3862_v1 = vsel %vm3689_vm2, %v7231_v25, 0.0  ;;  %v2236_v28 = vadd.s32 312, %v5638_v4  ;;  %vm2920_vm11 = vcmp.eq.s32.totalorder %v6197_v0, %v7747_v3  ;;  %v7757_v14 = vld [vmem:[#allocation91_spill] sm:$0xff]  ;;  %v7760_v3 = vld [vmem:[#allocation54_spill] sm:$0xff] }
 0x41f   : > { %3051 = vadd.xlane.f32.xlu0 %v2962_v62  ;;  %vm3562_vm12 = vcmp.gt.f32.partialorder %v7748_v23, 0.0  ;;  %v3608_v58 = vsub.f32 %v3512_v42, %v7749_v50  ;;  %v2964_v63 = vsel %vm2916_vm6, %v7707_v8, 0.0  ;;  %v3516_v59 = vadd.f32 %v3440_v27, %v7751_v21  ;;  %v4928_v21 = vld [vmem:[%s5570_s11 + $0x138] sm:$0xff] }
 0x420   : > { %v3606_v16 = vsub.f32 %v3510_v35, %v7750_v17  ;;  %vm3560_vm13 = vcmp.gt.f32.partialorder %v7752_v20, 0.0  ;;  %vm2333_vm14 = vcmp.lt.s32.totalorder %v2285_v9, 600  ;;  %vm2332_vm15 = vcmp.lt.s32.totalorder %v2284_v44, 600  ;;  %v7759_v17 = vld [vmem:[#allocation53_spill] sm:$0xff]  ;;  %v7761_v20 = vld [vmem:[#allocation55_spill] sm:$0xff] }
 0x421   : > { %v3655_v62 = vsel %vm3559_vm9, %v3607_v2, 0.0  ;;  %v3863_v60 = vadd.f32 %v3862_v1, %v3861_v46  ;;  %v2237_v32 = vadd.s32 320, %v5638_v4  ;;  %v3610_v19 = vsub.f32 %v3514_v13, %v7753_v43 }
 0x422   : > { %v3654_v41 = vsel %vm3558_vm10, %v3606_v16, 0.0  ;;  %v2286_v29 = vadd.s32 %v5653_v40, %v2236_v28  ;;  %v2239_v54 = vadd.s32 336, %v5638_v4  ;;  %v3656_v38 = vsel %vm3560_vm13, %v3608_v58, 0.0  ;;  %v7758_v58 = vld [vmem:[#allocation88_spill] sm:$0xff] }
 0x423   : > { %v4808_v11 = vpop.eup %4807  ;;  %v3715_v8 = vsel %vm3689_vm2, %v3654_v41, 0.0  ;;  %3055 = vadd.xlane.f32.xlu0 %v2964_v63  ;;  %v7257_v47 = vsel %vm2332_vm15, %v4926_v22, 0.0  ;;  %v3717_v24 = vsel %vm3689_vm2, %v3655_v62, 0.0  ;;  %vm3564_vm0 = vcmp.gt.f32.partialorder %v7754_v5, 0.0 }
 0x424   : > { %v3716_v15 = vadd.f32 %v3715_v8, %v3714_v57  ;;  %v3438_v61 = vmul.f32 0.6931472, %v4808_v11  ;;  %v2966_v42 = vsel %vm2918_vm8, %v6572_v49, 0.0  ;;  %v3864_v34 = vsel %vm3689_vm2, %v7257_v47, 0.0  ;;  %v4927_v57 = vld [vmem:[%s5570_s11 + $0x130] sm:$0xff] }
 0x425   : > { %v3612_v27 = vsub.f32 %v3516_v59, %v7755_v52  ;;  %v7270_v10 = vsel %vm2333_vm14, %v4927_v57, 0.0  ;;  %v2287_v2 = vadd.s32 %v5653_v40, %v2237_v32  ;;  %v3658_v35 = vsel %vm3562_vm12, %v3610_v19, 0.0  ;;  %v4929_v32 = vld [vmem:[%s5570_s11 + $0x140] sm:$0xff] }
 0x426   : > { %v3718_v44 = vadd.f32 %v3717_v24, %v3716_v15  ;;  %v3719_v37 = vsel %vm3689_vm2, %v3656_v38, 0.0  ;;  %vm2334_vm1 = vcmp.lt.s32.totalorder %v2286_v29, 600  ;;  %v2289_v49 = vadd.s32 %v5653_v40, %v2239_v54  ;;  %v4930_v24 = vld [vmem:[%s5570_s11 + $0x150] sm:$0xff] }
 0x427   : > { %v4810_v51 = vpop.eup %4809  ;;  %3059 = vadd.xlane.f32.xlu0 %v2966_v42  ;;  %v3515_v46 = vadd.f32 %v3438_v61, %v7756_v6  ;;  %v3865_v9 = vadd.f32 %v3864_v34, %v3863_v60  ;;  %vm3563_vm3 = vcmp.gt.f32.partialorder %v7757_v14, 0.0  ;;  %v2968_v1 = vsel %vm2920_vm11, %v6558_v39, 0.0 }
 0x428   : > { %v3720_v36 = vadd.f32 %v3719_v37, %v3718_v44  ;;  %v3434_v13 = vmul.f32 0.6931472, %v4810_v51  ;;  %v3866_v28 = vsel %vm3689_vm2, %v7270_v10, 0.0  ;;  %v2238_v23 = vadd.s32 328, %v5638_v4 }
 0x429   : > { %v3660_v50 = vsel %vm3564_vm0, %v3612_v27, 0.0  ;;  %vm3561_vm4 = vcmp.gt.f32.partialorder %v7758_v58, 0.0  ;;  %vm2335_vm5 = vcmp.lt.s32.totalorder %v2287_v2, 600  ;;  %v3723_v63 = vsel %vm3689_vm2, %v3658_v35, 0.0  ;;  %v4931_v27 = vld [vmem:[%s5570_s11 + $0x148] sm:$0xff] }
 0x42a   : > { %v3513_v16 = vadd.f32 %v3434_v13, %v7759_v17  ;;  %v7293_v0 = vsel %vm2334_vm1, %v4928_v21, 0.0  ;;  %v2288_v39 = vadd.s32 %v5653_v40, %v2238_v23  ;;  %vm2337_vm6 = vcmp.lt.s32.totalorder %v2289_v49, 600 }
 0x42b   : > { %3063 = vadd.xlane.f32.xlu0 %v2968_v1  ;;  %v3611_v59 = vsub.f32 %v3515_v46, %v7760_v3  ;;  %v3867_v41 = vadd.f32 %v3866_v28, %v3865_v9  ;;  %v2241_v60 = vadd.s32 352, %v5638_v4  ;;  %v7300_v11 = vsel %vm2335_vm5, %v4929_v32, 0.0  ;;  %v4932_v46 = vld [vmem:[%s5570_s11 + $0x158] sm:$0xff]  ;;  %v4934_v3 = vld [vmem:[%s5570_s11 + $0x168] sm:$0xff] }
 0x42c   : > { %v3609_v62 = vsub.f32 %v3513_v16, %v7761_v20  ;;  %vm2336_vm7 = vcmp.lt.s32.totalorder %v2288_v39, 600  ;;  %v3868_v43 = vsel %vm3689_vm2, %v7293_v0, 0.0  ;;  %v2240_v19 = vadd.s32 344, %v5638_v4  ;;  %v4933_v16 = vld [vmem:[%s5570_s11 + $0x160] sm:$0xff] }
 0x42d   : > { %v3869_v29 = vadd.f32 %v3868_v43, %v3867_v41  ;;  %v2291_v54 = vadd.s32 %v5653_v40, %v2241_v60  ;;  %v2243_v38 = vadd.s32 368, %v5638_v4  ;;  %v3870_v61 = vsel %vm3689_vm2, %v7300_v11, 0.0  ;;  %v4935_v43 = vld [vmem:[%s5570_s11 + $0x170] sm:$0xff] }
 0x42e   : > { %v3657_v8 = vsel %vm3561_vm4, %v3609_v62, 0.0  ;;  %v2290_v22 = vadd.s32 %v5653_v40, %v2240_v19  ;;  %v7315_v5 = vsel %vm2337_vm6, %v4930_v24, 0.0  ;;  %v3659_v42 = vsel %vm3563_vm3, %v3611_v59, 0.0 }
 0x42f   : > { %v3721_v15 = vsel %vm3689_vm2, %v3657_v8, 0.0  ;;  %v7321_v44 = vsel %vm2336_vm7, %v4931_v27, 0.0  ;;  %v3871_v57 = vadd.f32 %v3870_v61, %v3869_v29  ;;  %v2242_v51 = vadd.s32 360, %v5638_v4  ;;  %v4936_v8 = vld [vmem:[%s5570_s11 + $0x178] sm:$0xff]  ;;  %s3918_s11 = sshll.u32 %s285_s29, 4  ;;  %s7460_s11 = int_to_ptr.vmem [resolvable:$true] %s3918_s11 }
 0x430   : > { %v3722_v34 = vadd.f32 %v3721_v15, %v3720_v36  ;;  %v3350_v52 = vpop.xlane.xlu1 %3349  ;;  %v3872_v2 = vsel %vm3689_vm2, %v7321_v44, 0.0  ;;  %vm2338_vm8 = vcmp.lt.s32.totalorder %v2290_v22, 600  ;;  %vm2339_vm9 = vcmp.lt.s32.totalorder %v2291_v54, 600  ;;  %s4937_s13 = scalar_lea.vmem %s7460_s11, 32  ;;  %p4944_p0 = scmp.lt.s32.totalorder %s7460_s11, %s4942_s25 }
 0x431   : > { %4811 = vlog2.f32 %v3350_v52  ;;  %v3873_v37 = vadd.f32 %v3872_v2, %v3871_v57  ;;  %v2293_v49 = vadd.s32 %v5653_v40, %v2243_v38  ;;  %v3725_v6 = vsel %vm3689_vm2, %v3659_v42, 0.0  ;;  %v7762_v57 = vld [vmem:[#allocation59_spill] sm:$0xff]  ;;  %p4938_p11 = scmp.ne.s32.totalorder %s7460_s11, %s4937_s13  ;;  %p4945_p1 = scmp.lt.s32.totalorder %s4943_s17, %s4937_s13 }
 0x432   : > { %v3724_v35 = vadd.f32 %v3723_v63, %v3722_v34  ;;  %v7329_v36 = vsel %vm2338_vm8, %v4932_v46, 0.0  ;;  %v3874_v13 = vsel %vm3689_vm2, %v7315_v5, 0.0  ;;  %v2292_v9 = vadd.s32 %v5653_v40, %v2242_v51 }
 0x433   : > { %v3727_v14 = vsel %vm3689_vm2, %v3660_v50, 0.0  ;;  %v3875_v58 = vadd.f32 %v3874_v13, %v3873_v37  ;;  %v3876_v17 = vsel %vm3689_vm2, %v7329_v36, 0.0  ;;  %v7339_v63 = vsel %vm2339_vm9, %v4933_v16, 0.0  ;;  %v7763_v37 = vld [vmem:[#allocation61_spill] sm:$0xff]  ;;  %p4939_p12 = pnand %p4938_p11, %p5077_p5  ;;  %p4946_p2 = por %p4945_p1, %p4944_p0 }
 0x434   : > { %v3352_v1 = vpop.xlane.xlu1 %3351  ;;  %v3726_v28 = vadd.f32 %v3725_v6, %v3724_v35  ;;  %v3346_v23 = vpop.xlane.xlu0 %3345  ;;  %vm2340_vm10 = vcmp.lt.s32.totalorder %v2292_v9, 600  ;;  %v2244_v21 = vadd.s32 376, %v5638_v4  ;;  %v3878_v20 = vsel %vm3689_vm2, %v7339_v63, 0.0  ;;  %v7764_v6 = vld [vmem:[#allocation57_spill] sm:$0xff] }
 0x435   : > { %4813 = vlog2.f32 %v3352_v1  ;;  %v3877_v50 = vadd.f32 %v3876_v17, %v3875_v58  ;;  %v7343_v59 = vsel %vm2340_vm10, %v4934_v3, 0.0  ;;  %vm2341_vm11 = vcmp.lt.s32.totalorder %v2293_v49, 600  ;;  %v7765_v13 = vld [vmem:[#allocation93_spill] sm:$0xff]  ;;  %v7766_v1 = vld [vmem:[#allocation63_spill] sm:$0xff]  ;;  %v7768_v17 = vld [vmem:[#allocation60_spill] sm:$0xff]  ;;  %p4940_p13 = pneg %p4939_p12 }
 0x436   : > { %v3728_v39 = vadd.f32 %v3727_v14, %v3726_v28  ;;  %4815 = vlog2.f32 %v3346_v23  ;;  %v3880_v62 = vsel %vm3689_vm2, %v7343_v59, 0.0  ;;  %v2294_v41 = vadd.s32 %v5653_v40, %v2244_v21  ;;  %v7767_v23 = vld [vmem:[#allocation62_spill] sm:$0xff]  ;;  %v7769_v3 = vld [vmem:[#allocation11_spill] sm:$0xff] }
 0x437   : > { %v3879_v32 = vadd.f32 %v3878_v20, %v3877_v50  ;;  %v7351_v19 = vsel %vm2341_vm11, %v4935_v43, 0.0  ;;  %vm3565_vm13 = vcmp.gt.f32.partialorder %v7765_v13, 0.0  ;;  %v5002_v21 = vmov 1   ;;  %v7773_v13 = vld [vmem:[#allocation68_spill] sm:$0xff]  ;;  %p4947_p3 = pnand %p4946_p2, %p4940_p13 }
 0x438   : > { %v3348_v60 = vpop.xlane.xlu1 %3347  ;;  %vm2342_vm12 = vcmp.lt.s32.totalorder %v2294_v41, 600  ;;  %v3882_v38 = vsel %vm3689_vm2, %v7351_v19, 0.0  ;;  %4469 = vset.pattern.permute.xlu1 %v5002_v21  ;;  %4470 = vset.pattern.permute.xlu0 %v5002_v21  ;;  %vm3567_vm14 = vcmp.gt.f32.partialorder %v7769_v3, 0.0  ;;  %v7771_v41 = vld [vmem:[#allocation65_spill] sm:$0xff]  ;;  %vm3568_vm0 = vcmp.gt.f32.partialorder %v6969_v30, 0.0  ;;  %v7777_v21 = vld [vmem:[#allocation64_spill] sm:$0xff] }
 0x439   : > { %4817 = vlog2.f32 %v3348_v60  ;;  %v3881_v4 = vadd.f32 %v3880_v62, %v3879_v32  ;;  %v7354_v29 = vsel %vm2342_vm12, %v4936_v8, 0.0  ;;  %v7770_v62 = vld [vmem:[#allocation94_spill] sm:$0xff]  ;;  %vm3572_vm5 = vcmp.gt.f32.partialorder %v7055_v33, 0.0 }
 0x43a   : > { %v3884_v15 = vsel %vm3689_vm2, %v7354_v29, 0.0  ;;  %vm3566_vm15 = vcmp.gt.f32.partialorder %v7770_v62, 0.0  ;;  %v7778_v62 = vld [vmem:[#allocation72_spill] sm:$0xff]  ;;  %vm3573_vm6 = vcmp.gt.f32.partialorder %v7073_v45, 0.0  ;;  %vm3575_vm7 = vcmp.gt.f32.partialorder %v7098_v55, 0.0 }
 0x43b   : > { %v4812_v54 = vpop.eup %4811  ;;  %v3883_v40 = vadd.f32 %v3882_v38, %v3881_v4  ;;  %v7772_v4 = vld [vmem:[#allocation66_spill] sm:$0xff]  ;;  %vm3574_vm8 = vcmp.gt.f32.partialorder %v7118_v26, 0.0  ;;  %vm3576_vm9 = vcmp.gt.f32.partialorder %v7146_v56, 0.0  ;;  %vm3577_vm10 = vcmp.gt.f32.partialorder %v7174_v53, 0.0 }
 0x43c   : > { %v3446_v61 = vmul.f32 0.6931472, %v4812_v54  ;;  %vm3579_vm11 = vcmp.gt.f32.partialorder %v7196_v12, 0.0  ;;  %vm3578_vm12 = vcmp.gt.f32.partialorder %v7187_v48, 0.0 }
 0x43d   : > { %v3885_v22 = vadd.f32 %v3884_v15, %v3883_v40 }
 0x43e   : > { %v3519_v2 = vadd.f32 %v3446_v61, %v7762_v57 }
 0x43f   : > { %v4814_v24 = vpop.eup %4813  ;;  %v3886_v52 = vrot.slane %v3885_v22, 4 }
 0x440   : > { %v4816_v42 = vpop.eup %4815  ;;  %v3448_v34 = vmul.f32 0.6931472, %v4814_v24  ;;  %v3615_v58 = vsub.f32 %v3519_v2, %v7767_v23  ;;  %v7775_v23 = vld [vmem:[#allocation13_spill] sm:$0xff] }
 0x441   : > { %v3442_v27 = vmul.f32 0.6931472, %v4816_v42  ;;  %v3887_v51 = vadd.f32 %v3886_v52, %v3885_v22  ;;  %vm3569_vm1 = vcmp.gt.f32.partialorder %v7775_v23, 0.0 }
 0x442   : > { %v3520_v46 = vadd.f32 %v3448_v34, %v7764_v6  ;;  %v3663_v15 = vsel %vm3567_vm14, %v3615_v58, 0.0  ;;  %vm3581_vm14 = vcmp.gt.f32.partialorder %v7231_v25, 0.0 }
 0x443   : > { %v4818_v35 = vpop.eup %4817  ;;  %v3517_v49 = vadd.f32 %v3442_v27, %v7763_v37  ;;  %v3888_v14 = vrot.slane %v3887_v51, 2  ;;  %v3733_v27 = vsel %vm3689_vm2, %v3663_v15, 0.0 }
 0x444   : > { %v3444_v9 = vmul.f32 0.6931472, %v4818_v35  ;;  %v3616_v60 = vsub.f32 %v3520_v46, %v7771_v41 }
 0x445   : > { %v3613_v28 = vsub.f32 %v3517_v49, %v7766_v1  ;;  %v3889_v50 = vadd.f32 %v3888_v14, %v3887_v51  ;;  %v7774_v14 = vld [vmem:[#allocation70_spill] sm:$0xff] }
 0x446   : > { %v3518_v16 = vadd.f32 %v3444_v9, %v7768_v17  ;;  %v3664_v24 = vsel %vm3568_vm0, %v3616_v60, 0.0  ;;  %v7776_v17 = vld [vmem:[#allocation74_spill] sm:$0xff]  ;;  %vm3582_vm0 = vcmp.gt.f32.partialorder %v7257_v47, 0.0 }
 0x447   : > { %v3661_v20 = vsel %vm3565_vm13, %v3613_v28, 0.0  ;;  %v3890_v54 = vrot.slane %v3889_v50, 1  ;;  %v3735_v2 = vsel %vm3689_vm2, %v3664_v24, 0.0  ;;  %vm3580_vm13 = vcmp.gt.f32.partialorder %v7217_v7, 0.0 }
 0x448   : > { %v3729_v32 = vsel %vm3689_vm2, %v3661_v20, 0.0  ;;  %v3614_v43 = vsub.f32 %v3518_v16, %v7772_v4  ;;  %v3358_v8 = vpop.xlane.xlu0 %3357 }
 0x449   : > { %v3730_v38 = vadd.f32 %v3729_v32, %v3728_v39  ;;  %4819 = vlog2.f32 %v3358_v8  ;;  %v3891_v61 = vadd.f32 %v3890_v54, %v3889_v50  ;;  %v7779_v32 = vld [vmem:[#allocation67_spill] sm:$0xff]  ;;  %v7781_v54 = vld [vmem:[#allocation32_spill] sm:$0xff] }
 0x44a   : > { %v3662_v40 = vsel %vm3566_vm15, %v3614_v43, 0.0  ;;  %v7780_v43 = vld [vmem:[#allocation15_spill] sm:$0xff]  ;;  %vm3570_vm4 = vcmp.gt.f32.partialorder %v7781_v54, 0.0  ;;  %vm3583_vm15 = vcmp.gt.f32.partialorder %v7270_v10, 0.0  ;;  %v7795_v10 = vld [vmem:[#allocation26_spill] sm:$0xff] }
 0x44b   : > { %v3731_v22 = vsel %vm3689_vm2, %v3662_v40, 0.0  ;;  %3900 = vperm.xlu0 %4470, %v3891_v61   ;;  %vm3571_vm3 = vcmp.gt.f32.partialorder %v7780_v43, 0.0  ;;  %v7782_v40 = vld [vmem:[#allocation75_spill] sm:$0xff] }
 0x44c   : > { %v3732_v42 = vadd.f32 %v3731_v22, %v3730_v38  ;;  %v3354_v34 = vpop.xlane.xlu1 %3353  ;;  %v3360_v52 = vpop.xlane.xlu0 %3359  ;;  %v7786_v54 = vld [vmem:[#allocation71_spill] sm:$0xff] }
 0x44d   : > { %4821 = vlog2.f32 %v3354_v34 }
 0x44e   : > { %v3734_v57 = vadd.f32 %v3733_v27, %v3732_v42  ;;  %4823 = vlog2.f32 %v3360_v52 }
 0x450   : > { %v3736_v30 = vadd.f32 %v3735_v2, %v3734_v57  ;;  %v3356_v39 = vpop.xlane.xlu1 %3355 }
 0x451   : > { %4825 = vlog2.f32 %v3356_v39 }
 0x453   : > { %v4820_v51 = vpop.eup %4819 }
 0x454   : > { %v3454_v35 = vmul.f32 0.6931472, %v4820_v51  ;;  %v7379_v58 = vpop.xlane.xlu1 %3027 }
 0x456   : > { %v3523_v9 = vadd.f32 %v3454_v35, %v7773_v13 }
 0x457   : > { %v4822_v37 = vpop.eup %4821 }
 0x458   : > { %v4824_v49 = vpop.eup %4823  ;;  %v3450_v6 = vmul.f32 0.6931472, %v4822_v37  ;;  %v3619_v41 = vsub.f32 %v3523_v9, %v7778_v62  ;;  %v3030_v24 = vpop.xlane.xlu1 %3029 }
 0x459   : > { %v3456_v46 = vmul.f32 0.6931472, %v4824_v49 }
 0x45a   : > { %v3521_v1 = vadd.f32 %v3450_v6, %v7774_v14  ;;  %v3667_v42 = vsel %vm3571_vm3, %v3619_v41, 0.0  ;;  %v7783_v14 = vld [vmem:[#allocation82_spill] sm:$0xff]  ;;  %vm3585_vm3 = vcmp.gt.f32.partialorder %v7300_v11, 0.0 }
 0x45b   : > { %v4826_v28 = vpop.eup %4825  ;;  %v3524_v50 = vadd.f32 %v3456_v46, %v7777_v21  ;;  %v3741_v39 = vsel %vm3689_vm2, %v3667_v42, 0.0  ;;  %v7784_v21 = vld [vmem:[#allocation78_spill] sm:$0xff] }
 0x45c   : > { %v3617_v16 = vsub.f32 %v3521_v1, %v7776_v17  ;;  %v3452_v3 = vmul.f32 0.6931472, %v4826_v28  ;;  %v3366_v20 = vpop.xlane.xlu0 %3365  ;;  %v3032_v51 = vpop.xlane.xlu1 %3031 }
 0x45d   : > { %v3620_v15 = vsub.f32 %v3524_v50, %v7063_v31  ;;  %4827 = vlog2.f32 %v3366_v20 }
 0x45e   : > { %v3665_v60 = vsel %vm3569_vm1, %v3617_v16, 0.0  ;;  %v3522_v4 = vadd.f32 %v3452_v3, %v7779_v32  ;;  %v7785_v32 = vld [vmem:[#allocation69_spill] sm:$0xff]  ;;  %vm3584_vm1 = vcmp.gt.f32.partialorder %v7293_v0, 0.0 }
 0x45f   : > { %v3737_v8 = vsel %vm3689_vm2, %v3665_v60, 0.0  ;;  %v3668_v27 = vsel %vm3572_vm5, %v3620_v15, 0.0  ;;  %vm3587_vm5 = vcmp.gt.f32.partialorder %v7315_v5, 0.0 }
 0x460   : > { %v3738_v38 = vadd.f32 %v3737_v8, %v3736_v30  ;;  %v3618_v61 = vsub.f32 %v3522_v4, %v7782_v40  ;;  %v3362_v22 = vpop.xlane.xlu0 %3361  ;;  %v3743_v31 = vsel %vm3689_vm2, %v3668_v27, 0.0  ;;  %v3034_v13 = vpop.xlane.xlu1 %3033 }
 0x461   : > { %4829 = vlog2.f32 %v3362_v22 }
 0x462   : > { %v3666_v34 = vsel %vm3570_vm4, %v3618_v61, 0.0  ;;  %vm3586_vm4 = vcmp.gt.f32.partialorder %v7321_v44, 0.0 }
 0x463   : > { %v3739_v52 = vsel %vm3689_vm2, %v3666_v34, 0.0 }
 0x464   : > { %v3740_v57 = vadd.f32 %v3739_v52, %v3738_v38  ;;  %v3368_v2 = vpop.xlane.xlu0 %3367  ;;  %v3036_v41 = vpop.xlane.xlu1 %3035 }
 0x465   : > { %4831 = vlog2.f32 %v3368_v2 }
 0x466   : > { %v3742_v30 = vadd.f32 %v3741_v39, %v3740_v57 }
 0x467   : > { %v4828_v33 = vpop.eup %4827 }
 0x468   : > { %v3744_v35 = vadd.f32 %v3743_v31, %v3742_v30  ;;  %v3364_v37 = vpop.xlane.xlu0 %3363  ;;  %v3462_v9 = vmul.f32 0.6931472, %v4828_v33  ;;  %v3038_v61 = vpop.xlane.xlu1 %3037 }
 0x469   : > { %4833 = vlog2.f32 %v3364_v37 }
 0x46a   : > { %v3527_v50 = vadd.f32 %v3462_v9, %v7784_v21 }
 0x46b   : > { %v4830_v49 = vpop.eup %4829 }
 0x46c   : > { %v3458_v6 = vmul.f32 0.6931472, %v4830_v49  ;;  %v3374_v46 = vpop.xlane.xlu0 %3373  ;;  %v3623_v45 = vsub.f32 %v3527_v50, %v3030_v24 }
 0x46d   : > { %4835 = vlog2.f32 %v3374_v46  ;;  %v7788_v46 = vld [vmem:[#allocation84_spill] sm:$0xff] }
 0x46e   : > { %v3525_v1 = vadd.f32 %v3458_v6, %v7783_v14  ;;  %v3671_v42 = vsel %vm3575_vm7, %v3623_v45, 0.0  ;;  %vm3589_vm7 = vcmp.gt.f32.partialorder %v7339_v63, 0.0 }
 0x46f   : > { %v4832_v28 = vpop.eup %4831  ;;  %v3749_v26 = vsel %vm3689_vm2, %v3671_v42, 0.0 }
 0x470   : > { %v3621_v23 = vsub.f32 %v3525_v1, %v7114_v18  ;;  %v3464_v17 = vmul.f32 0.6931472, %v4832_v28  ;;  %v3370_v16 = vpop.xlane.xlu0 %3369 }
 0x471   : > { %4837 = vlog2.f32 %v3370_v16 }
 0x472   : > { %v3669_v3 = vsel %vm3573_vm6, %v3621_v23, 0.0  ;;  %v3528_v4 = vadd.f32 %v3464_v17, %v7785_v32  ;;  %v7789_v17 = vld [vmem:[#allocation73_spill] sm:$0xff]  ;;  %vm3588_vm6 = vcmp.gt.f32.partialorder %v7329_v36, 0.0 }
 0x473   : > { %v4834_v20 = vpop.eup %4833  ;;  %v3745_v62 = vsel %vm3689_vm2, %v3669_v3, 0.0 }
 0x474   : > { %v3746_v60 = vadd.f32 %v3745_v62, %v3744_v35  ;;  %v3460_v43 = vmul.f32 0.6931472, %v4834_v20  ;;  %v3376_v8 = vpop.xlane.xlu0 %3375  ;;  %v3624_v38 = vsub.f32 %v3528_v4, %v3032_v51  ;;  %v3040_v35 = vpop.xlane.xlu1 %3039  ;;  %v7790_v20 = vld [vmem:[#allocation77_spill] sm:$0xff] }
 0x475   : > { %4839 = vlog2.f32 %v3376_v8 }
 0x476   : > { %v3526_v18 = vadd.f32 %v3460_v43, %v7786_v54  ;;  %v3672_v27 = vsel %vm3576_vm9, %v3624_v38, 0.0  ;;  %vm3591_vm9 = vcmp.gt.f32.partialorder %v7351_v19, 0.0 }
 0x477   : > { %v4836_v22 = vpop.eup %4835  ;;  %v3751_v56 = vsel %vm3689_vm2, %v3672_v27, 0.0 }
 0x478   : > { %v3622_v15 = vsub.f32 %v3526_v18, %v7379_v58  ;;  %v3372_v40 = vpop.xlane.xlu0 %3371  ;;  %v3470_v30 = vmul.f32 0.6931472, %v4836_v22  ;;  %v7787_v58 = vld [vmem:[#allocation87_spill] sm:$0xff]  ;;  %v3042_v3 = vpop.xlane.xlu1 %3041 }
 0x479   : > { %4841 = vlog2.f32 %v3372_v40 }
 0x47a   : > { %v3670_v34 = vsel %vm3574_vm8, %v3622_v15, 0.0  ;;  %v3531_v9 = vadd.f32 %v3470_v30, %v7788_v46  ;;  %vm3590_vm8 = vcmp.gt.f32.partialorder %v7343_v59, 0.0 }
 0x47b   : > { %v4838_v52 = vpop.eup %4837  ;;  %v3747_v24 = vsel %vm3689_vm2, %v3670_v34, 0.0 }
 0x47c   : > { %v3748_v57 = vadd.f32 %v3747_v24, %v3746_v60  ;;  %v3466_v2 = vmul.f32 0.6931472, %v4838_v52  ;;  %v3382_v55 = vpop.xlane.xlu0 %3381  ;;  %v3627_v53 = vsub.f32 %v3531_v9, %v3038_v61  ;;  %v3044_v54 = vpop.xlane.xlu1 %3043 }
 0x47d   : > { %4843 = vlog2.f32 %v3382_v55  ;;  %v7792_v55 = vld [vmem:[#allocation90_spill] sm:$0xff] }
 0x47e   : > { %v3750_v39 = vadd.f32 %v3749_v26, %v3748_v57  ;;  %v3529_v31 = vadd.f32 %v3466_v2, %v7787_v58  ;;  %v3675_v43 = vsel %vm3579_vm11, %v3627_v53, 0.0 }
 0x47f   : > { %v4840_v51 = vpop.eup %4839  ;;  %v3757_v12 = vsel %vm3689_vm2, %v3675_v43, 0.0 }
 0x480   : > { %v3752_v37 = vadd.f32 %v3751_v56, %v3750_v39  ;;  %v3625_v33 = vsub.f32 %v3529_v31, %v3034_v13  ;;  %v3472_v49 = vmul.f32 0.6931472, %v4840_v51  ;;  %v3378_v6 = vpop.xlane.xlu0 %3377  ;;  %v3046_v2 = vpop.xlane.xlu1 %3045  ;;  %v7793_v51 = vld [vmem:[#allocation80_spill] sm:$0xff] }
 0x481   : > { %4845 = vlog2.f32 %v3378_v6 }
 0x482   : > { %v3673_v14 = vsel %vm3577_vm10, %v3625_v33, 0.0  ;;  %v3532_v16 = vadd.f32 %v3472_v49, %v7789_v17  ;;  %v7794_v49 = vld [vmem:[#allocation83_spill] sm:$0xff]  ;;  %vm3592_vm10 = vcmp.gt.f32.partialorder %v7354_v29, 0.0 }
 0x483   : > { %v4842_v1 = vpop.eup %4841  ;;  %v3753_v28 = vsel %vm3689_vm2, %v3673_v14, 0.0 }
 0x484   : > { %v3754_v23 = vadd.f32 %v3753_v28, %v3752_v37  ;;  %v3468_v21 = vmul.f32 0.6931472, %v4842_v1  ;;  %v3384_v50 = vpop.xlane.xlu0 %3383  ;;  %v3628_v62 = vsub.f32 %v3532_v16, %v3040_v35  ;;  %v3048_v6 = vpop.xlane.xlu1 %3047 }
 0x485   : > { %4847 = vlog2.f32 %v3384_v50 }
 0x486   : > { %v3530_v13 = vadd.f32 %v3468_v21, %v7790_v20  ;;  %v3676_v38 = vsel %vm3580_vm13, %v3628_v62, 0.0 }
 0x487   : > { %v4844_v4 = vpop.eup %4843  ;;  %v3759_v7 = vsel %vm3689_vm2, %v3676_v38, 0.0 }
 0x488   : > { %v3626_v60 = vsub.f32 %v3530_v13, %v3036_v41  ;;  %v3380_v32 = vpop.xlane.xlu0 %3379  ;;  %v3478_v22 = vmul.f32 0.6931472, %v4844_v4  ;;  %v7791_v41 = vld [vmem:[#allocation18_spill] sm:$0xff]  ;;  %v3050_v13 = vpop.xlane.xlu1 %3049 }
 0x489   : > { %4849 = vlog2.f32 %v3380_v32 }
 0x48a   : > { %v3674_v8 = vsel %vm3578_vm12, %v3626_v60, 0.0  ;;  %v3535_v26 = vadd.f32 %v3478_v22, %v7792_v55 }
 0x48b   : > { %v4846_v45 = vpop.eup %4845  ;;  %v3755_v18 = vsel %vm3689_vm2, %v3674_v8, 0.0 }
 0x48c   : > { %v3756_v15 = vadd.f32 %v3755_v18, %v3754_v23  ;;  %v3474_v40 = vmul.f32 0.6931472, %v4846_v45  ;;  %v3390_v61 = vpop.xlane.xlu0 %3389  ;;  %v3631_v33 = vsub.f32 %v3535_v26, %v3046_v2  ;;  %v7798_v26 = vld [vmem:[#allocation28_spill] sm:$0xff] }
 0x48e   : > { %v3758_v48 = vadd.f32 %v3757_v12, %v3756_v15  ;;  %v3533_v42 = vadd.f32 %v3474_v40, %v7791_v41  ;;  %v3679_v1 = vsel %vm3583_vm15, %v3631_v33, 0.0  ;;  %v3054_v15 = vpop.xlane.xlu1 %3053 }
 0x48f   : > { %v4848_v34 = vpop.eup %4847  ;;  %v3765_v53 = vsel %vm3689_vm2, %v3679_v1, 0.0 }
 0x490   : > { %v3760_v52 = vadd.f32 %v3759_v7, %v3758_v48  ;;  %v3629_v24 = vsub.f32 %v3533_v42, %v3042_v3  ;;  %v3480_v27 = vmul.f32 0.6931472, %v4848_v34  ;;  %v3386_v57 = vpop.xlane.xlu0 %3385 }
 0x491   : > { %4851 = vlog2.f32 %v3386_v57 }
 0x492   : > { %v3677_v39 = vsel %vm3581_vm14, %v3629_v24, 0.0  ;;  %v3536_v56 = vadd.f32 %v3480_v27, %v7793_v51  ;;  %4853 = vlog2.f32 %v3390_v61  ;;  %v7796_v61 = vld [vmem:[#allocation20_spill] sm:$0xff]  ;;  %v3058_v27 = vpop.xlane.xlu1 %3057 }
 0x493   : > { %v4850_v30 = vpop.eup %4849  ;;  %v3761_v58 = vsel %vm3689_vm2, %v3677_v39, 0.0 }
 0x494   : > { %v3762_v31 = vadd.f32 %v3761_v58, %v3760_v52  ;;  %v3476_v35 = vmul.f32 0.6931472, %v4850_v30  ;;  %v3392_v37 = vpop.xlane.xlu0 %3391  ;;  %v3632_v46 = vsub.f32 %v3536_v56, %v3048_v6  ;;  %v7797_v52 = vld [vmem:[#allocation7_spill] sm:$0xff]  ;;  %v7799_v58 = vld [vmem:[#allocation8_spill] sm:$0xff]  ;;  %v7800_v56 = vld [vmem:[#allocation86_spill] sm:$0xff] }
 0x496   : > { %v3534_v25 = vadd.f32 %v3476_v35, %v7794_v49  ;;  %v3680_v16 = vsel %vm3584_vm1, %v3632_v46, 0.0  ;;  %v3062_v46 = vpop.xlane.xlu1 %3061 }
 0x497   : > { %v3767_v0 = vsel %vm3689_vm2, %v3680_v16, 0.0 }
 0x498   : > { %v3630_v9 = vsub.f32 %v3534_v25, %v3044_v54  ;;  %v3388_v14 = vpop.xlane.xlu0 %3387 }
 0x499   : > { %4855 = vlog2.f32 %v3388_v14  ;;  %v7801_v14 = vld [vmem:[#allocation10_spill] sm:$0xff] }
 0x49a   : > { %v3678_v28 = vsel %vm3582_vm0, %v3630_v9, 0.0  ;;  %4857 = vlog2.f32 %v3392_v37 }
 0x49b   : > { %v4852_v23 = vpop.eup %4851  ;;  %v3763_v17 = vsel %vm3689_vm2, %v3678_v28, 0.0 }
 0x49c   : > { %v3764_v21 = vadd.f32 %v3763_v17, %v3762_v31  ;;  %v3482_v50 = vmul.f32 0.6931472, %v4852_v23  ;;  %v3398_v3 = vpop.xlane.xlu0 %3397  ;;  %v4854_v62 = vpop.eup %4853 }
 0x49d   : > { %4859 = vlog2.f32 %v3398_v3  ;;  %v3486_v8 = vmul.f32 0.6931472, %v4854_v62 }
 0x49e   : > { %v3537_v47 = vadd.f32 %v3482_v50, %v7795_v10  ;;  %v3766_v20 = vadd.f32 %v3765_v53, %v3764_v21 }
 0x49f   : > { %v3539_v12 = vadd.f32 %v3486_v8, %v7796_v61 }
 0x4a0   : > { %v3633_v60 = vsub.f32 %v3537_v47, %v3050_v13  ;;  %v3394_v32 = vpop.xlane.xlu0 %3393  ;;  %v3768_v4 = vadd.f32 %v3767_v0, %v3766_v20  ;;  %v7802_v20 = vld [vmem:[#allocation9_spill] sm:$0xff] }
 0x4a1   : > { %4861 = vlog2.f32 %v3394_v32  ;;  %v3635_v42 = vsub.f32 %v3539_v12, %v3054_v15 }
 0x4a2   : > { %v3681_v43 = vsel %vm3585_vm3, %v3633_v60, 0.0 }
 0x4a3   : > { %v3769_v45 = vsel %vm3689_vm2, %v3681_v43, 0.0  ;;  %v4856_v54 = vpop.eup %4855  ;;  %v3683_v37 = vsel %vm3587_vm5, %v3635_v42, 0.0 }
 0x4a4   : > { %v3396_v18 = vpop.xlane.xlu0 %3395  ;;  %v3770_v38 = vadd.f32 %v3769_v45, %v3768_v4  ;;  %v4858_v40 = vpop.eup %4857  ;;  %v3484_v11 = vmul.f32 0.6931472, %v4856_v54  ;;  %v3773_v9 = vsel %vm3689_vm2, %v3683_v37, 0.0 }
 0x4a5   : > { %4863 = vlog2.f32 %v3396_v18  ;;  %v3488_v34 = vmul.f32 0.6931472, %v4858_v40 }
 0x4a6   : > { %v3538_v24 = vadd.f32 %v3484_v11, %v7797_v52 }
 0x4a7   : > { %v4860_v48 = vpop.eup %4859  ;;  %v3540_v35 = vadd.f32 %v3488_v34, %v7800_v56 }
 0x4a8   : > { %v3400_v22 = vpop.xlane.xlu0 %3399  ;;  %v3494_v7 = vmul.f32 0.6931472, %v4860_v48 }
 0x4a9   : > { %4865 = vlog2.f32 %v3400_v22 }
 0x4aa   : > { %v3543_v31 = vadd.f32 %v3494_v7, %v7799_v58 }
 0x4ab   : > { %v4862_v41 = vpop.eup %4861 }
 0x4ac   : > { %v3490_v57 = vmul.f32 0.6931472, %v4862_v41  ;;  %v3052_v2 = vpop.xlane.xlu0 %3051  ;;  %v3639_v23 = vsub.f32 %v3543_v31, %v3062_v46 }
 0x4ad   : > { %v3634_v55 = vsub.f32 %v3538_v24, %v3052_v2 }
 0x4ae   : > { %v3541_v39 = vadd.f32 %v3490_v57, %v7798_v26  ;;  %v3687_v60 = vsel %vm3591_vm9, %v3639_v23, 0.0 }
 0x4af   : > { %v4864_v30 = vpop.eup %4863  ;;  %v3682_v51 = vsel %vm3586_vm4, %v3634_v55, 0.0  ;;  %v3781_v43 = vsel %vm3689_vm2, %v3687_v60, 0.0 }
 0x4b0   : > { %v3637_v33 = vsub.f32 %v3541_v39, %v3058_v27  ;;  %v3492_v49 = vmul.f32 0.6931472, %v4864_v30  ;;  %v3771_v25 = vsel %vm3689_vm2, %v3682_v51, 0.0  ;;  %v3056_v44 = vpop.xlane.xlu0 %3055 }
 0x4b1   : > { %v3772_v5 = vadd.f32 %v3771_v25, %v3770_v38  ;;  %v3636_v6 = vsub.f32 %v3540_v35, %v3056_v44 }
 0x4b2   : > { %v3542_v1 = vadd.f32 %v3492_v49, %v7801_v14  ;;  %v3685_v21 = vsel %vm3589_vm7, %v3637_v33, 0.0 }
 0x4b3   : > { %v4866_v28 = vpop.eup %4865  ;;  %v3774_v17 = vadd.f32 %v3773_v9, %v3772_v5  ;;  %v3684_v16 = vsel %vm3588_vm6, %v3636_v6, 0.0  ;;  %v3777_v47 = vsel %vm3689_vm2, %v3685_v21, 0.0 }
 0x4b4   : > { %v3496_v50 = vmul.f32 0.6931472, %v4866_v28  ;;  %v3775_v3 = vsel %vm3689_vm2, %v3684_v16, 0.0  ;;  %v3060_v63 = vpop.xlane.xlu0 %3059 }
 0x4b5   : > { %v3776_v53 = vadd.f32 %v3775_v3, %v3774_v17  ;;  %v3638_v10 = vsub.f32 %v3542_v1, %v3060_v63 }
 0x4b6   : > { %v3544_v13 = vadd.f32 %v3496_v50, %v7802_v20 }
 0x4b7   : > { %v3778_v0 = vadd.f32 %v3777_v47, %v3776_v53  ;;  %v3686_v62 = vsel %vm3590_vm8, %v3638_v10, 0.0 }
 0x4b8   : > { %v3779_v36 = vsel %vm3689_vm2, %v3686_v62, 0.0  ;;  %v3064_v32 = vpop.xlane.xlu0 %3063 }
 0x4b9   : > { %v3780_v4 = vadd.f32 %v3779_v36, %v3778_v0  ;;  %v3640_v59 = vsub.f32 %v3544_v13, %v3064_v32 }
 0x4bb   : > { %v3782_v19 = vadd.f32 %v3781_v43, %v3780_v4  ;;  %v3688_v8 = vsel %vm3592_vm10, %v3640_v59, 0.0 }
 0x4bc   : > { %v3783_v45 = vsel %vm3689_vm2, %v3688_v8, 0.0 }
 0x4bd   : > { %v3784_v54 = vadd.f32 %v3783_v45, %v3782_v19 }
 0x4bf   : > { %v3785_v18 = vrot.slane %v3784_v54, 4 }
 0x4c1   : > { %v3786_v38 = vadd.f32 %v3785_v18, %v3784_v54 }
 0x4c3   : > { %v3787_v15 = vrot.slane %v3786_v38, 2 }
 0x4c5   : > { %v3788_v40 = vadd.f32 %v3787_v15, %v3786_v38 }
 0x4c7   : > { %v3789_v61 = vrot.slane %v3788_v40, 1 }
 0x4c9   : > { %v3790_v12 = vadd.f32 %v3789_v61, %v3788_v40 }
 0x4ca   : > { %v3901_v29 = vpop.permute.xlu0 %3900 }
 0x4cb   : > { %3894 = vperm.xlu1 %4469, %v3790_v12   ;;  %3903 = vst [vmem:[%s285_s29 + $0x1] sm:$0x1] %v3901_v29 }
 0x54a   : > { %v3895_v11 = vpop.permute.xlu1 %3894 }
 0x54b   : > { %3897 = vst [vmem:[%s285_s29] sm:$0x1] %v3895_v11 }
 0x54c   : > { %4950 = shalt.err (!%p4947_p3)
}
 0x54d   : > { %s4951_s18 = scalar_lea.hbm %s7465_s14, 32  ;;  %s4955_s26 = scalar_lea.hbm %s7511_s6, 64 }
 0x54e   : > { %p4952_p4 = scmp.ne.s32.totalorder %s7465_s14, %s4951_s18  ;;  %p4956_p9 = scmp.lt.u32.totalorder %s7465_s14, %s7511_s6 }
 0x54f   : > { %p4957_p10 = scmp.lt.u32.totalorder %s4955_s26, %s4951_s18  ;;  %p4959_p12 = scmp.lt.u32.totalorder %s4951_s18, %s7465_s14 }
 0x550   : > { %p4953_p7 = pnand %p4952_p4, %p5077_p5 }
 0x551   : > { %p4958_p11 = por %p4957_p10, %p4956_p9 }
 0x552   : > { %p4954_p8 = pneg %p4953_p7 }
 0x553   : > { %p4960_p13 = por %p4959_p12, %p4958_p11 }
 0x555   : > { %p4961_p0 = pnand %p4960_p13, %p4954_p8 }
 0x557   : > { %4964 = shalt.err (!%p4961_p0)
}
 0x558   : > { %4426 = dma.vmem_to_hbm [thread:$0]  (%p5077_p5), %s7460_s11, 32, %s7465_s14, %s3905_s15  }
 0x559 PF: > { %p4432_p1 = scmp.ge.s32.totalorder %s4999_s24, 2  ;;  %s3930_s9 = sand.u32 1, %s4987_s21  }
 0x55a   : > { %s3931_s10 = scalar_lea.sflag [#allocation3], %s3930_s9 }
 0x55b   : > { %p4429_p2 = pnand %p4432_p1, %p5081_p6 }
 0x55d   : > { %4982 = dma.done.wait (!%p4429_p2), %s3931_s10, 32  }
 0x55e   : > { %4984 = vsyncadd (!%p4429_p2), %s3931_s10, 4294967264  ;;  %p16_p3 = scmp.ge.s32.totalorder %s5064_s27, 4   ;;  %s7803_s21 = smov %s4991_s22 }
 0x55f   : > { %s7804_s22 = smov %s4995_s23  ;;  %s7805_s23 = smov %s5075_s30 }
 0x560   : > { %s7806_s24 = smov %s5064_s27  ;;  %18 = sbr.rel (!%p16_p3) target bundleno = 3 (0x3), region = 82 }
 0x567   :  { %3936 = vsyncpa [#allocation3], 1 }
 0x568   :  { %3938 = vsyncpa [#allocation3 + $0x1], 1 }

</bundles_post_ra>
